<compile_context>
chip_gen: v6e
topology: v6e:2x2x1
jax: 0.10.0
libtpu: 0.0.40
codegen_flags: <defaults>
</compile_context>

<pallas_src>
from functools import partial

import numpy as np
import jax
import jax.numpy as jnp
from jax import lax
from jax.experimental import pallas as pl
from jax.experimental.pallas import tpu as pltpu

LANE = 128      # TPU lane width: all conv output channels padded to this
SUBLANE = 8     # contraction / pooled-row dims padded to a multiple of this


def _round_up(x, m):
    return (x + m - 1) // m * m


def _build_tap_selection(h_in, w_in, ksize, stride, pad):
    """Constant 0/1 matrices implementing the im2col row-gather per conv tap.

    sel[k, t, u] = 1 iff conv output position t (row-major over the output
    grid) reads input position u (row-major over h_in x w_in) at tap
    k = kh*ksize + kw.  Out-of-bounds taps (zero padding) leave the row zero.
    Inside the kernel `sel[k] @ X` gathers patch rows on the MXU, so im2col
    patches never touch HBM.
    """
    h_out = (h_in + 2 * pad - ksize) // stride + 1
    w_out = (w_in + 2 * pad - ksize) // stride + 1
    sel = np.zeros((ksize * ksize, h_out * w_out, h_in * w_in), np.float32)
    for kh in range(ksize):
        for kw in range(ksize):
            k = kh * ksize + kw
            for r in range(h_out):
                u = r * stride + kh - pad
                if not (0 <= u < h_in):
                    continue
                for s in range(w_out):
                    v = s * stride + kw - pad
                    if 0 <= v < w_in:
                        sel[k, r * w_out + s, u * w_in + v] = 1.0
    return sel, h_out, w_out


def _block_diag_taps(sel, nb):
    """Per-tap block-diagonal replication so NB batch elements share one matmul."""
    k, t, u = sel.shape
    out = np.zeros((k, nb * t, nb * u), sel.dtype)
    for b in range(nb):
        out[:, b * t:(b + 1) * t, b * u:(b + 1) * u] = sel
    return out


# ---------------------------------------------------------------------------
# Fused Pallas kernel: conv1 + ReLU -> conv2 + ReLU -> mean / unbiased std
# ---------------------------------------------------------------------------
def _fused_backbone_pool_kernel(x_ref, sel1_ref, w1_ref, b1_ref,
                                sel2_ref, w2_ref, b2_ref,
                                pool_ref, poolT_ref,
                                mean_ref, std_ref, *, nb, hw2):
    """One batch *chunk* (nb images, stacked along rows) per grid step.

    x_ref:    (nb*HWin, CIN_P)       bf16  flattened NHWC input (channels padded)
    sel1_ref: (9, nb*HW1, nb*HWin)   bf16  conv1 block-diag im2col selection (constant)
    w1_ref:   (9, CIN_P, 128)        bf16  conv1 per-tap weights (Cout padded to 128)
    b1_ref:   (1, 128)               f32
    sel2_ref: (9, nb*HW2, nb*HW1)    bf16  conv2 block-diag im2col selection (constant)
    w2_ref:   (9, 128, 128)          bf16  conv2 per-tap weights
    b2_ref:   (1, 128)               f32
    pool_ref: (8, nb*HW2)            f32   per-image ones rows (rows >= nb are zero)
    poolT_ref:(nb*HW2, 8)            f32   transpose of pool (broadcast matrix)
    mean_ref: (nb, 128)              f32   lane-dense pooled mean (valid cols = C2)
    std_ref:  (nb, 128)              f32   lane-dense pooled unbiased std
    """
    f32 = jnp.float32
    bf16 = jnp.bfloat16
    n_taps = sel1_ref.shape[0]

    x = x_ref[...]                                              # (nb*HWin, CIN_P) bf16

    # ---- conv1: per-tap selection matmul (im2col on MXU) + weight matmul ----
    rows1 = sel1_ref.shape[1]
    acc1 = jnp.zeros((rows1, LANE), f32)
    for k in range(n_taps):
        # one-hot selection => exact copy of the bf16 input rows (lossless)
        patch = jnp.dot(sel1_ref[k], x, preferred_element_type=f32)      # (rows1, CIN_P)
        acc1 = acc1 + jnp.dot(patch.astype(bf16), w1_ref[k],
                              preferred_element_type=f32)                # (rows1, 128)
    a1 = jnp.maximum(acc1 + b1_ref[...], 0.0).astype(bf16)               # (rows1, 128)

    # ---- conv2 ----
    rows2 = sel2_ref.shape[1]
    acc2 = jnp.zeros((rows2, LANE), f32)
    for k in range(n_taps):
        patch = jnp.dot(sel2_ref[k], a1, preferred_element_type=f32)     # (rows2, 128)
        acc2 = acc2 + jnp.dot(patch.astype(bf16), w2_ref[k],
                              preferred_element_type=f32)                # (rows2, 128)
    a2 = jnp.maximum(acc2 + b2_ref[...], 0.0)                            # (rows2, 128) f32

    # ---- pooling: per-image mean + unbiased std (centered two-pass, on MXU) ----
    s1 = jnp.dot(pool_ref[...], a2, preferred_element_type=f32)          # (8, 128)
    mean_p = s1 * (1.0 / hw2)
    mean_bc = jnp.dot(poolT_ref[...], mean_p, preferred_element_type=f32)  # (rows2, 128)
    d = a2 - mean_bc
    s2 = jnp.dot(pool_ref[...], d * d, preferred_element_type=f32)       # (8, 128)
    std_p = jnp.sqrt(s2 * (1.0 / (hw2 - 1.0)))                           # unbiased std
    mean_ref[...] = mean_p[:nb]
    std_ref[...] = std_p[:nb]


@partial(jax.jit, static_argnames=("nb",))
def _fused_forward(x_stacked, sel1, w1_taps, b1_row, sel2, w2_taps, b2_row,
                   pool, pool_t, *, nb):
    n_taps, rows1, rows_in = sel1.shape
    _, rows2, _ = sel2.shape
    cin_p = x_stacked.shape[1]
    n_chunks = x_stacked.shape[0] // rows_in
    hw2 = rows2 // nb

    kernel = partial(_fused_backbone_pool_kernel, nb=nb, hw2=hw2)

    mean, std = pl.pallas_call(
        kernel,
        out_shape=(
            jax.ShapeDtypeStruct((n_chunks * nb, LANE), jnp.float32),
            jax.ShapeDtypeStruct((n_chunks * nb, LANE), jnp.float32),
        ),
        grid=(n_chunks,),
        in_specs=[
            pl.BlockSpec((rows_in, cin_p), lambda i: (i, 0)),
            # constants: same block every step -> fetched once, reused
            pl.BlockSpec((n_taps, rows1, rows_in), lambda i: (0, 0, 0)),
            pl.BlockSpec((n_taps, cin_p, LANE), lambda i: (0, 0, 0)),
            pl.BlockSpec((1, LANE), lambda i: (0, 0)),
            pl.BlockSpec((n_taps, rows2, rows1), lambda i: (0, 0, 0)),
            pl.BlockSpec((n_taps, LANE, LANE), lambda i: (0, 0, 0)),
            pl.BlockSpec((1, LANE), lambda i: (0, 0)),
            pl.BlockSpec((SUBLANE, rows2), lambda i: (0, 0)),
            pl.BlockSpec((rows2, SUBLANE), lambda i: (0, 0)),
        ],
        out_specs=(
            pl.BlockSpec((nb, LANE), lambda i: (i, 0)),
            pl.BlockSpec((nb, LANE), lambda i: (i, 0)),
        ),
        compiler_params=pltpu.CompilerParams(
            dimension_semantics=("parallel",),
            vmem_limit_bytes=32 * 1024 * 1024,
        ),
    )(x_stacked, sel1, w1_taps, b1_row, sel2, w2_taps, b2_row, pool, pool_t)
    return mean, std


# ---------------------------------------------------------------------------
# Model
# ---------------------------------------------------------------------------
class CNNModelMotionPallas:
    """Stand-in for CNNModel_Motion(model='ResNet-50') with deterministic weights."""

    def __init__(self, key, in_channels=4, c1=16, c2=32, height=16, width=16):
        k1, k2, k3, k4 = jax.random.split(key, 4)
        self.in_channels, self.c1, self.c2 = in_channels, c1, c2
        self.h, self.w = height, width
        # conv weights stored (KH, KW, Cin, Cout) == transposed PyTorch layout
        self.w1 = 0.1 * jax.random.normal(k1, (3, 3, in_channels, c1), jnp.float32)
        self.b1 = 0.01 * jax.random.normal(k2, (c1,), jnp.float32)
        self.w2 = 0.1 * jax.random.normal(k3, (3, 3, c1, c2), jnp.float32)
        self.b2 = 0.01 * jax.random.normal(k4, (c2,), jnp.float32)

        self.cin_p = _round_up(in_channels, SUBLANE)

        # constant im2col selection matrices (stride 2, pad 1, 3x3)
        self._sel1_np, h1, w1sp = _build_tap_selection(height, width, 3, 2, 1)
        self._sel2_np, h2, w2sp = _build_tap_selection(h1, w1sp, 3, 2, 1)
        self.hw2 = h2 * w2sp

        # per-tap weight matrices: K padded to mult of 8, Cout padded to 128
        w1_np = np.asarray(self.w1)
        w2_np = np.asarray(self.w2)
        w1_taps = np.zeros((9, self.cin_p, LANE), np.float32)
        w2_taps = np.zeros((9, LANE, LANE), np.float32)
        for kh in range(3):
            for kw in range(3):
                k = kh * 3 + kw
                w1_taps[k, :in_channels, :c1] = w1_np[kh, kw]
                w2_taps[k, :c1, :c2] = w2_np[kh, kw]
        self.w1_taps = jnp.asarray(w1_taps, jnp.bfloat16)
        self.w2_taps = jnp.asarray(w2_taps, jnp.bfloat16)

        b1_row = np.zeros((1, LANE), np.float32)
        b1_row[0, :c1] = np.asarray(self.b1)
        b2_row = np.zeros((1, LANE), np.float32)
        b2_row[0, :c2] = np.asarray(self.b2)
        self.b1_row = jnp.asarray(b1_row)
        self.b2_row = jnp.asarray(b2_row)

        self._const_cache = {}

    def _batch_constants(self, nb):
        """Block-diagonal selection + pooling constants for a batch block of nb images."""
        if nb in self._const_cache:
            return self._const_cache[nb]
        sel1_bd = _block_diag_taps(self._sel1_np, nb)           # (9, nb*HW1, nb*HWin)
        sel2_bd = _block_diag_taps(self._sel2_np, nb)           # (9, nb*HW2, nb*HW1)
        pool = np.zeros((SUBLANE, nb * self.hw2), np.float32)   # per-image ones rows
        for b in range(nb):
            pool[b, b * self.hw2:(b + 1) * self.hw2] = 1.0
        consts = (jnp.asarray(sel1_bd, jnp.bfloat16),
                  jnp.asarray(sel2_bd, jnp.bfloat16),
                  jnp.asarray(pool),
                  jnp.asarray(pool.T))
        self._const_cache[nb] = consts
        return consts

    def __call__(self, x_nchw):
        n, c, h, w = x_nchw.shape
        assert (c, h, w) == (self.in_channels, self.h, self.w)
        # batch block: whole batch when small, else chunks of 8 (sublane multiple)
        nb = n if n <= SUBLANE else SUBLANE
        assert n % nb == 0

        sel1_bd, sel2_bd, pool, pool_t = self._batch_constants(nb)

        # layout glue only (no data blow-up): NCHW -> (N*H*W, Cin_padded) bf16
        x_nhwc = jnp.transpose(x_nchw, (0, 2, 3, 1)).astype(jnp.float32)
        x_flat = x_nhwc.reshape(n, h * w, c)
        x_flat = jnp.pad(x_flat, ((0, 0), (0, 0), (0, self.cin_p - c)))
        x_stacked = x_flat.astype(jnp.bfloat16).reshape(n * h * w, self.cin_p)

        mean, std = _fused_forward(x_stacked, sel1_bd, self.w1_taps, self.b1_row,
                                   sel2_bd, self.w2_taps, self.b2_row,
                                   pool, pool_t, nb=nb)
        features_mean = mean[:, :self.c2].reshape(n, self.c2, 1, 1)
        features_std = std[:, :self.c2].reshape(n, self.c2, 1, 1)
        return features_mean, features_std


# ---------------------------------------------------------------------------
# Pure-JAX reference (same bf16 rounding points as the kernel) for validation
# ---------------------------------------------------------------------------
def _reference_forward(model, x_nchw):
    bf = lambda t: t.astype(jnp.bfloat16).astype(jnp.float32)
    dn = ('NHWC', 'HWIO', 'NHWC')
    x = bf(jnp.transpose(x_nchw, (0, 2, 3, 1)).astype(jnp.float32))
    y = lax.conv_general_dilated(x, bf(model.w1), (2, 2), ((1, 1), (1, 1)),
                                 dimension_numbers=dn)
    y = bf(jnp.maximum(y + model.b1, 0.0))
    y = lax.conv_general_dilated(y, bf(model.w2), (2, 2), ((1, 1), (1, 1)),
                                 dimension_numbers=dn)
    y = jnp.maximum(y + model.b2, 0.0)                     # (N, H2, W2, C2)
    yf = y.reshape(y.shape[0], -1, y.shape[-1])
    mean = jnp.mean(yf, axis=1)
    std = jnp.std(yf, axis=1, ddof=1)
    c2 = y.shape[-1]
    return mean.reshape(-1, c2, 1, 1), std.reshape(-1, c2, 1, 1)


# ---------------------------------------------------------------------------
# Main
# ---------------------------------------------------------------------------
if __name__ == "__main__":
    key = jax.random.PRNGKey(0)
    k_in, k_model = jax.random.split(key)

    # small NCHW input consistent with the module's conv backbone
    x = jax.random.normal(k_in, (2, 4, 16, 16), jnp.float32)

    model = CNNModelMotionPallas(k_model, in_channels=4, height=16, width=16)
    features_mean, features_std = model(x)
    jax.block_until_ready((features_mean, features_std))

    assert features_mean.shape == (2, 32, 1, 1)
    assert features_std.shape == (2, 32, 1, 1)

    # loose tolerance covers bf16 operand rounding; structural bugs would be O(1)
    ref_mean, ref_std = _reference_forward(model, x)
    assert jnp.allclose(features_mean, ref_mean, atol=5e-2, rtol=5e-2)
    assert jnp.allclose(features_std, ref_std, atol=5e-2, rtol=5e-2)

    print("KERNEL_OK")
</pallas_src>

<mosaic_0001>
module attributes {stable_mosaic.version = 11 : i64} {
  func.func @_fused_backbone_pool_kernel(%arg0: i32, %arg1: memref<512x8xbf16, #tpu.memory_space<vmem>>, %arg2: memref<9x128x512xbf16, #tpu.memory_space<vmem>>, %arg3: memref<9x8x128xbf16, #tpu.memory_space<vmem>>, %arg4: memref<1x128xf32, #tpu.memory_space<vmem>>, %arg5: memref<9x32x128xbf16, #tpu.memory_space<vmem>>, %arg6: memref<9x128x128xbf16, #tpu.memory_space<vmem>>, %arg7: memref<1x128xf32, #tpu.memory_space<vmem>>, %arg8: memref<8x32xf32, #tpu.memory_space<vmem>>, %arg9: memref<32x8xf32, #tpu.memory_space<vmem>>, %arg10: memref<2x128xf32, #tpu.memory_space<vmem>>, %arg11: memref<2x128xf32, #tpu.memory_space<vmem>>) attributes {dimension_semantics = [#tpu.dimension_semantics<parallel>], iteration_bounds = array<i64: 1>, scalar_prefetch = 0 : i64, scratch_operands = 0 : i64, tpu.core_type = #tpu.core_type<tc>, window_params = [{transform_indices = @transform_0, window_bounds = array<i64: 512, 8>}, {pipeline_mode = #tpu.pipeline_mode<synchronous>, transform_indices = @transform_1, window_bounds = array<i64: 9, 128, 512>}, {pipeline_mode = #tpu.pipeline_mode<synchronous>, transform_indices = @transform_2, window_bounds = array<i64: 9, 8, 128>}, {pipeline_mode = #tpu.pipeline_mode<synchronous>, transform_indices = @transform_3, window_bounds = array<i64: 1, 128>}, {pipeline_mode = #tpu.pipeline_mode<synchronous>, transform_indices = @transform_4, window_bounds = array<i64: 9, 32, 128>}, {pipeline_mode = #tpu.pipeline_mode<synchronous>, transform_indices = @transform_5, window_bounds = array<i64: 9, 128, 128>}, {pipeline_mode = #tpu.pipeline_mode<synchronous>, transform_indices = @transform_6, window_bounds = array<i64: 1, 128>}, {pipeline_mode = #tpu.pipeline_mode<synchronous>, transform_indices = @transform_7, window_bounds = array<i64: 8, 32>}, {pipeline_mode = #tpu.pipeline_mode<synchronous>, transform_indices = @transform_8, window_bounds = array<i64: 32, 8>}, {transform_indices = @transform_9, window_bounds = array<i64: 2, 128>}, {transform_indices = @transform_10, window_bounds = array<i64: 2, 128>}]} {
    %c0 = arith.constant 0 : index
    %c0_0 = arith.constant 0 : index
    %0 = vector.load %arg1[%c0, %c0_0] : memref<512x8xbf16, #tpu.memory_space<vmem>>, vector<512x8xbf16>
    %cst = arith.constant 0.000000e+00 : f32
    %1 = vector.broadcast %cst : f32 to vector<128x128xf32>
    %c0_1 = arith.constant 0 : index
    %c0_2 = arith.constant 0 : index
    %c0_3 = arith.constant 0 : index
    %2 = vector.load %arg2[%c0_1, %c0_2, %c0_3] : memref<9x128x512xbf16, #tpu.memory_space<vmem>>, vector<1x128x512xbf16>
    %3 = vector.shape_cast %2 : vector<1x128x512xbf16> to vector<128x512xbf16>
    %cst_4 = arith.constant dense<0.000000e+00> : vector<128x8xf32>
    %4 = tpu.matmul %3, %0, %cst_4 {dimension_numbers = #tpu.dot_dimension_numbers<[1], [0], [0], [1], [0, 0, 1, 1], [], []>} : vector<128x512xbf16>, vector<512x8xbf16>, vector<128x8xf32> -> vector<128x8xf32>
    %5 = arith.truncf %4 : vector<128x8xf32> to vector<128x8xbf16>
    %c0_5 = arith.constant 0 : index
    %c0_6 = arith.constant 0 : index
    %c0_7 = arith.constant 0 : index
    %6 = vector.load %arg3[%c0_5, %c0_6, %c0_7] : memref<9x8x128xbf16, #tpu.memory_space<vmem>>, vector<1x8x128xbf16>
    %7 = vector.shape_cast %6 : vector<1x8x128xbf16> to vector<8x128xbf16>
    %cst_8 = arith.constant dense<0.000000e+00> : vector<128x128xf32>
    %8 = tpu.matmul %5, %7, %cst_8 {dimension_numbers = #tpu.dot_dimension_numbers<[1], [0], [0], [1], [0, 0, 1, 1], [], []>} : vector<128x8xbf16>, vector<8x128xbf16>, vector<128x128xf32> -> vector<128x128xf32>
    %9 = arith.addf %1, %8 : vector<128x128xf32>
    %c1 = arith.constant 1 : index
    %c0_9 = arith.constant 0 : index
    %c0_10 = arith.constant 0 : index
    %10 = vector.load %arg2[%c1, %c0_9, %c0_10] : memref<9x128x512xbf16, #tpu.memory_space<vmem>>, vector<1x128x512xbf16>
    %11 = vector.shape_cast %10 : vector<1x128x512xbf16> to vector<128x512xbf16>
    %cst_11 = arith.constant dense<0.000000e+00> : vector<128x8xf32>
    %12 = tpu.matmul %11, %0, %cst_11 {dimension_numbers = #tpu.dot_dimension_numbers<[1], [0], [0], [1], [0, 0, 1, 1], [], []>} : vector<128x512xbf16>, vector<512x8xbf16>, vector<128x8xf32> -> vector<128x8xf32>
    %13 = arith.truncf %12 : vector<128x8xf32> to vector<128x8xbf16>
    %c1_12 = arith.constant 1 : index
    %c0_13 = arith.constant 0 : index
    %c0_14 = arith.constant 0 : index
    %14 = vector.load %arg3[%c1_12, %c0_13, %c0_14] : memref<9x8x128xbf16, #tpu.memory_space<vmem>>, vector<1x8x128xbf16>
    %15 = vector.shape_cast %14 : vector<1x8x128xbf16> to vector<8x128xbf16>
    %cst_15 = arith.constant dense<0.000000e+00> : vector<128x128xf32>
    %16 = tpu.matmul %13, %15, %cst_15 {dimension_numbers = #tpu.dot_dimension_numbers<[1], [0], [0], [1], [0, 0, 1, 1], [], []>} : vector<128x8xbf16>, vector<8x128xbf16>, vector<128x128xf32> -> vector<128x128xf32>
    %17 = arith.addf %9, %16 : vector<128x128xf32>
    %c2 = arith.constant 2 : index
    %c0_16 = arith.constant 0 : index
    %c0_17 = arith.constant 0 : index
    %18 = vector.load %arg2[%c2, %c0_16, %c0_17] : memref<9x128x512xbf16, #tpu.memory_space<vmem>>, vector<1x128x512xbf16>
    %19 = vector.shape_cast %18 : vector<1x128x512xbf16> to vector<128x512xbf16>
    %cst_18 = arith.constant dense<0.000000e+00> : vector<128x8xf32>
    %20 = tpu.matmul %19, %0, %cst_18 {dimension_numbers = #tpu.dot_dimension_numbers<[1], [0], [0], [1], [0, 0, 1, 1], [], []>} : vector<128x512xbf16>, vector<512x8xbf16>, vector<128x8xf32> -> vector<128x8xf32>
    %21 = arith.truncf %20 : vector<128x8xf32> to vector<128x8xbf16>
    %c2_19 = arith.constant 2 : index
    %c0_20 = arith.constant 0 : index
    %c0_21 = arith.constant 0 : index
    %22 = vector.load %arg3[%c2_19, %c0_20, %c0_21] : memref<9x8x128xbf16, #tpu.memory_space<vmem>>, vector<1x8x128xbf16>
    %23 = vector.shape_cast %22 : vector<1x8x128xbf16> to vector<8x128xbf16>
    %cst_22 = arith.constant dense<0.000000e+00> : vector<128x128xf32>
    %24 = tpu.matmul %21, %23, %cst_22 {dimension_numbers = #tpu.dot_dimension_numbers<[1], [0], [0], [1], [0, 0, 1, 1], [], []>} : vector<128x8xbf16>, vector<8x128xbf16>, vector<128x128xf32> -> vector<128x128xf32>
    %25 = arith.addf %17, %24 : vector<128x128xf32>
    %c3 = arith.constant 3 : index
    %c0_23 = arith.constant 0 : index
    %c0_24 = arith.constant 0 : index
    %26 = vector.load %arg2[%c3, %c0_23, %c0_24] : memref<9x128x512xbf16, #tpu.memory_space<vmem>>, vector<1x128x512xbf16>
    %27 = vector.shape_cast %26 : vector<1x128x512xbf16> to vector<128x512xbf16>
    %cst_25 = arith.constant dense<0.000000e+00> : vector<128x8xf32>
    %28 = tpu.matmul %27, %0, %cst_25 {dimension_numbers = #tpu.dot_dimension_numbers<[1], [0], [0], [1], [0, 0, 1, 1], [], []>} : vector<128x512xbf16>, vector<512x8xbf16>, vector<128x8xf32> -> vector<128x8xf32>
    %29 = arith.truncf %28 : vector<128x8xf32> to vector<128x8xbf16>
    %c3_26 = arith.constant 3 : index
    %c0_27 = arith.constant 0 : index
    %c0_28 = arith.constant 0 : index
    %30 = vector.load %arg3[%c3_26, %c0_27, %c0_28] : memref<9x8x128xbf16, #tpu.memory_space<vmem>>, vector<1x8x128xbf16>
    %31 = vector.shape_cast %30 : vector<1x8x128xbf16> to vector<8x128xbf16>
    %cst_29 = arith.constant dense<0.000000e+00> : vector<128x128xf32>
    %32 = tpu.matmul %29, %31, %cst_29 {dimension_numbers = #tpu.dot_dimension_numbers<[1], [0], [0], [1], [0, 0, 1, 1], [], []>} : vector<128x8xbf16>, vector<8x128xbf16>, vector<128x128xf32> -> vector<128x128xf32>
    %33 = arith.addf %25, %32 : vector<128x128xf32>
    %c4 = arith.constant 4 : index
    %c0_30 = arith.constant 0 : index
    %c0_31 = arith.constant 0 : index
    %34 = vector.load %arg2[%c4, %c0_30, %c0_31] : memref<9x128x512xbf16, #tpu.memory_space<vmem>>, vector<1x128x512xbf16>
    %35 = vector.shape_cast %34 : vector<1x128x512xbf16> to vector<128x512xbf16>
    %cst_32 = arith.constant dense<0.000000e+00> : vector<128x8xf32>
    %36 = tpu.matmul %35, %0, %cst_32 {dimension_numbers = #tpu.dot_dimension_numbers<[1], [0], [0], [1], [0, 0, 1, 1], [], []>} : vector<128x512xbf16>, vector<512x8xbf16>, vector<128x8xf32> -> vector<128x8xf32>
    %37 = arith.truncf %36 : vector<128x8xf32> to vector<128x8xbf16>
    %c4_33 = arith.constant 4 : index
    %c0_34 = arith.constant 0 : index
    %c0_35 = arith.constant 0 : index
    %38 = vector.load %arg3[%c4_33, %c0_34, %c0_35] : memref<9x8x128xbf16, #tpu.memory_space<vmem>>, vector<1x8x128xbf16>
    %39 = vector.shape_cast %38 : vector<1x8x128xbf16> to vector<8x128xbf16>
    %cst_36 = arith.constant dense<0.000000e+00> : vector<128x128xf32>
    %40 = tpu.matmul %37, %39, %cst_36 {dimension_numbers = #tpu.dot_dimension_numbers<[1], [0], [0], [1], [0, 0, 1, 1], [], []>} : vector<128x8xbf16>, vector<8x128xbf16>, vector<128x128xf32> -> vector<128x128xf32>
    %41 = arith.addf %33, %40 : vector<128x128xf32>
    %c5 = arith.constant 5 : index
    %c0_37 = arith.constant 0 : index
    %c0_38 = arith.constant 0 : index
    %42 = vector.load %arg2[%c5, %c0_37, %c0_38] : memref<9x128x512xbf16, #tpu.memory_space<vmem>>, vector<1x128x512xbf16>
    %43 = vector.shape_cast %42 : vector<1x128x512xbf16> to vector<128x512xbf16>
    %cst_39 = arith.constant dense<0.000000e+00> : vector<128x8xf32>
    %44 = tpu.matmul %43, %0, %cst_39 {dimension_numbers = #tpu.dot_dimension_numbers<[1], [0], [0], [1], [0, 0, 1, 1], [], []>} : vector<128x512xbf16>, vector<512x8xbf16>, vector<128x8xf32> -> vector<128x8xf32>
    %45 = arith.truncf %44 : vector<128x8xf32> to vector<128x8xbf16>
    %c5_40 = arith.constant 5 : index
    %c0_41 = arith.constant 0 : index
    %c0_42 = arith.constant 0 : index
    %46 = vector.load %arg3[%c5_40, %c0_41, %c0_42] : memref<9x8x128xbf16, #tpu.memory_space<vmem>>, vector<1x8x128xbf16>
    %47 = vector.shape_cast %46 : vector<1x8x128xbf16> to vector<8x128xbf16>
    %cst_43 = arith.constant dense<0.000000e+00> : vector<128x128xf32>
    %48 = tpu.matmul %45, %47, %cst_43 {dimension_numbers = #tpu.dot_dimension_numbers<[1], [0], [0], [1], [0, 0, 1, 1], [], []>} : vector<128x8xbf16>, vector<8x128xbf16>, vector<128x128xf32> -> vector<128x128xf32>
    %49 = arith.addf %41, %48 : vector<128x128xf32>
    %c6 = arith.constant 6 : index
    %c0_44 = arith.constant 0 : index
    %c0_45 = arith.constant 0 : index
    %50 = vector.load %arg2[%c6, %c0_44, %c0_45] : memref<9x128x512xbf16, #tpu.memory_space<vmem>>, vector<1x128x512xbf16>
    %51 = vector.shape_cast %50 : vector<1x128x512xbf16> to vector<128x512xbf16>
    %cst_46 = arith.constant dense<0.000000e+00> : vector<128x8xf32>
    %52 = tpu.matmul %51, %0, %cst_46 {dimension_numbers = #tpu.dot_dimension_numbers<[1], [0], [0], [1], [0, 0, 1, 1], [], []>} : vector<128x512xbf16>, vector<512x8xbf16>, vector<128x8xf32> -> vector<128x8xf32>
    %53 = arith.truncf %52 : vector<128x8xf32> to vector<128x8xbf16>
    %c6_47 = arith.constant 6 : index
    %c0_48 = arith.constant 0 : index
    %c0_49 = arith.constant 0 : index
    %54 = vector.load %arg3[%c6_47, %c0_48, %c0_49] : memref<9x8x128xbf16, #tpu.memory_space<vmem>>, vector<1x8x128xbf16>
    %55 = vector.shape_cast %54 : vector<1x8x128xbf16> to vector<8x128xbf16>
    %cst_50 = arith.constant dense<0.000000e+00> : vector<128x128xf32>
    %56 = tpu.matmul %53, %55, %cst_50 {dimension_numbers = #tpu.dot_dimension_numbers<[1], [0], [0], [1], [0, 0, 1, 1], [], []>} : vector<128x8xbf16>, vector<8x128xbf16>, vector<128x128xf32> -> vector<128x128xf32>
    %57 = arith.addf %49, %56 : vector<128x128xf32>
    %c7 = arith.constant 7 : index
    %c0_51 = arith.constant 0 : index
    %c0_52 = arith.constant 0 : index
    %58 = vector.load %arg2[%c7, %c0_51, %c0_52] : memref<9x128x512xbf16, #tpu.memory_space<vmem>>, vector<1x128x512xbf16>
    %59 = vector.shape_cast %58 : vector<1x128x512xbf16> to vector<128x512xbf16>
    %cst_53 = arith.constant dense<0.000000e+00> : vector<128x8xf32>
    %60 = tpu.matmul %59, %0, %cst_53 {dimension_numbers = #tpu.dot_dimension_numbers<[1], [0], [0], [1], [0, 0, 1, 1], [], []>} : vector<128x512xbf16>, vector<512x8xbf16>, vector<128x8xf32> -> vector<128x8xf32>
    %61 = arith.truncf %60 : vector<128x8xf32> to vector<128x8xbf16>
    %c7_54 = arith.constant 7 : index
    %c0_55 = arith.constant 0 : index
    %c0_56 = arith.constant 0 : index
    %62 = vector.load %arg3[%c7_54, %c0_55, %c0_56] : memref<9x8x128xbf16, #tpu.memory_space<vmem>>, vector<1x8x128xbf16>
    %63 = vector.shape_cast %62 : vector<1x8x128xbf16> to vector<8x128xbf16>
    %cst_57 = arith.constant dense<0.000000e+00> : vector<128x128xf32>
    %64 = tpu.matmul %61, %63, %cst_57 {dimension_numbers = #tpu.dot_dimension_numbers<[1], [0], [0], [1], [0, 0, 1, 1], [], []>} : vector<128x8xbf16>, vector<8x128xbf16>, vector<128x128xf32> -> vector<128x128xf32>
    %65 = arith.addf %57, %64 : vector<128x128xf32>
    %c8 = arith.constant 8 : index
    %c0_58 = arith.constant 0 : index
    %c0_59 = arith.constant 0 : index
    %66 = vector.load %arg2[%c8, %c0_58, %c0_59] : memref<9x128x512xbf16, #tpu.memory_space<vmem>>, vector<1x128x512xbf16>
    %67 = vector.shape_cast %66 : vector<1x128x512xbf16> to vector<128x512xbf16>
    %cst_60 = arith.constant dense<0.000000e+00> : vector<128x8xf32>
    %68 = tpu.matmul %67, %0, %cst_60 {dimension_numbers = #tpu.dot_dimension_numbers<[1], [0], [0], [1], [0, 0, 1, 1], [], []>} : vector<128x512xbf16>, vector<512x8xbf16>, vector<128x8xf32> -> vector<128x8xf32>
    %69 = arith.truncf %68 : vector<128x8xf32> to vector<128x8xbf16>
    %c8_61 = arith.constant 8 : index
    %c0_62 = arith.constant 0 : index
    %c0_63 = arith.constant 0 : index
    %70 = vector.load %arg3[%c8_61, %c0_62, %c0_63] : memref<9x8x128xbf16, #tpu.memory_space<vmem>>, vector<1x8x128xbf16>
    %71 = vector.shape_cast %70 : vector<1x8x128xbf16> to vector<8x128xbf16>
    %cst_64 = arith.constant dense<0.000000e+00> : vector<128x128xf32>
    %72 = tpu.matmul %69, %71, %cst_64 {dimension_numbers = #tpu.dot_dimension_numbers<[1], [0], [0], [1], [0, 0, 1, 1], [], []>} : vector<128x8xbf16>, vector<8x128xbf16>, vector<128x128xf32> -> vector<128x128xf32>
    %73 = arith.addf %65, %72 : vector<128x128xf32>
    %c0_65 = arith.constant 0 : index
    %c0_66 = arith.constant 0 : index
    %74 = vector.load %arg4[%c0_65, %c0_66] : memref<1x128xf32, #tpu.memory_space<vmem>>, vector<1x128xf32>
    %75 = vector.broadcast %74 : vector<1x128xf32> to vector<128x128xf32>
    %76 = arith.addf %73, %75 : vector<128x128xf32>
    %cst_67 = arith.constant 0.000000e+00 : f32
    %77 = vector.broadcast %cst_67 : f32 to vector<128x128xf32>
    %78 = arith.maximumf %76, %77 : vector<128x128xf32>
    %79 = arith.truncf %78 : vector<128x128xf32> to vector<128x128xbf16>
    %cst_68 = arith.constant 0.000000e+00 : f32
    %80 = vector.broadcast %cst_68 : f32 to vector<32x128xf32>
    %c0_69 = arith.constant 0 : index
    %c0_70 = arith.constant 0 : index
    %c0_71 = arith.constant 0 : index
    %81 = vector.load %arg5[%c0_69, %c0_70, %c0_71] : memref<9x32x128xbf16, #tpu.memory_space<vmem>>, vector<1x32x128xbf16>
    %82 = vector.shape_cast %81 : vector<1x32x128xbf16> to vector<32x128xbf16>
    %cst_72 = arith.constant dense<0.000000e+00> : vector<32x128xf32>
    %83 = tpu.matmul %82, %79, %cst_72 {dimension_numbers = #tpu.dot_dimension_numbers<[1], [0], [0], [1], [0, 0, 1, 1], [], []>} : vector<32x128xbf16>, vector<128x128xbf16>, vector<32x128xf32> -> vector<32x128xf32>
    %84 = arith.truncf %83 : vector<32x128xf32> to vector<32x128xbf16>
    %c0_73 = arith.constant 0 : index
    %c0_74 = arith.constant 0 : index
    %c0_75 = arith.constant 0 : index
    %85 = vector.load %arg6[%c0_73, %c0_74, %c0_75] : memref<9x128x128xbf16, #tpu.memory_space<vmem>>, vector<1x128x128xbf16>
    %86 = vector.shape_cast %85 : vector<1x128x128xbf16> to vector<128x128xbf16>
    %cst_76 = arith.constant dense<0.000000e+00> : vector<32x128xf32>
    %87 = tpu.matmul %84, %86, %cst_76 {dimension_numbers = #tpu.dot_dimension_numbers<[1], [0], [0], [1], [0, 0, 1, 1], [], []>} : vector<32x128xbf16>, vector<128x128xbf16>, vector<32x128xf32> -> vector<32x128xf32>
    %88 = arith.addf %80, %87 : vector<32x128xf32>
    %c1_77 = arith.constant 1 : index
    %c0_78 = arith.constant 0 : index
    %c0_79 = arith.constant 0 : index
    %89 = vector.load %arg5[%c1_77, %c0_78, %c0_79] : memref<9x32x128xbf16, #tpu.memory_space<vmem>>, vector<1x32x128xbf16>
    %90 = vector.shape_cast %89 : vector<1x32x128xbf16> to vector<32x128xbf16>
    %cst_80 = arith.constant dense<0.000000e+00> : vector<32x128xf32>
    %91 = tpu.matmul %90, %79, %cst_80 {dimension_numbers = #tpu.dot_dimension_numbers<[1], [0], [0], [1], [0, 0, 1, 1], [], []>} : vector<32x128xbf16>, vector<128x128xbf16>, vector<32x128xf32> -> vector<32x128xf32>
    %92 = arith.truncf %91 : vector<32x128xf32> to vector<32x128xbf16>
    %c1_81 = arith.constant 1 : index
    %c0_82 = arith.constant 0 : index
    %c0_83 = arith.constant 0 : index
    %93 = vector.load %arg6[%c1_81, %c0_82, %c0_83] : memref<9x128x128xbf16, #tpu.memory_space<vmem>>, vector<1x128x128xbf16>
    %94 = vector.shape_cast %93 : vector<1x128x128xbf16> to vector<128x128xbf16>
    %cst_84 = arith.constant dense<0.000000e+00> : vector<32x128xf32>
    %95 = tpu.matmul %92, %94, %cst_84 {dimension_numbers = #tpu.dot_dimension_numbers<[1], [0], [0], [1], [0, 0, 1, 1], [], []>} : vector<32x128xbf16>, vector<128x128xbf16>, vector<32x128xf32> -> vector<32x128xf32>
    %96 = arith.addf %88, %95 : vector<32x128xf32>
    %c2_85 = arith.constant 2 : index
    %c0_86 = arith.constant 0 : index
    %c0_87 = arith.constant 0 : index
    %97 = vector.load %arg5[%c2_85, %c0_86, %c0_87] : memref<9x32x128xbf16, #tpu.memory_space<vmem>>, vector<1x32x128xbf16>
    %98 = vector.shape_cast %97 : vector<1x32x128xbf16> to vector<32x128xbf16>
    %cst_88 = arith.constant dense<0.000000e+00> : vector<32x128xf32>
    %99 = tpu.matmul %98, %79, %cst_88 {dimension_numbers = #tpu.dot_dimension_numbers<[1], [0], [0], [1], [0, 0, 1, 1], [], []>} : vector<32x128xbf16>, vector<128x128xbf16>, vector<32x128xf32> -> vector<32x128xf32>
    %100 = arith.truncf %99 : vector<32x128xf32> to vector<32x128xbf16>
    %c2_89 = arith.constant 2 : index
    %c0_90 = arith.constant 0 : index
    %c0_91 = arith.constant 0 : index
    %101 = vector.load %arg6[%c2_89, %c0_90, %c0_91] : memref<9x128x128xbf16, #tpu.memory_space<vmem>>, vector<1x128x128xbf16>
    %102 = vector.shape_cast %101 : vector<1x128x128xbf16> to vector<128x128xbf16>
    %cst_92 = arith.constant dense<0.000000e+00> : vector<32x128xf32>
    %103 = tpu.matmul %100, %102, %cst_92 {dimension_numbers = #tpu.dot_dimension_numbers<[1], [0], [0], [1], [0, 0, 1, 1], [], []>} : vector<32x128xbf16>, vector<128x128xbf16>, vector<32x128xf32> -> vector<32x128xf32>
    %104 = arith.addf %96, %103 : vector<32x128xf32>
    %c3_93 = arith.constant 3 : index
    %c0_94 = arith.constant 0 : index
    %c0_95 = arith.constant 0 : index
    %105 = vector.load %arg5[%c3_93, %c0_94, %c0_95] : memref<9x32x128xbf16, #tpu.memory_space<vmem>>, vector<1x32x128xbf16>
    %106 = vector.shape_cast %105 : vector<1x32x128xbf16> to vector<32x128xbf16>
    %cst_96 = arith.constant dense<0.000000e+00> : vector<32x128xf32>
    %107 = tpu.matmul %106, %79, %cst_96 {dimension_numbers = #tpu.dot_dimension_numbers<[1], [0], [0], [1], [0, 0, 1, 1], [], []>} : vector<32x128xbf16>, vector<128x128xbf16>, vector<32x128xf32> -> vector<32x128xf32>
    %108 = arith.truncf %107 : vector<32x128xf32> to vector<32x128xbf16>
    %c3_97 = arith.constant 3 : index
    %c0_98 = arith.constant 0 : index
    %c0_99 = arith.constant 0 : index
    %109 = vector.load %arg6[%c3_97, %c0_98, %c0_99] : memref<9x128x128xbf16, #tpu.memory_space<vmem>>, vector<1x128x128xbf16>
    %110 = vector.shape_cast %109 : vector<1x128x128xbf16> to vector<128x128xbf16>
    %cst_100 = arith.constant dense<0.000000e+00> : vector<32x128xf32>
    %111 = tpu.matmul %108, %110, %cst_100 {dimension_numbers = #tpu.dot_dimension_numbers<[1], [0], [0], [1], [0, 0, 1, 1], [], []>} : vector<32x128xbf16>, vector<128x128xbf16>, vector<32x128xf32> -> vector<32x128xf32>
    %112 = arith.addf %104, %111 : vector<32x128xf32>
    %c4_101 = arith.constant 4 : index
    %c0_102 = arith.constant 0 : index
    %c0_103 = arith.constant 0 : index
    %113 = vector.load %arg5[%c4_101, %c0_102, %c0_103] : memref<9x32x128xbf16, #tpu.memory_space<vmem>>, vector<1x32x128xbf16>
    %114 = vector.shape_cast %113 : vector<1x32x128xbf16> to vector<32x128xbf16>
    %cst_104 = arith.constant dense<0.000000e+00> : vector<32x128xf32>
    %115 = tpu.matmul %114, %79, %cst_104 {dimension_numbers = #tpu.dot_dimension_numbers<[1], [0], [0], [1], [0, 0, 1, 1], [], []>} : vector<32x128xbf16>, vector<128x128xbf16>, vector<32x128xf32> -> vector<32x128xf32>
    %116 = arith.truncf %115 : vector<32x128xf32> to vector<32x128xbf16>
    %c4_105 = arith.constant 4 : index
    %c0_106 = arith.constant 0 : index
    %c0_107 = arith.constant 0 : index
    %117 = vector.load %arg6[%c4_105, %c0_106, %c0_107] : memref<9x128x128xbf16, #tpu.memory_space<vmem>>, vector<1x128x128xbf16>
    %118 = vector.shape_cast %117 : vector<1x128x128xbf16> to vector<128x128xbf16>
    %cst_108 = arith.constant dense<0.000000e+00> : vector<32x128xf32>
    %119 = tpu.matmul %116, %118, %cst_108 {dimension_numbers = #tpu.dot_dimension_numbers<[1], [0], [0], [1], [0, 0, 1, 1], [], []>} : vector<32x128xbf16>, vector<128x128xbf16>, vector<32x128xf32> -> vector<32x128xf32>
    %120 = arith.addf %112, %119 : vector<32x128xf32>
    %c5_109 = arith.constant 5 : index
    %c0_110 = arith.constant 0 : index
    %c0_111 = arith.constant 0 : index
    %121 = vector.load %arg5[%c5_109, %c0_110, %c0_111] : memref<9x32x128xbf16, #tpu.memory_space<vmem>>, vector<1x32x128xbf16>
    %122 = vector.shape_cast %121 : vector<1x32x128xbf16> to vector<32x128xbf16>
    %cst_112 = arith.constant dense<0.000000e+00> : vector<32x128xf32>
    %123 = tpu.matmul %122, %79, %cst_112 {dimension_numbers = #tpu.dot_dimension_numbers<[1], [0], [0], [1], [0, 0, 1, 1], [], []>} : vector<32x128xbf16>, vector<128x128xbf16>, vector<32x128xf32> -> vector<32x128xf32>
    %124 = arith.truncf %123 : vector<32x128xf32> to vector<32x128xbf16>
    %c5_113 = arith.constant 5 : index
    %c0_114 = arith.constant 0 : index
    %c0_115 = arith.constant 0 : index
    %125 = vector.load %arg6[%c5_113, %c0_114, %c0_115] : memref<9x128x128xbf16, #tpu.memory_space<vmem>>, vector<1x128x128xbf16>
    %126 = vector.shape_cast %125 : vector<1x128x128xbf16> to vector<128x128xbf16>
    %cst_116 = arith.constant dense<0.000000e+00> : vector<32x128xf32>
    %127 = tpu.matmul %124, %126, %cst_116 {dimension_numbers = #tpu.dot_dimension_numbers<[1], [0], [0], [1], [0, 0, 1, 1], [], []>} : vector<32x128xbf16>, vector<128x128xbf16>, vector<32x128xf32> -> vector<32x128xf32>
    %128 = arith.addf %120, %127 : vector<32x128xf32>
    %c6_117 = arith.constant 6 : index
    %c0_118 = arith.constant 0 : index
    %c0_119 = arith.constant 0 : index
    %129 = vector.load %arg5[%c6_117, %c0_118, %c0_119] : memref<9x32x128xbf16, #tpu.memory_space<vmem>>, vector<1x32x128xbf16>
    %130 = vector.shape_cast %129 : vector<1x32x128xbf16> to vector<32x128xbf16>
    %cst_120 = arith.constant dense<0.000000e+00> : vector<32x128xf32>
    %131 = tpu.matmul %130, %79, %cst_120 {dimension_numbers = #tpu.dot_dimension_numbers<[1], [0], [0], [1], [0, 0, 1, 1], [], []>} : vector<32x128xbf16>, vector<128x128xbf16>, vector<32x128xf32> -> vector<32x128xf32>
    %132 = arith.truncf %131 : vector<32x128xf32> to vector<32x128xbf16>
    %c6_121 = arith.constant 6 : index
    %c0_122 = arith.constant 0 : index
    %c0_123 = arith.constant 0 : index
    %133 = vector.load %arg6[%c6_121, %c0_122, %c0_123] : memref<9x128x128xbf16, #tpu.memory_space<vmem>>, vector<1x128x128xbf16>
    %134 = vector.shape_cast %133 : vector<1x128x128xbf16> to vector<128x128xbf16>
    %cst_124 = arith.constant dense<0.000000e+00> : vector<32x128xf32>
    %135 = tpu.matmul %132, %134, %cst_124 {dimension_numbers = #tpu.dot_dimension_numbers<[1], [0], [0], [1], [0, 0, 1, 1], [], []>} : vector<32x128xbf16>, vector<128x128xbf16>, vector<32x128xf32> -> vector<32x128xf32>
    %136 = arith.addf %128, %135 : vector<32x128xf32>
    %c7_125 = arith.constant 7 : index
    %c0_126 = arith.constant 0 : index
    %c0_127 = arith.constant 0 : index
    %137 = vector.load %arg5[%c7_125, %c0_126, %c0_127] : memref<9x32x128xbf16, #tpu.memory_space<vmem>>, vector<1x32x128xbf16>
    %138 = vector.shape_cast %137 : vector<1x32x128xbf16> to vector<32x128xbf16>
    %cst_128 = arith.constant dense<0.000000e+00> : vector<32x128xf32>
    %139 = tpu.matmul %138, %79, %cst_128 {dimension_numbers = #tpu.dot_dimension_numbers<[1], [0], [0], [1], [0, 0, 1, 1], [], []>} : vector<32x128xbf16>, vector<128x128xbf16>, vector<32x128xf32> -> vector<32x128xf32>
    %140 = arith.truncf %139 : vector<32x128xf32> to vector<32x128xbf16>
    %c7_129 = arith.constant 7 : index
    %c0_130 = arith.constant 0 : index
    %c0_131 = arith.constant 0 : index
    %141 = vector.load %arg6[%c7_129, %c0_130, %c0_131] : memref<9x128x128xbf16, #tpu.memory_space<vmem>>, vector<1x128x128xbf16>
    %142 = vector.shape_cast %141 : vector<1x128x128xbf16> to vector<128x128xbf16>
    %cst_132 = arith.constant dense<0.000000e+00> : vector<32x128xf32>
    %143 = tpu.matmul %140, %142, %cst_132 {dimension_numbers = #tpu.dot_dimension_numbers<[1], [0], [0], [1], [0, 0, 1, 1], [], []>} : vector<32x128xbf16>, vector<128x128xbf16>, vector<32x128xf32> -> vector<32x128xf32>
    %144 = arith.addf %136, %143 : vector<32x128xf32>
    %c8_133 = arith.constant 8 : index
    %c0_134 = arith.constant 0 : index
    %c0_135 = arith.constant 0 : index
    %145 = vector.load %arg5[%c8_133, %c0_134, %c0_135] : memref<9x32x128xbf16, #tpu.memory_space<vmem>>, vector<1x32x128xbf16>
    %146 = vector.shape_cast %145 : vector<1x32x128xbf16> to vector<32x128xbf16>
    %cst_136 = arith.constant dense<0.000000e+00> : vector<32x128xf32>
    %147 = tpu.matmul %146, %79, %cst_136 {dimension_numbers = #tpu.dot_dimension_numbers<[1], [0], [0], [1], [0, 0, 1, 1], [], []>} : vector<32x128xbf16>, vector<128x128xbf16>, vector<32x128xf32> -> vector<32x128xf32>
    %148 = arith.truncf %147 : vector<32x128xf32> to vector<32x128xbf16>
    %c8_137 = arith.constant 8 : index
    %c0_138 = arith.constant 0 : index
    %c0_139 = arith.constant 0 : index
    %149 = vector.load %arg6[%c8_137, %c0_138, %c0_139] : memref<9x128x128xbf16, #tpu.memory_space<vmem>>, vector<1x128x128xbf16>
    %150 = vector.shape_cast %149 : vector<1x128x128xbf16> to vector<128x128xbf16>
    %cst_140 = arith.constant dense<0.000000e+00> : vector<32x128xf32>
    %151 = tpu.matmul %148, %150, %cst_140 {dimension_numbers = #tpu.dot_dimension_numbers<[1], [0], [0], [1], [0, 0, 1, 1], [], []>} : vector<32x128xbf16>, vector<128x128xbf16>, vector<32x128xf32> -> vector<32x128xf32>
    %152 = arith.addf %144, %151 : vector<32x128xf32>
    %c0_141 = arith.constant 0 : index
    %c0_142 = arith.constant 0 : index
    %153 = vector.load %arg7[%c0_141, %c0_142] : memref<1x128xf32, #tpu.memory_space<vmem>>, vector<1x128xf32>
    %154 = vector.broadcast %153 : vector<1x128xf32> to vector<32x128xf32>
    %155 = arith.addf %152, %154 : vector<32x128xf32>
    %cst_143 = arith.constant 0.000000e+00 : f32
    %156 = vector.broadcast %cst_143 : f32 to vector<32x128xf32>
    %157 = arith.maximumf %155, %156 : vector<32x128xf32>
    %c0_144 = arith.constant 0 : index
    %c0_145 = arith.constant 0 : index
    %158 = vector.load %arg8[%c0_144, %c0_145] : memref<8x32xf32, #tpu.memory_space<vmem>>, vector<8x32xf32>
    %cst_146 = arith.constant dense<0.000000e+00> : vector<8x128xf32>
    %159 = tpu.matmul %158, %157, %cst_146 {dimension_numbers = #tpu.dot_dimension_numbers<[1], [0], [0], [1], [0, 0, 1, 1], [], []>} : vector<8x32xf32>, vector<32x128xf32>, vector<8x128xf32> -> vector<8x128xf32>
    %cst_147 = arith.constant 6.250000e-02 : f32
    %160 = vector.broadcast %cst_147 : f32 to vector<8x128xf32>
    %161 = arith.mulf %159, %160 : vector<8x128xf32>
    %c0_148 = arith.constant 0 : index
    %c0_149 = arith.constant 0 : index
    %162 = vector.load %arg9[%c0_148, %c0_149] : memref<32x8xf32, #tpu.memory_space<vmem>>, vector<32x8xf32>
    %cst_150 = arith.constant dense<0.000000e+00> : vector<32x128xf32>
    %163 = tpu.matmul %162, %161, %cst_150 {dimension_numbers = #tpu.dot_dimension_numbers<[1], [0], [0], [1], [0, 0, 1, 1], [], []>} : vector<32x8xf32>, vector<8x128xf32>, vector<32x128xf32> -> vector<32x128xf32>
    %164 = arith.subf %157, %163 : vector<32x128xf32>
    %c0_151 = arith.constant 0 : index
    %c0_152 = arith.constant 0 : index
    %165 = vector.load %arg8[%c0_151, %c0_152] : memref<8x32xf32, #tpu.memory_space<vmem>>, vector<8x32xf32>
    %166 = arith.mulf %164, %164 : vector<32x128xf32>
    %cst_153 = arith.constant dense<0.000000e+00> : vector<8x128xf32>
    %167 = tpu.matmul %165, %166, %cst_153 {dimension_numbers = #tpu.dot_dimension_numbers<[1], [0], [0], [1], [0, 0, 1, 1], [], []>} : vector<8x32xf32>, vector<32x128xf32>, vector<8x128xf32> -> vector<8x128xf32>
    %cst_154 = arith.constant 0.0666666701 : f32
    %168 = vector.broadcast %cst_154 : f32 to vector<8x128xf32>
    %169 = arith.mulf %167, %168 : vector<8x128xf32>
    %170 = math.sqrt %169 : vector<8x128xf32>
    %171 = vector.extract_strided_slice %161 {offsets = [0, 0], sizes = [2, 128], strides = [1, 1]} : vector<8x128xf32> to vector<2x128xf32>
    %c0_155 = arith.constant 0 : index
    %c0_156 = arith.constant 0 : index
    %172 = vector.load %arg10[%c0_155, %c0_156] : memref<2x128xf32, #tpu.memory_space<vmem>>, vector<2x128xf32>
    tpu.vector_store %arg10[%c0_155, %c0_156], %171 {strides = array<i32>} : memref<2x128xf32, #tpu.memory_space<vmem>>, vector<2x128xf32>,
    %173 = vector.extract_strided_slice %170 {offsets = [0, 0], sizes = [2, 128], strides = [1, 1]} : vector<8x128xf32> to vector<2x128xf32>
    %c0_157 = arith.constant 0 : index
    %c0_158 = arith.constant 0 : index
    %174 = vector.load %arg11[%c0_157, %c0_158] : memref<2x128xf32, #tpu.memory_space<vmem>>, vector<2x128xf32>
    tpu.vector_store %arg11[%c0_157, %c0_158], %173 {strides = array<i32>} : memref<2x128xf32, #tpu.memory_space<vmem>>, vector<2x128xf32>,
    return
  }
  func.func @transform_0(%arg0: i32) -> (i32, i32) {
    %c0_i32 = arith.constant 0 : i32
    %c0_i32_0 = arith.constant 0 : i32
    return %arg0, %c0_i32 : i32, i32
  }
  func.func @transform_1(%arg0: i32) -> (i32, i32, i32) {
    %c0_i32 = arith.constant 0 : i32
    %c0_i32_0 = arith.constant 0 : i32
    %c0_i32_1 = arith.constant 0 : i32
    %c0_i32_2 = arith.constant 0 : i32
    return %c0_i32, %c0_i32_0, %c0_i32_1 : i32, i32, i32
  }
  func.func @transform_2(%arg0: i32) -> (i32, i32, i32) {
    %c0_i32 = arith.constant 0 : i32
    %c0_i32_0 = arith.constant 0 : i32
    %c0_i32_1 = arith.constant 0 : i32
    %c0_i32_2 = arith.constant 0 : i32
    return %c0_i32, %c0_i32_0, %c0_i32_1 : i32, i32, i32
  }
  func.func @transform_3(%arg0: i32) -> (i32, i32) {
    %c0_i32 = arith.constant 0 : i32
    %c0_i32_0 = arith.constant 0 : i32
    %c0_i32_1 = arith.constant 0 : i32
    return %c0_i32, %c0_i32_0 : i32, i32
  }
  func.func @transform_4(%arg0: i32) -> (i32, i32, i32) {
    %c0_i32 = arith.constant 0 : i32
    %c0_i32_0 = arith.constant 0 : i32
    %c0_i32_1 = arith.constant 0 : i32
    %c0_i32_2 = arith.constant 0 : i32
    return %c0_i32, %c0_i32_0, %c0_i32_1 : i32, i32, i32
  }
  func.func @transform_5(%arg0: i32) -> (i32, i32, i32) {
    %c0_i32 = arith.constant 0 : i32
    %c0_i32_0 = arith.constant 0 : i32
    %c0_i32_1 = arith.constant 0 : i32
    %c0_i32_2 = arith.constant 0 : i32
    return %c0_i32, %c0_i32_0, %c0_i32_1 : i32, i32, i32
  }
  func.func @transform_6(%arg0: i32) -> (i32, i32) {
    %c0_i32 = arith.constant 0 : i32
    %c0_i32_0 = arith.constant 0 : i32
    %c0_i32_1 = arith.constant 0 : i32
    return %c0_i32, %c0_i32_0 : i32, i32
  }
  func.func @transform_7(%arg0: i32) -> (i32, i32) {
    %c0_i32 = arith.constant 0 : i32
    %c0_i32_0 = arith.constant 0 : i32
    %c0_i32_1 = arith.constant 0 : i32
    return %c0_i32, %c0_i32_0 : i32, i32
  }
  func.func @transform_8(%arg0: i32) -> (i32, i32) {
    %c0_i32 = arith.constant 0 : i32
    %c0_i32_0 = arith.constant 0 : i32
    %c0_i32_1 = arith.constant 0 : i32
    return %c0_i32, %c0_i32_0 : i32, i32
  }
  func.func @transform_9(%arg0: i32) -> (i32, i32) {
    %c0_i32 = arith.constant 0 : i32
    %c0_i32_0 = arith.constant 0 : i32
    return %arg0, %c0_i32 : i32, i32
  }
  func.func @transform_10(%arg0: i32) -> (i32, i32) {
    %c0_i32 = arith.constant 0 : i32
    %c0_i32_0 = arith.constant 0 : i32
    return %arg0, %c0_i32 : i32, i32
  }
}

</mosaic_0001>

<bundles_post_ra>
// kernel: _fused_forward.1
= control target key start
LH: loop header
LB: loop body
LE: loop exit
PB: predicated region body
PF: predicated region fallthrough
CT: control target
= control target key end

     0   :  { %16 = vsyncpa [#allocation3], 0  ;;  %s12665_s0 = inlined_call_operand.vmem [shape: bf16[512,8], index: 0, kind: input, shape index: {}]   ;;  %s12666_s1 = inlined_call_operand.hbm [shape: bf16[9,128,512], index: 1, kind: input, shape index: {}]   ;;  %s12667_s2 = inlined_call_operand.hbm [shape: bf16[9,8,128], index: 2, kind: input, shape index: {}]   ;;  %s12668_s3 = inlined_call_operand.hbm [shape: f32[1,128], index: 3, kind: input, shape index: {}]   ;;  %s12669_s4 = inlined_call_operand.hbm [shape: bf16[9,32,128], index: 4, kind: input, shape index: {}]   ;;  %s12670_s5 = inlined_call_operand.hbm [shape: bf16[9,128,128], index: 5, kind: input, shape index: {}]   ;;  %s12671_s6 = inlined_call_operand.hbm [shape: f32[1,128], index: 6, kind: input, shape index: {}]   ;;  %s12672_s7 = inlined_call_operand.hbm [shape: f32[8,32], index: 7, kind: input, shape index: {}]   ;;  %s12673_s8 = inlined_call_operand.vmem [shape: f32[32,8], index: 8, kind: input, shape index: {}]   ;;  %s12674_s9 = inlined_call_operand.hbm [shape: f32[2,128], index: 9, kind: output, shape index: {0}]   ;;  %s12675_s10 = inlined_call_operand.hbm [shape: f32[2,128], index: 10, kind: output, shape index: {1}]  }
   0x1   :  { %17 = vsyncpa [#allocation6], 0 }
   0x2   :  { %18 = vsyncpa [#allocation9], 0 }
   0x3   :  { %19 = vsyncpa [#allocation12], 0 }
   0x4   :  { %20 = vsyncpa [#allocation4], 0 }
   0x5   :  { %21 = vsyncpa [#allocation16], 0  ;;  %s10560_s13 = smov [#allocation5]  }
   0x6   :  { %s41_s14 = sshll.u32 %s10560_s13, 4  ;;  %s42_s14 = int_to_ptr.vmem [resolvable:$true] %s41_s14 }
   0x7   :  { %s10376_s15 = scalar_lea.vmem %s42_s14, 576  ;;  %p10381_p1 = scmp.lt.s32.totalorder %s42_s14, %s42_s14 }
   0x8   :  { %p10377_p0 = scmp.ne.s32.totalorder %s42_s14, %s10376_s15  ;;  %p10382_p2 = scmp.lt.s32.totalorder %s10376_s15, %s10376_s15 }
   0xa   :  { %p10383_p3 = por %p10382_p2, %p10381_p1 }
   0xc   :  { %p10384_p4 = pnand %p10383_p3, %p10377_p0 }
   0xe   :  { %10387 = shalt.err (!%p10384_p4)
}
   0xf   :  { %s10561_s16 = smov 64   ;;  %s10562_s17 = smov 4  }
  0x10   :  { %47 = dma.hbm_to_vmem [thread:$0]  %s12667_s2, 576, %s42_s14, [#allocation6], %s10561_s16, %s10561_s16, %s10562_s17  }
  0x11   :  { %s10563_s20 = smov [#allocation8]   ;;  %s10564_s22 = smov [#allocation11]  }
  0x12   :  { %s63_s21 = sshll.u32 %s10563_s20, 4  ;;  %s88_s23 = sshll.u32 %s10564_s22, 4  ;;  %s64_s21 = int_to_ptr.vmem [resolvable:$true] %s63_s21  ;;  %s89_s23 = int_to_ptr.vmem [resolvable:$true] %s88_s23 }
  0x13   :  { %s10396_s24 = scalar_lea.vmem %s64_s21, 2304  ;;  %p10401_p6 = scmp.lt.s32.totalorder %s64_s21, %s64_s21 }
  0x14   :  { %p10397_p5 = scmp.ne.s32.totalorder %s64_s21, %s10396_s24  ;;  %p10402_p7 = scmp.lt.s32.totalorder %s10396_s24, %s10396_s24 }
  0x16   :  { %p10403_p8 = por %p10402_p7, %p10401_p6 }
  0x18   :  { %p10404_p9 = pnand %p10403_p8, %p10397_p5 }
  0x1a   :  { %10407 = shalt.err (!%p10404_p9)
}
  0x1b   :  { %69 = dma.hbm_to_vmem [thread:$0]  %s12669_s4, 2304, %s64_s21, [#allocation9], %s10561_s16, %s10561_s16, %s10562_s17  }
  0x1c   :  { %s10416_s2 = scalar_lea.vmem %s89_s23, 16  ;;  %s10420_s27 = scalar_lea.vmem %s89_s23, 32 }
  0x1d   :  { %p10417_p10 = scmp.ne.s32.totalorder %s89_s23, %s10416_s2  ;;  %p10421_p11 = scmp.lt.s32.totalorder %s89_s23, %s89_s23 }
  0x1e   :  { %p10422_p12 = scmp.lt.s32.totalorder %s10420_s27, %s10416_s2 }
  0x20   :  { %p10423_p13 = por %p10422_p12, %p10421_p11 }
  0x22   :  { %p10424_p0 = pnand %p10423_p13, %p10417_p10 }
  0x24   :  { %10427 = shalt.err (!%p10424_p0)
}
  0x25   :  { %91 = dma.hbm_to_vmem [thread:$0]  %s12671_s6, 16, %s89_s23, [#allocation12]  }
  0x26   :  { %s10565_s30 = smov [#allocation2]  }
  0x27   :  { %s29_s11 = sshll.u32 %s10565_s30, 4  ;;  %s30_s11 = int_to_ptr.vmem [resolvable:$true] %s29_s11 }
  0x28   :  { %s10436_s12 = scalar_lea.vmem %s30_s11, 36864  ;;  %p10441_p2 = scmp.lt.s32.totalorder %s30_s11, %s30_s11 }
  0x29   :  { %p10437_p1 = scmp.ne.s32.totalorder %s30_s11, %s10436_s12  ;;  %p10442_p3 = scmp.lt.s32.totalorder %s10436_s12, %s10436_s12 }
  0x2b   :  { %p10443_p4 = por %p10442_p3, %p10441_p2 }
  0x2d   :  { %p10444_p5 = pnand %p10443_p4, %p10437_p1 }
  0x2f   :  { %10447 = shalt.err (!%p10444_p5)
}
  0x30   :  { %s10566_s4 = smov 256   ;;  %s10567_s13 = smov 16  }
  0x31   :  { %35 = dma.hbm_to_vmem [thread:$0]  %s12666_s1, 36864, %s30_s11, [#allocation3], %s10566_s4, %s10566_s4, %s10567_s13  }
  0x32   :  { %s10568_s18 = smov [#allocation7]   ;;  %s10569_s20 = smov [#allocation10]  }
  0x33   :  { %s54_s19 = sshll.u32 %s10568_s18, 4  ;;  %s75_s6 = sshll.u32 %s10569_s20, 4  ;;  %s55_s19 = int_to_ptr.vmem [resolvable:$true] %s54_s19  ;;  %s76_s6 = int_to_ptr.vmem [resolvable:$true] %s75_s6 }
  0x34   :  { %s10456_s21 = scalar_lea.vmem %s55_s19, 16  ;;  %s10460_s22 = scalar_lea.vmem %s55_s19, 32 }
  0x35   :  { %p10457_p6 = scmp.ne.s32.totalorder %s55_s19, %s10456_s21  ;;  %p10461_p7 = scmp.lt.s32.totalorder %s55_s19, %s55_s19 }
  0x36   :  { %p10462_p8 = scmp.lt.s32.totalorder %s10460_s22, %s10456_s21 }
  0x38   :  { %p10463_p9 = por %p10462_p8, %p10461_p7 }
  0x3a   :  { %p10464_p10 = pnand %p10463_p9, %p10457_p6 }
  0x3c   :  { %10467 = shalt.err (!%p10464_p10)
}
  0x3d   :  { %57 = dma.hbm_to_vmem [thread:$0]  %s12668_s3, 16, %s55_s19, [#allocation6]  }
  0x3e   :  { %s10476_s25 = scalar_lea.vmem %s76_s6, 9216  ;;  %p10481_p12 = scmp.lt.s32.totalorder %s76_s6, %s76_s6 }
  0x3f   :  { %p10477_p11 = scmp.ne.s32.totalorder %s76_s6, %s10476_s25  ;;  %p10482_p13 = scmp.lt.s32.totalorder %s10476_s25, %s10476_s25 }
  0x41   :  { %p10483_p0 = por %p10482_p13, %p10481_p12 }
  0x43   :  { %p10484_p1 = pnand %p10483_p0, %p10477_p11 }
  0x45   :  { %10487 = shalt.err (!%p10484_p1)
}
  0x46   :  { %81 = dma.hbm_to_vmem [thread:$0]  %s12670_s5, 9216, %s76_s6, [#allocation9], %s10561_s16, %s10561_s16, %s10562_s17  }
  0x47   :  { %s10570_s2 = smov [#allocation13]  }
  0x48   :  { %s98_s27 = sshll.u32 %s10570_s2, 4  ;;  %s99_s27 = int_to_ptr.vmem [resolvable:$true] %s98_s27 }
  0x49   :  { %s10496_s28 = scalar_lea.vmem %s99_s27, 128  ;;  %p10501_p3 = scmp.lt.s32.totalorder %s99_s27, %s99_s27 }
  0x4a   :  { %p10497_p2 = scmp.ne.s32.totalorder %s99_s27, %s10496_s28  ;;  %p10502_p4 = scmp.lt.s32.totalorder %s10496_s28, %s10496_s28 }
  0x4c   :  { %p10503_p5 = por %p10502_p4, %p10501_p3 }
  0x4e   :  { %p10504_p6 = pnand %p10503_p5, %p10497_p2 }
  0x50   :  { %10507 = shalt.err (!%p10504_p6)
}
  0x51   :  { %101 = dma.hbm_to_vmem [thread:$0]  %s12672_s7, 128, %s99_s27, [#allocation12]  }
  0x52   :  { %10548 = dma.done.wait [#allocation3], 36864  }
  0x53   :  { %10549 = vsyncadd [#allocation3], 4294930432 }
  0x54   :  { %10550 = dma.done.wait [#allocation6], 592  }
  0x55   :  { %10551 = vsyncadd [#allocation6], 4294966704 }
  0x56   :  { %10552 = dma.done.wait [#allocation9], 11520  }
  0x57   :  { %10553 = vsyncadd [#allocation9], 4294955776 }
  0x58   :  { %10554 = dma.done.wait [#allocation12], 144  }
  0x59   :  { %10555 = vsyncadd [#allocation12], 4294967152  ;;  %v10663_v0 = vld [vmem:[%s12665_s0 + $0x78] sm:$0xff]   ;;  %v10686_v4 = vld [vmem:[%s12665_s0 + $0x70] sm:$0xff]   ;;  %vm1199_vm0 = vcmask 1043456   ;;  %vm1174_vm1 = vcmask 64512  }
  0x5a   :  { %v10668_v1 = vld [vmem:[%s12665_s0 + $0xf8] sm:$0xff]   ;;  %7696 = vmatprep.subr.bf16.mxu0 %v10663_v0  ;;  %v10692_v5 = vld [vmem:[%s12665_s0 + $0xf0] sm:$0xff]   ;;  %v10710_v8 = vld [vmem:[%s12665_s0 + $0x68] sm:$0xff]   ;;  %vm10572_vm2 = vmmov 0   ;;  %vm6910_vm3 = vcmask 261120  }
  0x5b   :  { %v10674_v2 = vld [vmem:[%s12665_s0 + $0x38] sm:$0xff]   ;;  %7760 = vmatprep.subr.bf16.mxu1 %v10668_v1  ;;  %v10698_v6 = vld [vmem:[%s12665_s0 + $0x30] sm:$0xff]   ;;  %v10716_v9 = vld [vmem:[%s12665_s0 + $0xe8] sm:$0xff]  }
  0x5c   :  { %v10680_v3 = vld [vmem:[%s12665_s0 + $0xb8] sm:$0xff]   ;;  %7697 = vmatpush3.bf16.msra.mxu0 %v10674_v2  ;;  %v10704_v7 = vld [vmem:[%s12665_s0 + $0xb0] sm:$0xff]   ;;  %v10722_v10 = vld [vmem:[%s12665_s0 + $0x28] sm:$0xff]  }
  0x5d   :  { %7761 = vmatpush3.bf16.msra.mxu1 %v10680_v3  ;;  %7698 = vmatprep.subr.bf16.mxu0 %v10686_v4  ;;  %v10728_v11 = vld [vmem:[%s12665_s0 + $0xa8] sm:$0xff]   ;;  %v10734_v12 = vld [vmem:[%s12665_s0 + $0x60] sm:$0xff]   ;;  %v10758_v16 = vld [vmem:[%s12665_s0 + $0x58] sm:$0xff]  }
  0x5e   :  { %7762 = vmatprep.subr.bf16.mxu1 %v10692_v5  ;;  %v10740_v13 = vld [vmem:[%s12665_s0 + $0xe0] sm:$0xff]   ;;  %v10764_v17 = vld [vmem:[%s12665_s0 + $0xd8] sm:$0xff]   ;;  %v10782_v20 = vld [vmem:[%s12665_s0 + $0x50] sm:$0xff]  }
  0x5f   :  { %v10746_v14 = vld [vmem:[%s12665_s0 + $0x20] sm:$0xff]   ;;  %v10770_v18 = vld [vmem:[%s12665_s0 + $0x18] sm:$0xff]   ;;  %v10788_v21 = vld [vmem:[%s12665_s0 + $0xd0] sm:$0xff]  }
  0x60   :  { %7699 = vmatpush3.bf16.msra.mxu0 %v10698_v6  ;;  %v10752_v15 = vld [vmem:[%s12665_s0 + $0xa0] sm:$0xff]   ;;  %v10776_v19 = vld [vmem:[%s12665_s0 + $0x98] sm:$0xff]   ;;  %v10794_v22 = vld [vmem:[%s12665_s0 + $0x10] sm:$0xff]  }
  0x61   :  { %7763 = vmatpush3.bf16.msra.mxu1 %v10704_v7  ;;  %7700 = vmatprep.subr.bf16.mxu0 %v10710_v8  ;;  %v10800_v23 = vld [vmem:[%s12665_s0 + $0x90] sm:$0xff]   ;;  %v10806_v24 = vld [vmem:[%s12665_s0 + $0x48] sm:$0xff]   ;;  %v10830_v28 = vld [vmem:[%s12665_s0 + $0x40] sm:$0xff]  }
  0x62   :  { %7764 = vmatprep.subr.bf16.mxu1 %v10716_v9  ;;  %v10812_v25 = vld [vmem:[%s12665_s0 + $0xc8] sm:$0xff]   ;;  %v10836_v29 = vld [vmem:[%s12665_s0 + $0xc0] sm:$0xff]  }
  0x63   :  { %v10818_v26 = vld [vmem:[%s12665_s0 + $0x8] sm:$0xff]   ;;  %v10842_v30 = vld [vmem:[%s12665_s0] sm:$0xff]  }
  0x64   :  { %7701 = vmatpush3.bf16.msra.mxu0 %v10722_v10  ;;  %v10824_v27 = vld [vmem:[%s12665_s0 + $0x88] sm:$0xff]   ;;  %v10848_v31 = vld [vmem:[%s12665_s0 + $0x80] sm:$0xff]  }
  0x65   :  { %7765 = vmatpush3.bf16.msra.mxu1 %v10728_v11  ;;  %7702 = vmatprep.subr.bf16.mxu0 %v10734_v12  ;;  %v9748_v32 = vld [vmem:[#allocation2] ss:$16 sps:$4 sm:$0xff]   ;;  %v9750_v33 = vld [vmem:[#allocation2 + $0x4] ss:$16 sps:$4 sm:$0xff]   ;;  %v9751_v34 = vld [vmem:[#allocation2 + $0x8] ss:$16 sps:$4 sm:$0xff]  }
  0x66   :  { %7766 = vmatprep.subr.bf16.mxu1 %v10740_v13  ;;  %v9753_v35 = vld [vmem:[#allocation2 + $0xc] ss:$16 sps:$4 sm:$0xff]   ;;  %606 = vmatprep.mubr.bf16.mxu0 %v9750_v33  ;;  %v9754_v36 = vld [vmem:[#allocation2 + $0x24] ss:$16 sps:$4 sm:$0xff]   ;;  %v9758_v38 = vld [vmem:[#allocation2 + $0x20] ss:$16 sps:$4 sm:$0xff]  }
  0x67   :  { %703 = vmatprep.mubr.bf16.mxu1 %v9753_v35  ;;  %v9756_v37 = vld [vmem:[#allocation2 + $0x2c] ss:$16 sps:$4 sm:$0xff]   ;;  %v9759_v39 = vld [vmem:[#allocation2 + $0x28] ss:$16 sps:$4 sm:$0xff]   ;;  %v9760_v40 = vld [vmem:[#allocation2 + $0x44] ss:$16 sps:$4 sm:$0xff]  }
  0x68   :  { %7703 = vmatpush3.bf16.msra.mxu0 %v10746_v14  ;;  %v9762_v41 = vld [vmem:[#allocation2 + $0x4c] ss:$16 sps:$4 sm:$0xff]   ;;  %v9764_v42 = vld [vmem:[#allocation2 + $0x40] ss:$16 sps:$4 sm:$0xff]   ;;  %v9765_v43 = vld [vmem:[#allocation2 + $0x48] ss:$16 sps:$4 sm:$0xff]  }
  0x69   :  { %7767 = vmatpush3.bf16.msra.mxu1 %v10752_v15  ;;  %7704 = vmatprep.subr.bf16.mxu0 %v10758_v16  ;;  %v9766_v44 = vld [vmem:[#allocation2 + $0x64] ss:$16 sps:$4 sm:$0xff]   ;;  %v9768_v45 = vld [vmem:[#allocation2 + $0x6c] ss:$16 sps:$4 sm:$0xff]   ;;  %v9770_v46 = vld [vmem:[#allocation2 + $0x60] ss:$16 sps:$4 sm:$0xff]  }
  0x6a   :  { %7768 = vmatprep.subr.bf16.mxu1 %v10764_v17  ;;  %v9771_v47 = vld [vmem:[#allocation2 + $0x68] ss:$16 sps:$4 sm:$0xff]   ;;  %v9772_v48 = vld [vmem:[#allocation2 + $0x84] ss:$16 sps:$4 sm:$0xff]   ;;  %v9774_v49 = vld [vmem:[#allocation2 + $0x8c] ss:$16 sps:$4 sm:$0xff]  }
  0x6b   :  { %v9776_v50 = vld [vmem:[#allocation2 + $0x80] ss:$16 sps:$4 sm:$0xff]   ;;  %v9777_v51 = vld [vmem:[#allocation2 + $0x88] ss:$16 sps:$4 sm:$0xff]   ;;  %v9778_v52 = vld [vmem:[#allocation2 + $0xa4] ss:$16 sps:$4 sm:$0xff]  }
  0x6c   :  { %7705 = vmatpush3.bf16.msra.mxu0 %v10770_v18  ;;  %v9780_v53 = vld [vmem:[#allocation2 + $0xac] ss:$16 sps:$4 sm:$0xff]   ;;  %v9782_v54 = vld [vmem:[#allocation2 + $0xa0] ss:$16 sps:$4 sm:$0xff]   ;;  %v9783_v55 = vld [vmem:[#allocation2 + $0xa8] ss:$16 sps:$4 sm:$0xff]  }
  0x6d   :  { %7769 = vmatpush3.bf16.msra.mxu1 %v10776_v19  ;;  %7706 = vmatprep.subr.bf16.mxu0 %v10782_v20  ;;  %v9784_v56 = vld [vmem:[#allocation2 + $0xc4] ss:$16 sps:$4 sm:$0xff]   ;;  %v9786_v57 = vld [vmem:[#allocation2 + $0xcc] ss:$16 sps:$4 sm:$0xff]   ;;  %v9788_v58 = vld [vmem:[#allocation2 + $0xc0] ss:$16 sps:$4 sm:$0xff]  }
  0x6e   :  { %7770 = vmatprep.subr.bf16.mxu1 %v10788_v21  ;;  %v9789_v59 = vld [vmem:[#allocation2 + $0xc8] ss:$16 sps:$4 sm:$0xff]   ;;  %v9790_v60 = vld [vmem:[#allocation2 + $0xe4] ss:$16 sps:$4 sm:$0xff]   ;;  %v9792_v61 = vld [vmem:[#allocation2 + $0xec] ss:$16 sps:$4 sm:$0xff]  }
  0x6f   :  { %v9794_v62 = vld [vmem:[#allocation2 + $0xe0] ss:$16 sps:$4 sm:$0xff]   ;;  %v9795_v63 = vld [vmem:[#allocation2 + $0xe8] ss:$16 sps:$4 sm:$0xff]  }
  0x70   :  { %7707 = vmatpush3.bf16.msra.mxu0 %v10794_v22  ;;  %v9843_v33 = vld [vmem:[#allocation2 + $0x1e8] ss:$16 sps:$4 sm:$0xff]  }
  0x71   :  { %7771 = vmatpush3.bf16.msra.mxu1 %v10800_v23  ;;  %7708 = vmatprep.subr.bf16.mxu0 %v10806_v24 }
  0x72   :  { %7772 = vmatprep.subr.bf16.mxu1 %v10812_v25 }
  0x74   :  { %7709 = vmatpush3.bf16.msra.mxu0 %v10818_v26 }
  0x75   :  { %7773 = vmatpush3.bf16.msra.mxu1 %v10824_v27  ;;  %7710 = vmatprep.subr.bf16.mxu0 %v10830_v28 }
  0x76   :  { %7774 = vmatprep.subr.bf16.mxu1 %v10836_v29 }
  0x78   :  { %7711 = vmatpush3.bf16.msra.mxu0 %v10842_v30 }
  0x79   :  { %7775 = vmatpush3.bf16.msra.mxu1 %v10848_v31  ;;  %7824 = vmatprep.subr.bf16.mxu0 %v10663_v0  ;;  %v9798_v0 = vld [vmem:[#allocation2 + $0x104] ss:$16 sps:$4 sm:$0xff]  }
  0x7a   :  { %7888 = vmatprep.subr.bf16.mxu1 %v10668_v1 }
  0x7b   :  { %607 = vmatmul.mubr.bf16.vlgmr.msra.gmra.mxu0 %v9748_v32  ;;  %v9842_v32 = vld [vmem:[#allocation2 + $0x1e0] ss:$16 sps:$4 sm:$0xff]  }
  0x7c   :  { %704 = vmatmul.mubr.bf16.vlgmr.msra.gmra.mxu1 %v9751_v34  ;;  %7825 = vmatpush3.bf16.msra.mxu0 %v10674_v2  ;;  %v9801_v2 = vld [vmem:[#allocation2 + $0x10c] ss:$16 sps:$4 sm:$0xff]   ;;  %v1173_v34 = vld [vmem:[#allocation5 + $0x4] sm:$0xf] }
  0x7d   :  { %7889 = vmatpush3.bf16.msra.mxu1 %v10680_v3  ;;  %614 = vmatprep.mubr.bf16.mxu0 %v9754_v36  ;;  %v9796_v3 = vld [vmem:[#allocation2 + $0x100] ss:$16 sps:$4 sm:$0xff]   ;;  %v1201_v35 = vsel %vm1199_vm0, %v1173_v34, 0  ;;  %v10892_v36 = vld [vmem:[%s12665_s0 + $0x78] sm:$0xff]  }
  0x7e   :  { %711 = vmatprep.mubr.bf16.mxu1 %v9756_v37  ;;  %7826 = vmatprep.subr.bf16.mxu0 %v10686_v4  ;;  %v9799_v4 = vld [vmem:[#allocation2 + $0x108] ss:$16 sps:$4 sm:$0xff]  }
  0x7f   :  { %7890 = vmatprep.subr.bf16.mxu1 %v10692_v5  ;;  %v9802_v5 = vld [vmem:[#allocation2 + $0x124] ss:$16 sps:$4 sm:$0xff]  }
  0x80   :  { %7827 = vmatpush3.bf16.msra.mxu0 %v10698_v6  ;;  %v9804_v6 = vld [vmem:[#allocation2 + $0x12c] ss:$16 sps:$4 sm:$0xff]  }
  0x81   :  { %7891 = vmatpush3.bf16.msra.mxu1 %v10704_v7  ;;  %7828 = vmatprep.subr.bf16.mxu0 %v10710_v8  ;;  %v9806_v7 = vld [vmem:[#allocation2 + $0x120] ss:$16 sps:$4 sm:$0xff]   ;;  %v9807_v8 = vld [vmem:[#allocation2 + $0x128] ss:$16 sps:$4 sm:$0xff]  }
  0x82   :  { %7892 = vmatprep.subr.bf16.mxu1 %v10716_v9  ;;  %v9808_v9 = vld [vmem:[#allocation2 + $0x144] ss:$16 sps:$4 sm:$0xff]  }
  0x83   :  { %615 = vmatmul.mubr.bf16.gmra.mxu0 %v9758_v38 }
  0x84   :  { %712 = vmatmul.mubr.bf16.gmra.mxu1 %v9759_v39  ;;  %622 = vmatprep.mubr.bf16.mxu0 %v9760_v40 }
  0x85   :  { %719 = vmatprep.mubr.bf16.mxu1 %v9762_v41  ;;  %7829 = vmatpush3.bf16.msra.mxu0 %v10722_v10  ;;  %v9810_v10 = vld [vmem:[#allocation2 + $0x14c] ss:$16 sps:$4 sm:$0xff]  }
  0x86   :  { %7893 = vmatpush3.bf16.msra.mxu1 %v10728_v11  ;;  %7830 = vmatprep.subr.bf16.mxu0 %v10734_v12  ;;  %v9812_v11 = vld [vmem:[#allocation2 + $0x140] ss:$16 sps:$4 sm:$0xff]   ;;  %v9813_v12 = vld [vmem:[#allocation2 + $0x148] ss:$16 sps:$4 sm:$0xff]  }
  0x87   :  { %7894 = vmatprep.subr.bf16.mxu1 %v10740_v13  ;;  %v9814_v13 = vld [vmem:[#allocation2 + $0x164] ss:$16 sps:$4 sm:$0xff]  }
  0x89   :  { %7831 = vmatpush3.bf16.msra.mxu0 %v10746_v14  ;;  %v9816_v14 = vld [vmem:[#allocation2 + $0x16c] ss:$16 sps:$4 sm:$0xff]  }
  0x8a   :  { %7895 = vmatpush3.bf16.msra.mxu1 %v10752_v15  ;;  %7832 = vmatprep.subr.bf16.mxu0 %v10758_v16  ;;  %v776_v15 = vld [vmem:[#allocation5] sm:$0xf] }
  0x8b   :  { %623 = vmatmul.mubr.bf16.gmra.mxu0 %v9764_v42  ;;  %7896 = vmatprep.subr.bf16.mxu1 %v10764_v17  ;;  %v9818_v16 = vld [vmem:[#allocation2 + $0x160] ss:$16 sps:$4 sm:$0xff]   ;;  %v1325_v17 = vsel %vm1199_vm0, %v776_v15, 0 }
  0x8c   :  { %720 = vmatmul.mubr.bf16.gmra.mxu1 %v9765_v43  ;;  %630 = vmatprep.mubr.bf16.mxu0 %v9766_v44 }
  0x8d   :  { %727 = vmatprep.mubr.bf16.mxu1 %v9768_v45  ;;  %7833 = vmatpush3.bf16.msra.mxu0 %v10770_v18  ;;  %v9819_v18 = vld [vmem:[#allocation2 + $0x168] ss:$16 sps:$4 sm:$0xff]  }
  0x8e   :  { %7897 = vmatpush3.bf16.msra.mxu1 %v10776_v19  ;;  %7834 = vmatprep.subr.bf16.mxu0 %v10782_v20  ;;  %v9820_v19 = vld [vmem:[#allocation2 + $0x184] ss:$16 sps:$4 sm:$0xff]   ;;  %v9822_v20 = vld [vmem:[#allocation2 + $0x18c] ss:$16 sps:$4 sm:$0xff]  }
  0x8f   :  { %7898 = vmatprep.subr.bf16.mxu1 %v10788_v21  ;;  %v9824_v21 = vld [vmem:[#allocation2 + $0x180] ss:$16 sps:$4 sm:$0xff]  }
  0x91   :  { %7835 = vmatpush3.bf16.msra.mxu0 %v10794_v22  ;;  %v9825_v22 = vld [vmem:[#allocation2 + $0x188] ss:$16 sps:$4 sm:$0xff]  }
  0x92   :  { %7899 = vmatpush3.bf16.msra.mxu1 %v10800_v23  ;;  %7836 = vmatprep.subr.bf16.mxu0 %v10806_v24  ;;  %v9826_v23 = vld [vmem:[#allocation2 + $0x1a4] ss:$16 sps:$4 sm:$0xff]   ;;  %v9828_v24 = vld [vmem:[#allocation2 + $0x1ac] ss:$16 sps:$4 sm:$0xff]  }
  0x93   :  { %631 = vmatmul.mubr.bf16.gmra.mxu0 %v9770_v46  ;;  %7900 = vmatprep.subr.bf16.mxu1 %v10812_v25  ;;  %v9830_v25 = vld [vmem:[#allocation2 + $0x1a0] ss:$16 sps:$4 sm:$0xff]  }
  0x94   :  { %728 = vmatmul.mubr.bf16.gmra.mxu1 %v9771_v47  ;;  %638 = vmatprep.mubr.bf16.mxu0 %v9772_v48 }
  0x95   :  { %735 = vmatprep.mubr.bf16.mxu1 %v9774_v49  ;;  %7837 = vmatpush3.bf16.msra.mxu0 %v10818_v26  ;;  %v9831_v26 = vld [vmem:[#allocation2 + $0x1a8] ss:$16 sps:$4 sm:$0xff]  }
  0x96   :  { %7901 = vmatpush3.bf16.msra.mxu1 %v10824_v27  ;;  %7838 = vmatprep.subr.bf16.mxu0 %v10830_v28  ;;  %v9832_v27 = vld [vmem:[#allocation2 + $0x1c4] ss:$16 sps:$4 sm:$0xff]   ;;  %v9834_v28 = vld [vmem:[#allocation2 + $0x1cc] ss:$16 sps:$4 sm:$0xff]  }
  0x97   :  { %7902 = vmatprep.subr.bf16.mxu1 %v10836_v29  ;;  %v9837_v29 = vld [vmem:[#allocation2 + $0x1c8] ss:$16 sps:$4 sm:$0xff]  }
  0x99   :  { %7839 = vmatpush3.bf16.msra.mxu0 %v10842_v30  ;;  %v9838_v30 = vld [vmem:[#allocation2 + $0x1e4] ss:$16 sps:$4 sm:$0xff]  }
  0x9a   :  { %7903 = vmatpush3.bf16.msra.mxu1 %v10848_v31  ;;  %v9840_v31 = vld [vmem:[#allocation2 + $0x1ec] ss:$16 sps:$4 sm:$0xff]   ;;  %9692 = vmatprep.subr.msk.bf16.mxu0 %vm1199_vm0, %v1173_v34 }
  0x9b   :  { %639 = vmatmul.mubr.bf16.gmra.mxu0 %v9776_v50  ;;  %9693 = vmatprep.subr.msk.bf16.mxu1 %vm1199_vm0, %v776_v15  ;;  %v10900_v15 = vld [vmem:[%s12665_s0 + $0xb8] sm:$0xff]  }
  0x9c   :  { %736 = vmatmul.mubr.bf16.gmra.mxu1 %v9777_v51  ;;  %646 = vmatprep.mubr.bf16.mxu0 %v9778_v52 }
  0x9d   :  { %743 = vmatprep.mubr.bf16.mxu1 %v9780_v53 }
  0xa3   :  { %647 = vmatmul.mubr.bf16.gmra.mxu0 %v9782_v54 }
  0xa4   :  { %744 = vmatmul.mubr.bf16.gmra.mxu1 %v9783_v55  ;;  %654 = vmatprep.mubr.bf16.mxu0 %v9784_v56 }
  0xa5   :  { %751 = vmatprep.mubr.bf16.mxu1 %v9786_v57 }
  0xab   :  { %655 = vmatmul.mubr.bf16.gmra.mxu0 %v9788_v58 }
  0xac   :  { %752 = vmatmul.mubr.bf16.gmra.mxu1 %v9789_v59  ;;  %662 = vmatprep.mubr.bf16.mxu0 %v9790_v60 }
  0xad   :  { %759 = vmatprep.mubr.bf16.mxu1 %v9792_v61 }
  0xb3   :  { %663 = vmatmul.mubr.bf16.gmra.mxu0 %v9794_v62 }
  0xb4   :  { %760 = vmatmul.mubr.bf16.gmra.mxu1 %v9795_v63  ;;  %1002 = vmatprep.mubr.bf16.mxu0 %v9798_v0 }
  0xb5   :  { %1099 = vmatprep.mubr.bf16.mxu1 %v9801_v2 }
  0xbb   :  { %1003 = vmatmul.mubr.bf16.vlgmr.msra.gmra.mxu0 %v9796_v3 }
  0xbc   :  { %1100 = vmatmul.mubr.bf16.vlgmr.msra.gmra.mxu1 %v9799_v4  ;;  %1010 = vmatprep.mubr.bf16.mxu0 %v9802_v5 }
  0xbd   :  { %1107 = vmatprep.mubr.bf16.mxu1 %v9804_v6  ;;  %9143 = vmatpush3.bf16.msra.mxu1 %v1325_v17 }
  0xbe   :  { %8034 = vmatprep.subr.bf16.mxu1 %v10668_v1  ;;  %v9836_v1 = vld [vmem:[#allocation2 + $0x1c0] ss:$16 sps:$4 sm:$0xff]   ;;  %9125 = vmatpush3.bf16.msra.mxu0 %v1201_v35 }
  0xbf   :  { %7970 = vmatprep.subr.bf16.mxu0 %v10892_v36 }
  0xc3   :  { %1011 = vmatmul.mubr.bf16.gmra.mxu0 %v9806_v7 }
  0xc4   :  { %1108 = vmatmul.mubr.bf16.gmra.mxu1 %v9807_v8  ;;  %1018 = vmatprep.mubr.bf16.mxu0 %v9808_v9 }
  0xc5   :  { %1115 = vmatprep.mubr.bf16.mxu1 %v9810_v10 }
  0xcb   :  { %1019 = vmatmul.mubr.bf16.gmra.mxu0 %v9812_v11 }
  0xcc   :  { %1116 = vmatmul.mubr.bf16.gmra.mxu1 %v9813_v12  ;;  %1026 = vmatprep.mubr.bf16.mxu0 %v9814_v13 }
  0xcd   :  { %1123 = vmatprep.mubr.bf16.mxu1 %v9816_v14 }
  0xd3   :  { %1027 = vmatmul.mubr.bf16.gmra.mxu0 %v9818_v16 }
  0xd4   :  { %1124 = vmatmul.mubr.bf16.gmra.mxu1 %v9819_v18  ;;  %1034 = vmatprep.mubr.bf16.mxu0 %v9820_v19  ;;  %v10906_v18 = vld [vmem:[%s12665_s0 + $0xf0] sm:$0xff]  }
  0xd5   :  { %1131 = vmatprep.mubr.bf16.mxu1 %v9822_v20 }
  0xdb   :  { %1035 = vmatmul.mubr.bf16.gmra.mxu0 %v9824_v21 }
  0xdc   :  { %1132 = vmatmul.mubr.bf16.gmra.mxu1 %v9825_v22  ;;  %1042 = vmatprep.mubr.bf16.mxu0 %v9826_v23 }
  0xdd   :  { %1139 = vmatprep.mubr.bf16.mxu1 %v9828_v24  ;;  %v10912_v24 = vld [vmem:[%s12665_s0 + $0xb0] sm:$0xff]  }
  0xe3   :  { %1043 = vmatmul.mubr.bf16.gmra.mxu0 %v9830_v25 }
  0xe4   :  { %1140 = vmatmul.mubr.bf16.gmra.mxu1 %v9831_v26  ;;  %1050 = vmatprep.mubr.bf16.mxu0 %v9832_v27  ;;  %v10918_v27 = vld [vmem:[%s12665_s0 + $0xe8] sm:$0xff]  }
  0xe5   :  { %1147 = vmatprep.mubr.bf16.mxu1 %v9834_v28 }
  0xeb   :  { %1051 = vmatmul.mubr.bf16.gmra.mxu0 %v9836_v1 }
  0xec   :  { %1148 = vmatmul.mubr.bf16.gmra.mxu1 %v9837_v29  ;;  %1058 = vmatprep.mubr.bf16.mxu0 %v9838_v30 }
  0xed   :  { %1155 = vmatprep.mubr.bf16.mxu1 %v9840_v31 }
  0xf3   :  { %1059 = vmatmul.mubr.bf16.gmra.mxu0 %v9842_v32 }
  0xf4   :  { %1156 = vmatmul.mubr.bf16.gmra.mxu1 %v9843_v33  ;;  %v10925_v33 = vld [vmem:[%s12665_s0 + $0xa8] sm:$0xff]  }
 0x13b   :  { %v7712_v37 = vpop.f32.mrf.mxu0 }
 0x13c   :  { %v7776_v38 = vpop.f32.mrf.mxu1 }
 0x13d   :  { %v7713_v39 = vpop.f32.mrf.mxu0 }
 0x13e   :  { %v7777_v40 = vpop.f32.mrf.mxu1  ;;  %v7714_v43 = vadd.f32 %v7713_v39, %v7712_v37  ;;  %v10931_v37 = vld [vmem:[%s12665_s0 + $0xe0] sm:$0xff]  }
 0x13f   :  { %v7715_v41 = vpop.f32.mrf.mxu0  ;;  %v7778_v44 = vadd.f32 %v7777_v40, %v7776_v38 }
 0x140   :  { %v7779_v42 = vpop.f32.mrf.mxu1 }
 0x141   :  { %v7716_v45 = vpop.f32.mrf.mxu0  ;;  %v706_v51 = vadd.f32 %v7778_v44, %v7714_v43  ;;  %v10937_v43 = vld [vmem:[%s12665_s0 + $0xa0] sm:$0xff]  }
 0x142   :  { %v7717_v46 = vadd.f32 %v7716_v45, %v7715_v41  ;;  %v7780_v47 = vpop.f32.mrf.mxu1 }
 0x143   :  { %v7781_v48 = vadd.f32 %v7780_v47, %v7779_v42  ;;  %v7718_v49 = vpop.f32.mrf.mxu0 }
 0x144   :  { %v7782_v50 = vpop.f32.mrf.mxu1 }
 0x145   :  { %v709_v52 = vadd.f32 %v7781_v48, %v7717_v46  ;;  %v7719_v53 = vpop.f32.mrf.mxu0  ;;  %v10943_v46 = vld [vmem:[%s12665_s0 + $0xd8] sm:$0xff]  }
 0x146   :  { %v7783_v54 = vpop.f32.mrf.mxu1  ;;  %v7720_v58 = vadd.f32 %v7719_v53, %v7718_v49  ;;  %v10950_v53 = vld [vmem:[%s12665_s0 + $0x98] sm:$0xff]  }
 0x147   :  { %v768_v55 = vpack.c.bf16 %v709_v52, %v706_v51  ;;  %v7721_v56 = vpop.f32.mrf.mxu0  ;;  %v7784_v59 = vadd.f32 %v7783_v54, %v7782_v50 }
 0x148   :  { %v7785_v57 = vpop.f32.mrf.mxu1 }
 0x149   :  { %9144 = vmatprep.mubr.msk.bf16.mxu1 %vm1174_vm1, %v768_v55  ;;  %v7722_v60 = vpop.f32.mrf.mxu0  ;;  %v714_v3 = vadd.f32 %v7784_v59, %v7720_v58 }
 0x14a   :  { %v7723_v61 = vadd.f32 %v7722_v60, %v7721_v56  ;;  %v7786_v62 = vpop.f32.mrf.mxu1  ;;  %v10956_v56 = vld [vmem:[%s12665_s0 + $0xd0] sm:$0xff]  }
 0x14b   :  { %v7787_v63 = vadd.f32 %v7786_v62, %v7785_v57  ;;  %v7724_v0 = vpop.f32.mrf.mxu0  ;;  %v10962_v62 = vld [vmem:[%s12665_s0 + $0x90] sm:$0xff]  }
 0x14c   :  { %v7788_v2 = vpop.f32.mrf.mxu1 }
 0x14d   :  { %v717_v4 = vadd.f32 %v7787_v63, %v7723_v61  ;;  %v7725_v5 = vpop.f32.mrf.mxu0 }
 0x14e   :  { %v7789_v6 = vpop.f32.mrf.mxu1  ;;  %v7726_v10 = vadd.f32 %v7725_v5, %v7724_v0 }
 0x14f   :  { %v769_v7 = vpack.c.bf16 %v717_v4, %v714_v3  ;;  %v7727_v8 = vpop.f32.mrf.mxu0  ;;  %v7790_v11 = vadd.f32 %v7789_v6, %v7788_v2  ;;  %v10968_v2 = vld [vmem:[%s12665_s0 + $0xc8] sm:$0xff]  }
 0x150   :  { %v7791_v9 = vpop.f32.mrf.mxu1 }
 0x151   :  { %9145 = vmatmul.mubr.msk.bf16.vlgmr.msra.gmra.mxu1 %vm1174_vm1, %v769_v7  ;;  %v7728_v12 = vpop.f32.mrf.mxu0  ;;  %v722_v20 = vadd.f32 %v7790_v11, %v7726_v10 }
 0x152   :  { %v7729_v13 = vadd.f32 %v7728_v12, %v7727_v8  ;;  %v7792_v14 = vpop.f32.mrf.mxu1  ;;  %8035 = vmatpush3.bf16.msra.mxu1 %v10900_v15  ;;  %v10981_v12 = vld [vmem:[%s12665_s0 + $0xc0] sm:$0xff]  }
 0x153   :  { %v7793_v16 = vadd.f32 %v7792_v14, %v7791_v9  ;;  %v7730_v17 = vpop.f32.mrf.mxu0  ;;  %8036 = vmatprep.subr.bf16.mxu1 %v10906_v18  ;;  %v10975_v9 = vld [vmem:[%s12665_s0 + $0x88] sm:$0xff]  }
 0x154   :  { %v7794_v19 = vpop.f32.mrf.mxu1 }
 0x155   :  { %v725_v21 = vadd.f32 %v7793_v16, %v7729_v13  ;;  %v7731_v22 = vpop.f32.mrf.mxu0 }
 0x156   :  { %v7795_v23 = vpop.f32.mrf.mxu1  ;;  %8037 = vmatpush3.bf16.msra.mxu1 %v10912_v24  ;;  %v7732_v1 = vadd.f32 %v7731_v22, %v7730_v17 }
 0x157   :  { %v770_v25 = vpack.c.bf16 %v725_v21, %v722_v20  ;;  %v7733_v26 = vpop.f32.mrf.mxu0  ;;  %8038 = vmatprep.subr.bf16.mxu1 %v10918_v27  ;;  %v7796_v29 = vadd.f32 %v7795_v23, %v7794_v19  ;;  %v10987_v20 = vld [vmem:[%s12665_s0 + $0x80] sm:$0xff]  }
 0x158   :  { %v7797_v28 = vpop.f32.mrf.mxu1 }
 0x159   :  { %9148 = vmatprep.mubr.msk.bf16.mxu1 %vm1174_vm1, %v770_v25  ;;  %v7734_v30 = vpop.f32.mrf.mxu0  ;;  %v730_v39 = vadd.f32 %v7796_v29, %v7732_v1 }
 0x15a   :  { %v7735_v31 = vadd.f32 %v7734_v30, %v7733_v26  ;;  %v7798_v32 = vpop.f32.mrf.mxu1  ;;  %8039 = vmatpush3.bf16.msra.mxu1 %v10925_v33 }
 0x15b   :  { %v7799_v34 = vadd.f32 %v7798_v32, %v7797_v28  ;;  %v7736_v35 = vpop.f32.mrf.mxu0  ;;  %8040 = vmatprep.subr.bf16.mxu1 %v10931_v37 }
 0x15c   :  { %v7800_v38 = vpop.f32.mrf.mxu1 }
 0x15d   :  { %v733_v40 = vadd.f32 %v7799_v34, %v7735_v31  ;;  %v7737_v41 = vpop.f32.mrf.mxu0 }
 0x15e   :  { %v7801_v42 = vpop.f32.mrf.mxu1  ;;  %8041 = vmatpush3.bf16.msra.mxu1 %v10937_v43  ;;  %v7738_v48 = vadd.f32 %v7737_v41, %v7736_v35 }
 0x15f   :  { %v771_v44 = vpack.c.bf16 %v733_v40, %v730_v39  ;;  %v7739_v45 = vpop.f32.mrf.mxu0  ;;  %8042 = vmatprep.subr.bf16.mxu1 %v10943_v46  ;;  %v7802_v49 = vadd.f32 %v7801_v42, %v7800_v38 }
 0x160   :  { %v7803_v47 = vpop.f32.mrf.mxu1 }
 0x161   :  { %9149 = vmatmul.mubr.msk.bf16.gmra.mxu1 %vm1174_vm1, %v771_v44  ;;  %v7740_v50 = vpop.f32.mrf.mxu0  ;;  %v738_v58 = vadd.f32 %v7802_v49, %v7738_v48 }
 0x162   :  { %v7741_v51 = vadd.f32 %v7740_v50, %v7739_v45  ;;  %v7804_v52 = vpop.f32.mrf.mxu1  ;;  %8043 = vmatpush3.bf16.msra.mxu1 %v10950_v53 }
 0x163   :  { %v7805_v54 = vadd.f32 %v7804_v52, %v7803_v47  ;;  %v7742_v55 = vpop.f32.mrf.mxu0  ;;  %8044 = vmatprep.subr.bf16.mxu1 %v10956_v56 }
 0x164   :  { %v7806_v57 = vpop.f32.mrf.mxu1 }
 0x165   :  { %v741_v59 = vadd.f32 %v7805_v54, %v7741_v51  ;;  %v7743_v60 = vpop.f32.mrf.mxu0 }
 0x166   :  { %v7807_v61 = vpop.f32.mrf.mxu1  ;;  %8045 = vmatpush3.bf16.msra.mxu1 %v10962_v62  ;;  %v7744_v4 = vadd.f32 %v7743_v60, %v7742_v55 }
 0x167   :  { %v772_v63 = vpack.c.bf16 %v741_v59, %v738_v58  ;;  %v7745_v0 = vpop.f32.mrf.mxu0  ;;  %8046 = vmatprep.subr.bf16.mxu1 %v10968_v2  ;;  %v7808_v5 = vadd.f32 %v7807_v61, %v7806_v57  ;;  %v9846_v58 = vld [vmem:[#allocation2 + $0x20c] ss:$16 sps:$4 sm:$0xff]  }
 0x168   :  { %v7809_v3 = vpop.f32.mrf.mxu1 }
 0x169   :  { %9152 = vmatprep.mubr.msk.bf16.mxu1 %vm1174_vm1, %v772_v63  ;;  %v7746_v6 = vpop.f32.mrf.mxu0  ;;  %v746_v14 = vadd.f32 %v7808_v5, %v7744_v4 }
 0x16a   :  { %v7747_v7 = vadd.f32 %v7746_v6, %v7745_v0  ;;  %v7810_v8 = vpop.f32.mrf.mxu1  ;;  %8047 = vmatpush3.bf16.msra.mxu1 %v10975_v9 }
 0x16b   :  { %v7811_v10 = vadd.f32 %v7810_v8, %v7809_v3  ;;  %v7748_v11 = vpop.f32.mrf.mxu0  ;;  %8048 = vmatprep.subr.bf16.mxu1 %v10981_v12 }
 0x16c   :  { %v7812_v13 = vpop.f32.mrf.mxu1 }
 0x16d   :  { %v749_v16 = vadd.f32 %v7811_v10, %v7747_v7  ;;  %v7749_v17 = vpop.f32.mrf.mxu0 }
 0x16e   :  { %v7813_v19 = vpop.f32.mrf.mxu1  ;;  %8049 = vmatpush3.bf16.msra.mxu1 %v10987_v20  ;;  %v7750_v25 = vadd.f32 %v7749_v17, %v7748_v11  ;;  %v9850_v17 = vld [vmem:[#allocation2 + $0x22c] ss:$16 sps:$4 sm:$0xff]  }
 0x16f   :  { %v773_v21 = vpack.c.bf16 %v749_v16, %v746_v14  ;;  %v7751_v22 = vpop.f32.mrf.mxu0  ;;  %8107 = vmatprep.subr.bf16.mxu1 %v10892_v36  ;;  %v7814_v26 = vadd.f32 %v7813_v19, %v7812_v13  ;;  %v9844_v14 = vld [vmem:[#allocation2 + $0x208] ss:$16 sps:$4 sm:$0xff]  }
 0x170   :  { %v7815_v23 = vpop.f32.mrf.mxu1 }
 0x171   :  { %9153 = vmatmul.mubr.msk.bf16.gmra.mxu1 %vm1174_vm1, %v773_v21  ;;  %v7752_v28 = vpop.f32.mrf.mxu0  ;;  %v754_v34 = vadd.f32 %v7814_v26, %v7750_v25 }
 0x172   :  { %v7753_v1 = vadd.f32 %v7752_v28, %v7751_v22  ;;  %v7816_v29 = vpop.f32.mrf.mxu1 }
 0x173   :  { %v7817_v30 = vadd.f32 %v7816_v29, %v7815_v23  ;;  %v7754_v31 = vpop.f32.mrf.mxu0  ;;  %v10998_v29 = vld [vmem:[%s12665_s0 + $0x38] sm:$0xff]  }
 0x174   :  { %v7818_v32 = vpop.f32.mrf.mxu1 }
 0x175   :  { %v757_v35 = vadd.f32 %v7817_v30, %v7753_v1  ;;  %v7755_v38 = vpop.f32.mrf.mxu0 }
 0x176   :  { %v7819_v39 = vpop.f32.mrf.mxu1  ;;  %v7756_v44 = vadd.f32 %v7755_v38, %v7754_v31 }
 0x177   :  { %v774_v40 = vpack.c.bf16 %v757_v35, %v754_v34  ;;  %v7757_v41 = vpop.f32.mrf.mxu0  ;;  %v7820_v36 = vadd.f32 %v7819_v39, %v7818_v32  ;;  %v11004_v32 = vld [vmem:[%s12665_s0 + $0x70] sm:$0xff]  }
 0x178   :  { %v7821_v42 = vpop.f32.mrf.mxu1 }
 0x179   :  { %9156 = vmatprep.mubr.msk.bf16.mxu1 %vm1174_vm1, %v774_v40  ;;  %v7758_v45 = vpop.f32.mrf.mxu0  ;;  %v762_v52 = vadd.f32 %v7820_v36, %v7756_v44  ;;  %v9852_v40 = vld [vmem:[#allocation2 + $0x228] ss:$16 sps:$4 sm:$0xff]   ;;  %v11010_v44 = vld [vmem:[%s12665_s0 + $0x30] sm:$0xff]  }
 0x17a   :  { %v7759_v47 = vadd.f32 %v7758_v45, %v7757_v41  ;;  %v7822_v48 = vpop.f32.mrf.mxu1 }
 0x17b   :  { %v7823_v49 = vadd.f32 %v7822_v48, %v7821_v42  ;;  %v7840_v50 = vpop.f32.mrf.mxu0  ;;  %v9856_v42 = vld [vmem:[#allocation2 + $0x24c] ss:$16 sps:$4 sm:$0xff]  }
 0x17c   :  { %v7904_v51 = vpop.f32.mrf.mxu1 }
 0x17d   :  { %v765_v54 = vadd.f32 %v7823_v49, %v7759_v47  ;;  %v7841_v55 = vpop.f32.mrf.mxu0  ;;  %v11016_v47 = vld [vmem:[%s12665_s0 + $0x68] sm:$0xff]  }
 0x17e   :  { %v7905_v57 = vpop.f32.mrf.mxu1  ;;  %v7842_v63 = vadd.f32 %v7841_v55, %v7840_v50 }
 0x17f   :  { %v775_v59 = vpack.c.bf16 %v765_v54, %v762_v52  ;;  %v7843_v60 = vpop.f32.mrf.mxu0  ;;  %v7906_v0 = vadd.f32 %v7905_v57, %v7904_v51 }
 0x180   :  { %v7907_v61 = vpop.f32.mrf.mxu1 }
 0x181   :  { %9157 = vmatmul.mubr.msk.bf16.gmra.mxu1 %vm1174_vm1, %v775_v59  ;;  %v7844_v3 = vpop.f32.mrf.mxu0  ;;  %v1102_v10 = vadd.f32 %v7906_v0, %v7842_v63 }
 0x182   :  { %v7845_v4 = vadd.f32 %v7844_v3, %v7843_v60  ;;  %v7908_v5 = vpop.f32.mrf.mxu1  ;;  %1746 = vmatprep.mubr.bf16.mxu1 %v9846_v58  ;;  %v11025_v58 = vld [vmem:[%s12665_s0 + $0x28] sm:$0xff]   ;;  %v11031_v60 = vld [vmem:[%s12665_s0 + $0x60] sm:$0xff]  }
 0x183   :  { %v7909_v6 = vadd.f32 %v7908_v5, %v7907_v61  ;;  %v7846_v7 = vpop.f32.mrf.mxu0  ;;  %v9858_v3 = vld [vmem:[#allocation2 + $0x248] ss:$16 sps:$4 sm:$0xff]   ;;  %v9862_v5 = vld [vmem:[#allocation2 + $0x26c] ss:$16 sps:$4 sm:$0xff]  }
 0x184   :  { %v7910_v8 = vpop.f32.mrf.mxu1 }
 0x185   :  { %v1105_v11 = vadd.f32 %v7909_v6, %v7845_v4  ;;  %v7847_v13 = vpop.f32.mrf.mxu0 }
 0x186   :  { %v7911_v16 = vpop.f32.mrf.mxu1  ;;  %v7848_v23 = vadd.f32 %v7847_v13, %v7846_v7 }
 0x187   :  { %v1164_v19 = vpack.c.bf16 %v1105_v11, %v1102_v10  ;;  %v7849_v21 = vpop.f32.mrf.mxu0  ;;  %v7912_v25 = vadd.f32 %v7911_v16, %v7910_v8  ;;  %v11039_v8 = vld [vmem:[%s12665_s0 + $0x20] sm:$0xff]   ;;  %v11045_v11 = vld [vmem:[%s12665_s0 + $0x58] sm:$0xff]  }
 0x188   :  { %v7913_v22 = vpop.f32.mrf.mxu1 }
 0x189   :  { %9126 = vmatprep.mubr.msk.bf16.mxu0 %vm1174_vm1, %v1164_v19  ;;  %v7850_v26 = vpop.f32.mrf.mxu0  ;;  %1747 = vmatmul.mubr.bf16.vlgmr.msra.gmra.mxu1 %v9844_v14  ;;  %v1110_v35 = vadd.f32 %v7912_v25, %v7848_v23  ;;  %v11054_v23 = vld [vmem:[%s12665_s0 + $0x18] sm:$0xff]  }
 0x18a   :  { %v7851_v28 = vadd.f32 %v7850_v26, %v7849_v21  ;;  %v7914_v1 = vpop.f32.mrf.mxu1  ;;  %1754 = vmatprep.mubr.bf16.mxu1 %v9850_v17  ;;  %8108 = vmatpush3.bf16.msra.mxu1 %v10998_v29  ;;  %v11060_v26 = vld [vmem:[%s12665_s0 + $0x50] sm:$0xff]  }
 0x18b   :  { %v7915_v30 = vadd.f32 %v7914_v1, %v7913_v22  ;;  %v7852_v31 = vpop.f32.mrf.mxu0  ;;  %8109 = vmatprep.subr.bf16.mxu1 %v11004_v32 }
 0x18c   :  { %v7916_v34 = vpop.f32.mrf.mxu1 }
 0x18d   :  { %v1113_v38 = vadd.f32 %v7915_v30, %v7851_v28  ;;  %v7853_v39 = vpop.f32.mrf.mxu0 }
 0x18e   :  { %v7917_v41 = vpop.f32.mrf.mxu1  ;;  %8110 = vmatpush3.bf16.msra.mxu1 %v11010_v44  ;;  %v7854_v49 = vadd.f32 %v7853_v39, %v7852_v31  ;;  %v9864_v31 = vld [vmem:[#allocation2 + $0x268] ss:$16 sps:$4 sm:$0xff]  }
 0x18f   :  { %v1165_v36 = vpack.c.bf16 %v1113_v38, %v1110_v35  ;;  %v7855_v45 = vpop.f32.mrf.mxu0  ;;  %8111 = vmatprep.subr.bf16.mxu1 %v11016_v47  ;;  %v7918_v50 = vadd.f32 %v7917_v41, %v7916_v34  ;;  %v9868_v35 = vld [vmem:[#allocation2 + $0x28c] ss:$16 sps:$4 sm:$0xff]  }
 0x190   :  { %v7919_v48 = vpop.f32.mrf.mxu1 }
 0x191   :  { %9127 = vmatmul.mubr.msk.bf16.vlgmr.msra.gmra.mxu0 %vm1174_vm1, %v1165_v36  ;;  %v7856_v51 = vpop.f32.mrf.mxu0  ;;  %1755 = vmatmul.mubr.bf16.gmra.mxu1 %v9852_v40  ;;  %v1118_v61 = vadd.f32 %v7918_v50, %v7854_v49  ;;  %v11068_v40 = vld [vmem:[%s12665_s0 + $0x10] sm:$0xff]  }
 0x192   :  { %v7857_v52 = vadd.f32 %v7856_v51, %v7855_v45  ;;  %v7920_v54 = vpop.f32.mrf.mxu1  ;;  %7971 = vmatpush3.bf16.msra.mxu0 %v10998_v29  ;;  %1762 = vmatprep.mubr.bf16.mxu1 %v9856_v42  ;;  %v11074_v42 = vld [vmem:[%s12665_s0 + $0x48] sm:$0xff]  }
 0x193   :  { %v7921_v55 = vadd.f32 %v7920_v54, %v7919_v48  ;;  %v7858_v57 = vpop.f32.mrf.mxu0  ;;  %7972 = vmatprep.subr.bf16.mxu0 %v11004_v32  ;;  %8112 = vmatpush3.bf16.msra.mxu1 %v11025_v58  ;;  %v11083_v54 = vld [vmem:[%s12665_s0 + $0x8] sm:$0xff]  }
 0x194   :  { %v7922_v59 = vpop.f32.mrf.mxu1  ;;  %8113 = vmatprep.subr.bf16.mxu1 %v11031_v60 }
 0x195   :  { %v1121_v63 = vadd.f32 %v7921_v55, %v7857_v52  ;;  %v7859_v0 = vpop.f32.mrf.mxu0 }
 0x196   :  { %v7923_v4 = vpop.f32.mrf.mxu1  ;;  %7973 = vmatpush3.bf16.msra.mxu0 %v11010_v44  ;;  %v7860_v13 = vadd.f32 %v7859_v0, %v7858_v57  ;;  %v11089_v57 = vld [vmem:[%s12665_s0 + $0x40] sm:$0xff]   ;;  %v9870_v0 = vld [vmem:[#allocation2 + $0x288] ss:$16 sps:$4 sm:$0xff]  }
 0x197   :  { %v1166_v6 = vpack.c.bf16 %v1121_v63, %v1118_v61  ;;  %v7861_v7 = vpop.f32.mrf.mxu0  ;;  %7974 = vmatprep.subr.bf16.mxu0 %v11016_v47  ;;  %8114 = vmatpush3.bf16.msra.mxu1 %v11039_v8  ;;  %v7924_v14 = vadd.f32 %v7923_v4, %v7922_v59  ;;  %v9874_v4 = vld [vmem:[#allocation2 + $0x2ac] ss:$16 sps:$4 sm:$0xff]  }
 0x198   :  { %v7925_v10 = vpop.f32.mrf.mxu1  ;;  %8115 = vmatprep.subr.bf16.mxu1 %v11045_v11 }
 0x199   :  { %9130 = vmatprep.mubr.msk.bf16.mxu0 %vm1174_vm1, %v1166_v6  ;;  %v7862_v16 = vpop.f32.mrf.mxu0  ;;  %1763 = vmatmul.mubr.bf16.gmra.mxu1 %v9858_v3  ;;  %v1126_v28 = vadd.f32 %v7924_v14, %v7860_v13  ;;  %v11103_v13 = vld [vmem:[%s12665_s0 + $0xf8] sm:$0xff]  }
 0x19a   :  { %v7863_v17 = vadd.f32 %v7862_v16, %v7861_v7  ;;  %v7926_v19 = vpop.f32.mrf.mxu1  ;;  %7975 = vmatpush3.bf16.msra.mxu0 %v11025_v58  ;;  %1770 = vmatprep.mubr.bf16.mxu1 %v9862_v5  ;;  %v11097_v7 = vld [vmem:[%s12665_s0] sm:$0xff]   ;;  %12688 = vst [vmem:[#allocation24_spill] sm:$0xff] %v11103_v13 }
 0x19b   :  { %v7927_v21 = vadd.f32 %v7926_v19, %v7925_v10  ;;  %v7864_v22 = vpop.f32.mrf.mxu0  ;;  %7976 = vmatprep.subr.bf16.mxu0 %v11031_v60  ;;  %8116 = vmatpush3.bf16.msra.mxu1 %v11054_v23  ;;  %12687 = vst [vmem:[#allocation23_spill] sm:$0xff] %v11097_v7 }
 0x19c   :  { %v7928_v25 = vpop.f32.mrf.mxu1  ;;  %8117 = vmatprep.subr.bf16.mxu1 %v11060_v26 }
 0x19d   :  { %v1129_v1 = vadd.f32 %v7927_v21, %v7863_v17  ;;  %v7865_v30 = vpop.f32.mrf.mxu0 }
 0x19e   :  { %v7929_v34 = vpop.f32.mrf.mxu1  ;;  %7977 = vmatpush3.bf16.msra.mxu0 %v11039_v8  ;;  %v7866_v36 = vadd.f32 %v7865_v30, %v7864_v22 }
 0x19f   :  { %v1167_v38 = vpack.c.bf16 %v1129_v1, %v1126_v28  ;;  %v7867_v39 = vpop.f32.mrf.mxu0  ;;  %7978 = vmatprep.subr.bf16.mxu0 %v11045_v11  ;;  %8118 = vmatpush3.bf16.msra.mxu1 %v11068_v40  ;;  %v7930_v45 = vadd.f32 %v7929_v34, %v7928_v25  ;;  %v9876_v34 = vld [vmem:[#allocation2 + $0x2a8] ss:$16 sps:$4 sm:$0xff]  }
 0x1a0   :  { %v7931_v41 = vpop.f32.mrf.mxu1  ;;  %8119 = vmatprep.subr.bf16.mxu1 %v11074_v42 }
 0x1a1   :  { %9131 = vmatmul.mubr.msk.bf16.gmra.mxu0 %vm1174_vm1, %v1167_v38  ;;  %v7868_v48 = vpop.f32.mrf.mxu0  ;;  %1771 = vmatmul.mubr.bf16.gmra.mxu1 %v9864_v31  ;;  %v1134_v59 = vadd.f32 %v7930_v45, %v7866_v36  ;;  %v9880_v38 = vld [vmem:[#allocation2 + $0x2cc] ss:$16 sps:$4 sm:$0xff]  }
 0x1a2   :  { %v7869_v49 = vadd.f32 %v7868_v48, %v7867_v39  ;;  %v7932_v50 = vpop.f32.mrf.mxu1  ;;  %7979 = vmatpush3.bf16.msra.mxu0 %v11054_v23  ;;  %1778 = vmatprep.mubr.bf16.mxu1 %v9868_v35 }
 0x1a3   :  { %v7933_v51 = vadd.f32 %v7932_v50, %v7931_v41  ;;  %v7870_v52 = vpop.f32.mrf.mxu0  ;;  %7980 = vmatprep.subr.bf16.mxu0 %v11060_v26  ;;  %8120 = vmatpush3.bf16.msra.mxu1 %v11083_v54 }
 0x1a4   :  { %v7934_v55 = vpop.f32.mrf.mxu1  ;;  %8121 = vmatprep.subr.bf16.mxu1 %v11089_v57 }
 0x1a5   :  { %v1137_v61 = vadd.f32 %v7933_v51, %v7869_v49  ;;  %v7871_v63 = vpop.f32.mrf.mxu0 }
 0x1a6   :  { %v7935_v3 = vpop.f32.mrf.mxu1  ;;  %7981 = vmatpush3.bf16.msra.mxu0 %v11068_v40  ;;  %v7872_v14 = vadd.f32 %v7871_v63, %v7870_v52 }
 0x1a7   :  { %v1168_v5 = vpack.c.bf16 %v1137_v61, %v1134_v59  ;;  %v7873_v6 = vpop.f32.mrf.mxu0  ;;  %7982 = vmatprep.subr.bf16.mxu0 %v11074_v42  ;;  %8122 = vmatpush3.bf16.msra.mxu1 %v11097_v7  ;;  %v7936_v16 = vadd.f32 %v7935_v3, %v7934_v55  ;;  %v9882_v3 = vld [vmem:[#allocation2 + $0x2c8] ss:$16 sps:$4 sm:$0xff]  }
 0x1a8   :  { %v7937_v10 = vpop.f32.mrf.mxu1  ;;  %9676 = vmatprep.subr.bf16.mxu1 %v11103_v13 }
 0x1a9   :  { %9134 = vmatprep.mubr.msk.bf16.mxu0 %vm1174_vm1, %v1168_v5  ;;  %v7874_v17 = vpop.f32.mrf.mxu0  ;;  %1779 = vmatmul.mubr.bf16.gmra.mxu1 %v9870_v0  ;;  %v1142_v1 = vadd.f32 %v7936_v16, %v7872_v14  ;;  %v9886_v5 = vld [vmem:[#allocation2 + $0x2ec] ss:$16 sps:$4 sm:$0xff]  }
 0x1aa   :  { %v7875_v19 = vadd.f32 %v7874_v17, %v7873_v6  ;;  %v7938_v21 = vpop.f32.mrf.mxu1  ;;  %7983 = vmatpush3.bf16.msra.mxu0 %v11083_v54  ;;  %1786 = vmatprep.mubr.bf16.mxu1 %v9874_v4 }
 0x1ab   :  { %v7939_v22 = vadd.f32 %v7938_v21, %v7937_v10  ;;  %v7876_v25 = vpop.f32.mrf.mxu0  ;;  %7984 = vmatprep.subr.bf16.mxu0 %v11089_v57 }
 0x1ac   :  { %v7940_v28 = vpop.f32.mrf.mxu1 }
 0x1ad   :  { %v1145_v30 = vadd.f32 %v7939_v22, %v7875_v19  ;;  %v7877_v31 = vpop.f32.mrf.mxu0 }
 0x1ae   :  { %v7941_v35 = vpop.f32.mrf.mxu1  ;;  %7985 = vmatpush3.bf16.msra.mxu0 %v11097_v7  ;;  %v7878_v45 = vadd.f32 %v7877_v31, %v7876_v25  ;;  %v9849_v31 = vld [vmem:[#allocation2 + $0x204] ss:$16 sps:$4 sm:$0xff]  }
 0x1af   :  { %v1169_v39 = vpack.c.bf16 %v1145_v30, %v1142_v1  ;;  %v7879_v41 = vpop.f32.mrf.mxu0  ;;  %v7942_v48 = vadd.f32 %v7941_v35, %v7940_v28  ;;  %v9888_v30 = vld [vmem:[#allocation2 + $0x2e8] ss:$16 sps:$4 sm:$0xff]   ;;  %v9847_v35 = vld [vmem:[#allocation2 + $0x200] ss:$16 sps:$4 sm:$0xff]  }
 0x1b0   :  { %v7943_v36 = vpop.f32.mrf.mxu1 }
 0x1b1   :  { %9135 = vmatmul.mubr.msk.bf16.gmra.mxu0 %vm1174_vm1, %v1169_v39  ;;  %v7880_v49 = vpop.f32.mrf.mxu0  ;;  %1787 = vmatmul.mubr.bf16.gmra.mxu1 %v9876_v34  ;;  %v1150_v61 = vadd.f32 %v7942_v48, %v7878_v45  ;;  %v9855_v39 = vld [vmem:[#allocation2 + $0x220] ss:$16 sps:$4 sm:$0xff]   ;;  %v9865_v45 = vld [vmem:[#allocation2 + $0x264] ss:$16 sps:$4 sm:$0xff]  }
 0x1b2   :  { %v7881_v50 = vadd.f32 %v7880_v49, %v7879_v41  ;;  %v7944_v51 = vpop.f32.mrf.mxu1  ;;  %1794 = vmatprep.mubr.bf16.mxu1 %v9880_v38  ;;  %v9853_v38 = vld [vmem:[#allocation2 + $0x224] ss:$16 sps:$4 sm:$0xff]   ;;  %v9867_v48 = vld [vmem:[#allocation2 + $0x260] ss:$16 sps:$4 sm:$0xff]  }
 0x1b3   :  { %v7945_v52 = vadd.f32 %v7944_v51, %v7943_v36  ;;  %v7882_v55 = vpop.f32.mrf.mxu0  ;;  %v9859_v41 = vld [vmem:[#allocation2 + $0x244] ss:$16 sps:$4 sm:$0xff]   ;;  %v9861_v36 = vld [vmem:[#allocation2 + $0x240] ss:$16 sps:$4 sm:$0xff]  }
 0x1b4   :  { %v7946_v59 = vpop.f32.mrf.mxu1  ;;  %v9871_v49 = vld [vmem:[#allocation2 + $0x284] ss:$16 sps:$4 sm:$0xff]  }
 0x1b5   :  { %v1153_v63 = vadd.f32 %v7945_v52, %v7881_v50  ;;  %v7883_v0 = vpop.f32.mrf.mxu0  ;;  %v9873_v50 = vld [vmem:[#allocation2 + $0x280] ss:$16 sps:$4 sm:$0xff]   ;;  %v9877_v51 = vld [vmem:[#allocation2 + $0x2a4] ss:$16 sps:$4 sm:$0xff]  }
 0x1b6   :  { %v7947_v4 = vpop.f32.mrf.mxu1  ;;  %v7884_v16 = vadd.f32 %v7883_v0, %v7882_v55  ;;  %v9879_v52 = vld [vmem:[#allocation2 + $0x2a0] ss:$16 sps:$4 sm:$0xff]   ;;  %v9883_v55 = vld [vmem:[#allocation2 + $0x2c4] ss:$16 sps:$4 sm:$0xff]  }
 0x1b7   :  { %v1170_v6 = vpack.c.bf16 %v1153_v63, %v1150_v61  ;;  %v7885_v10 = vpop.f32.mrf.mxu0  ;;  %v7948_v17 = vadd.f32 %v7947_v4, %v7946_v59  ;;  %v9885_v59 = vld [vmem:[#allocation2 + $0x2c0] ss:$16 sps:$4 sm:$0xff]   ;;  %v9889_v61 = vld [vmem:[#allocation2 + $0x2e4] ss:$16 sps:$4 sm:$0xff]   ;;  %v1820_v63 = vld [vmem:[#allocation5 + $0x8] sm:$0xf] }
 0x1b8   :  { %v7949_v14 = vpop.f32.mrf.mxu1  ;;  %9694 = vmatprep.subr.msk.bf16.mxu0 %vm1199_vm0, %v1820_v63  ;;  %v1846_v0 = vsel %vm1199_vm0, %v1820_v63, 0 }
 0x1b9   :  { %9138 = vmatprep.mubr.msk.bf16.mxu0 %vm1174_vm1, %v1170_v6  ;;  %v7886_v19 = vpop.f32.mrf.mxu0  ;;  %1795 = vmatmul.mubr.bf16.gmra.mxu1 %v9882_v3  ;;  %v1158_v28 = vadd.f32 %v7948_v17, %v7884_v16  ;;  %v9891_v3 = vld [vmem:[#allocation2 + $0x2e0] ss:$16 sps:$4 sm:$0xff]  }
 0x1ba   :  { %v7887_v21 = vadd.f32 %v7886_v19, %v7885_v10  ;;  %v7950_v22 = vpop.f32.mrf.mxu1  ;;  %1802 = vmatprep.mubr.bf16.mxu1 %v9886_v5 }
 0x1bb   :  { %v7951_v25 = vadd.f32 %v7950_v22, %v7949_v14  ;;  %v9894_v22 = vld [vmem:[#allocation2 + $0x304] ss:$16 sps:$4 sm:$0xff]  }
 0x1bd   :  { %v1161_v1 = vadd.f32 %v7951_v25, %v7887_v21 }
 0x1bf   :  { %v1171_v34 = vpack.c.bf16 %v1161_v1, %v1158_v28  ;;  %v9892_v28 = vld [vmem:[#allocation2 + $0x300] ss:$16 sps:$4 sm:$0xff]  }
 0x1c1   :  { %9139 = vmatmul.mubr.msk.bf16.gmra.mxu0 %vm1174_vm1, %v1171_v34  ;;  %1803 = vmatmul.mubr.bf16.gmra.mxu1 %v9888_v30  ;;  %v9897_v30 = vld [vmem:[#allocation2 + $0x324] ss:$16 sps:$4 sm:$0xff]   ;;  %v9895_v34 = vld [vmem:[#allocation2 + $0x320] ss:$16 sps:$4 sm:$0xff]  }
 0x1c2   :  { %1649 = vmatprep.mubr.bf16.mxu0 %v9849_v31  ;;  %2186 = vmatprep.mubr.bf16.mxu1 %v9894_v22 }
 0x1c9   :  { %1650 = vmatmul.mubr.bf16.vlgmr.msra.gmra.mxu0 %v9847_v35  ;;  %2187 = vmatmul.mubr.bf16.vlgmr.msra.gmra.mxu1 %v9892_v28  ;;  %v9907_v28 = vld [vmem:[#allocation2 + $0x380] ss:$16 sps:$4 sm:$0xff]  }
 0x1ca   :  { %1657 = vmatprep.mubr.bf16.mxu0 %v9853_v38  ;;  %9161 = vmatpush3.bf16.msra.mxu0 %v1846_v0 }
 0x1cb   :  { %8171 = vmatprep.subr.bf16.mxu0 %v11103_v13  ;;  %9684 = vmatpush3.bf16.msra.mxu1 %v10900_v15 }
 0x1cc   :  { %9677 = vmatprep.subr.bf16.mxu1 %v10906_v18  ;;  %2194 = vmatprep.mubr.bf16.mxu1 %v9897_v30  ;;  %v9909_v30 = vld [vmem:[#allocation2 + $0x384] ss:$16 sps:$4 sm:$0xff]  }
 0x1cf   :  { %9685 = vmatpush3.bf16.msra.mxu1 %v10912_v24 }
 0x1d0   :  { %9678 = vmatprep.subr.bf16.mxu1 %v10918_v27 }
 0x1d1   :  { %1658 = vmatmul.mubr.bf16.gmra.mxu0 %v9855_v39  ;;  %2195 = vmatmul.mubr.bf16.gmra.mxu1 %v9895_v34 }
 0x1d2   :  { %1665 = vmatprep.mubr.bf16.mxu0 %v9859_v41  ;;  %v9900_v41 = vld [vmem:[#allocation2 + $0x344] ss:$16 sps:$4 sm:$0xff]  }
 0x1d3   :  { %9686 = vmatpush3.bf16.msra.mxu1 %v10925_v33  ;;  %2202 = vmatprep.mubr.bf16.mxu1 %v9900_v41  ;;  %v9913_v41 = vld [vmem:[#allocation2 + $0x3a0] ss:$16 sps:$4 sm:$0xff]  }
 0x1d4   :  { %9679 = vmatprep.subr.bf16.mxu1 %v10931_v37 }
 0x1d7   :  { %9687 = vmatpush3.bf16.msra.mxu1 %v10937_v43 }
 0x1d8   :  { %9680 = vmatprep.subr.bf16.mxu1 %v10943_v46 }
 0x1d9   :  { %1666 = vmatmul.mubr.bf16.gmra.mxu0 %v9861_v36 }
 0x1da   :  { %1673 = vmatprep.mubr.bf16.mxu0 %v9865_v45  ;;  %v9898_v45 = vld [vmem:[#allocation2 + $0x340] ss:$16 sps:$4 sm:$0xff]  }
 0x1db   :  { %2203 = vmatmul.mubr.bf16.gmra.mxu1 %v9898_v45  ;;  %v9915_v45 = vld [vmem:[#allocation2 + $0x3a4] ss:$16 sps:$4 sm:$0xff]  }
 0x1dc   :  { %9688 = vmatpush3.bf16.msra.mxu1 %v10950_v53 }
 0x1dd   :  { %9681 = vmatprep.subr.bf16.mxu1 %v10956_v56 }
 0x1e0   :  { %9689 = vmatpush3.bf16.msra.mxu1 %v10962_v62 }
 0x1e1   :  { %1674 = vmatmul.mubr.bf16.gmra.mxu0 %v9867_v48  ;;  %9682 = vmatprep.subr.bf16.mxu1 %v10968_v2 }
 0x1e2   :  { %1681 = vmatprep.mubr.bf16.mxu0 %v9871_v49 }
 0x1e4   :  { %9690 = vmatpush3.bf16.msra.mxu1 %v10975_v9 }
 0x1e5   :  { %9683 = vmatprep.subr.bf16.mxu1 %v10981_v12 }
 0x1e8   :  { %9691 = vmatpush3.bf16.msra.mxu1 %v10987_v20 }
 0x1e9   :  { %1682 = vmatmul.mubr.bf16.gmra.mxu0 %v9873_v50  ;;  %v9901_v50 = vld [vmem:[#allocation2 + $0x360] ss:$16 sps:$4 sm:$0xff]  }
 0x1ea   :  { %1689 = vmatprep.mubr.bf16.mxu0 %v9877_v51  ;;  %v9903_v51 = vld [vmem:[#allocation2 + $0x364] ss:$16 sps:$4 sm:$0xff]  }
 0x1eb   :  { %2210 = vmatprep.mubr.bf16.mxu1 %v9903_v51 }
 0x1ec   :  { %2211 = vmatmul.mubr.bf16.gmra.mxu1 %v9901_v50 }
 0x1ed   :  { %2218 = vmatprep.mubr.bf16.mxu1 %v9909_v30 }
 0x1f1   :  { %1690 = vmatmul.mubr.bf16.gmra.mxu0 %v9879_v52 }
 0x1f2   :  { %1697 = vmatprep.mubr.bf16.mxu0 %v9883_v55 }
 0x1f4   :  { %2219 = vmatmul.mubr.bf16.gmra.mxu1 %v9907_v28 }
 0x1f5   :  { %2226 = vmatprep.mubr.bf16.mxu1 %v9915_v45 }
 0x1f9   :  { %1698 = vmatmul.mubr.bf16.gmra.mxu0 %v9885_v59 }
 0x1fa   :  { %1705 = vmatprep.mubr.bf16.mxu0 %v9889_v61 }
 0x1fc   :  { %2227 = vmatmul.mubr.bf16.gmra.mxu1 %v9913_v41  ;;  %v9925_v41 = vld [vmem:[#allocation2 + $0x3e0] ss:$16 sps:$4 sm:$0xff]  }
 0x201   :  { %1706 = vmatmul.mubr.bf16.gmra.mxu0 %v9891_v3 }
 0x211   :  { %v9146_v4 = vpop.f32.mrf.mxu1 }
 0x213   :  { %v1361_v5 = vpop.f32.mrf.mxu1 }
 0x215   :  { %v9147_v6 = vpop.f32.mrf.mxu1 }
 0x217   :  { %v11116_v10 = vpop.f32.mrf.mxu1 }
 0x218   :  { %12689 = vst [vmem:[#allocation25_spill] sm:$0xff] %v11116_v10 }
 0x221   :  { %v11118_v14 = vpop.f32.mrf.mxu1 }
 0x223   :  { %v11120_v16 = vpop.f32.mrf.mxu1 }
 0x225   :  { %v11122_v17 = vpop.f32.mrf.mxu1 }
 0x227   :  { %v11124_v19 = vpop.f32.mrf.mxu1 }
 0x228   :  { %12690 = vst [vmem:[#allocation26_spill] sm:$0xff] %v11124_v19 }
 0x231   :  { %v11126_v21 = vpop.f32.mrf.mxu1 }
 0x233   :  { %v11128_v25 = vpop.f32.mrf.mxu1 }
 0x235   :  { %v11131_v1 = vpop.f32.mrf.mxu1 }
 0x237   :  { %v11135_v31 = vpop.f32.mrf.mxu1 }
 0x238   :  { %12691 = vst [vmem:[#allocation27_spill] sm:$0xff] %v11135_v31  ;;  %v9921_v31 = vld [vmem:[#allocation2 + $0x3c4] ss:$16 sps:$4 sm:$0xff]  }
 0x239   :  { %2234 = vmatprep.mubr.bf16.mxu1 %v9921_v31 }
 0x241   :  { %v11138_v35 = vpop.f32.mrf.mxu1 }
 0x243   :  { %v11141_v38 = vpop.f32.mrf.mxu1 }
 0x245   :  { %v11144_v39 = vpop.f32.mrf.mxu1 }
 0x247   :  { %v11147_v36 = vpop.f32.mrf.mxu1 }
 0x248   :  { %12692 = vst [vmem:[#allocation28_spill] sm:$0xff] %v11147_v36  ;;  %v9919_v36 = vld [vmem:[#allocation2 + $0x3c0] ss:$16 sps:$4 sm:$0xff]  }
 0x249   :  { %v11150_v48 = vpop.f32.mrf.mxu1  ;;  %2235 = vmatmul.mubr.bf16.gmra.mxu1 %v9919_v36 }
 0x24b   :  { %v11154_v49 = vpop.f32.mrf.mxu1 }
 0x24d   :  { %v11158_v55 = vpop.f32.mrf.mxu1 }
 0x24f   :  { %v11166_v3 = vpop.f32.mrf.mxu1 }
 0x251   :  { %v9128_v52 = vpop.f32.mrf.mxu0  ;;  %v11171_v34 = vpop.f32.mrf.mxu1 }
 0x252   :  { %v11160_v59 = vadd.f32 %v9146_v4, %v9128_v52 }
 0x253   :  { %v1237_v61 = vpop.f32.mrf.mxu0  ;;  %v11173_v4 = vpop.f32.mrf.mxu1 }
 0x254   :  { %12693 = vst [vmem:[#allocation29_spill] sm:$0xff] %v11160_v59  ;;  %v11164_v63 = vadd.f32 %v1361_v5, %v1237_v61 }
 0x255   :  { %v9129_v0 = vpop.f32.mrf.mxu0  ;;  %v11177_v51 = vpop.f32.mrf.mxu1 }
 0x256   :  { %12694 = vst [vmem:[#allocation30_spill] sm:$0xff] %v11164_v63  ;;  %v11168_v22 = vadd.f32 %v9147_v6, %v9129_v0 }
 0x257   :  { %v11175_v50 = vpop.f32.mrf.mxu0  ;;  %v8060_v28 = vpop.f32.mrf.mxu1 }
 0x258   :  { %12695 = vst [vmem:[#allocation31_spill] sm:$0xff] %v11168_v22  ;;  %12696 = vst [vmem:[#allocation32_spill] sm:$0xff] %v11175_v50 }
 0x259   :  { %v11188_v45 = vpop.f32.mrf.mxu1 }
 0x25b   :  { %v11190_v19 = vpop.f32.mrf.mxu1 }
 0x261   :  { %v9132_v5 = vpop.f32.mrf.mxu0 }
 0x262   :  { %v11180_v6 = vadd.f32 %v11118_v14, %v9132_v5  ;;  %v9927_v14 = vld [vmem:[#allocation2 + $0x3e4] ss:$16 sps:$4 sm:$0xff]  }
 0x263   :  { %v1253_v52 = vpop.f32.mrf.mxu0  ;;  %2242 = vmatprep.mubr.bf16.mxu1 %v9927_v14 }
 0x264   :  { %12697 = vst [vmem:[#allocation33_spill] sm:$0xff] %v11180_v6  ;;  %v11183_v61 = vadd.f32 %v11120_v16, %v1253_v52  ;;  %v8065_v52 = vpop.f32.mrf.mxu1  ;;  %2243 = vmatmul.mubr.bf16.gmra.mxu1 %v9925_v41 }
 0x265   :  { %v9133_v0 = vpop.f32.mrf.mxu0 }
 0x266   :  { %12698 = vst [vmem:[#allocation34_spill] sm:$0xff] %v11183_v61  ;;  %v11186_v30 = vadd.f32 %v11122_v17, %v9133_v0  ;;  %v8066_v50 = vpop.f32.mrf.mxu1  ;;  %v9933_v61 = vld [vmem:[#allocation2 + $0x3ec] ss:$16 sps:$4 sm:$0xff]  }
 0x267   :  { %v11192_v5 = vpop.f32.mrf.mxu0  ;;  %2339 = vmatprep.mubr.bf16.mxu1 %v9933_v61 }
 0x268   :  { %12699 = vst [vmem:[#allocation35_spill] sm:$0xff] %v11186_v30  ;;  %12700 = vst [vmem:[#allocation36_spill] sm:$0xff] %v11192_v5  ;;  %v9931_v30 = vld [vmem:[#allocation2 + $0x3e8] ss:$16 sps:$4 sm:$0xff]   ;;  %v11203_v5 = vpop.f32.mrf.mxu1 }
 0x26a   :  { %v11205_v14 = vpop.f32.mrf.mxu1 }
 0x26c   :  { %2340 = vmatmul.mubr.bf16.vlgmr.msra.gmra.mxu1 %v9931_v30 }
 0x271   :  { %v9136_v16 = vpop.f32.mrf.mxu0 }
 0x272   :  { %v11195_v10 = vadd.f32 %v11126_v21, %v9136_v16  ;;  %v11209_v16 = vpop.f32.mrf.mxu1 }
 0x273   :  { %v1269_v17 = vpop.f32.mrf.mxu0 }
 0x274   :  { %12701 = vst [vmem:[#allocation37_spill] sm:$0xff] %v11195_v10  ;;  %v11198_v0 = vadd.f32 %v11128_v25, %v1269_v17 }
 0x275   :  { %v9137_v31 = vpop.f32.mrf.mxu0 }
 0x276   :  { %12702 = vst [vmem:[#allocation38_spill] sm:$0xff] %v11198_v0  ;;  %v11201_v36 = vadd.f32 %v11131_v1, %v9137_v31 }
 0x277   :  { %v11207_v41 = vpop.f32.mrf.mxu0 }
 0x278   :  { %12703 = vst [vmem:[#allocation39_spill] sm:$0xff] %v11201_v36  ;;  %12704 = vst [vmem:[#allocation40_spill] sm:$0xff] %v11207_v41  ;;  %v8072_v36 = vpop.f32.mrf.mxu1 }
 0x27a   :  { %v11222_v10 = vpop.f32.mrf.mxu1 }
 0x27c   :  { %v11224_v22 = vpop.f32.mrf.mxu1 }
 0x281   :  { %v9140_v21 = vpop.f32.mrf.mxu0 }
 0x282   :  { %v11212_v25 = vadd.f32 %v11138_v35, %v9140_v21 }
 0x283   :  { %v1285_v17 = vpop.f32.mrf.mxu0 }
 0x284   :  { %12705 = vst [vmem:[#allocation41_spill] sm:$0xff] %v11212_v25  ;;  %v11215_v1 = vadd.f32 %v11141_v38, %v1285_v17  ;;  %v8052_v38 = vadd.f32 %v11154_v49, %v11150_v48  ;;  %v8055_v17 = vadd.f32 %v11166_v3, %v11158_v55  ;;  %v8061_v48 = vadd.f32 %v8060_v28, %v11177_v51 }
 0x285   :  { %v9141_v31 = vpop.f32.mrf.mxu0 }
 0x286   :  { %12706 = vst [vmem:[#allocation42_spill] sm:$0xff] %v11215_v1  ;;  %v11218_v61 = vadd.f32 %v11144_v39, %v9141_v31  ;;  %v8077_v31 = vpop.f32.mrf.mxu1 }
 0x287   :  { %v11220_v30 = vpop.f32.mrf.mxu0 }
 0x288   :  { %12707 = vst [vmem:[#allocation43_spill] sm:$0xff] %v11218_v61  ;;  %12708 = vst [vmem:[#allocation44_spill] sm:$0xff] %v11220_v30  ;;  %v8078_v13 = vpop.f32.mrf.mxu1 }
 0x289   :  { %v7986_v0 = vpop.f32.mrf.mxu0 }
 0x28a   :  { %v11234_v3 = vpop.f32.mrf.mxu1 }
 0x28b   :  { %v7987_v41 = vpop.f32.mrf.mxu0 }
 0x28c   :  { %v7988_v35 = vadd.f32 %v7987_v41, %v7986_v0  ;;  %v8058_v41 = vadd.f32 %v11173_v4, %v11171_v34  ;;  %v8064_v34 = vadd.f32 %v11190_v19, %v11188_v45  ;;  %v8067_v4 = vadd.f32 %v8066_v50, %v8065_v52 }
 0x28d   :  { %v7989_v6 = vpop.f32.mrf.mxu0  ;;  %v8073_v50 = vadd.f32 %v8072_v36, %v11209_v16  ;;  %v8079_v36 = vadd.f32 %v8078_v13, %v8077_v31 }
 0x28e   :  { %v1749_v61 = vadd.f32 %v8052_v38, %v7988_v35 }
 0x28f   :  { %v7990_v21 = vpop.f32.mrf.mxu0 }
 0x290   :  { %v7991_v1 = vadd.f32 %v7990_v21, %v7989_v6 }
 0x291   :  { %v7992_v39 = vpop.f32.mrf.mxu0 }
 0x292   :  { %v1752_v30 = vadd.f32 %v8055_v17, %v7991_v1 }
 0x293   :  { %v7993_v25 = vpop.f32.mrf.mxu0 }
 0x294   :  { %v1811_v63 = vpack.c.bf16 %v1752_v30, %v1749_v61  ;;  %v7994_v7 = vadd.f32 %v7993_v25, %v7992_v39  ;;  %v8081_v30 = vpop.f32.mrf.mxu1 }
 0x295   :  { %v7995_v59 = vpop.f32.mrf.mxu0 }
 0x296   :  { %9162 = vmatprep.mubr.msk.bf16.mxu0 %vm1174_vm1, %v1811_v63  ;;  %v1757_v6 = vadd.f32 %v8058_v41, %v7994_v7  ;;  %v8083_v7 = vpop.f32.mrf.mxu1 }
 0x297   :  { %v7996_v0 = vpop.f32.mrf.mxu0 }
 0x298   :  { %v7997_v49 = vadd.f32 %v7996_v0, %v7995_v59  ;;  %v8084_v41 = vpop.f32.mrf.mxu1 }
 0x299   :  { %v7998_v55 = vpop.f32.mrf.mxu0  ;;  %v8085_v13 = vadd.f32 %v8084_v41, %v8083_v7 }
 0x29a   :  { %v1760_v35 = vadd.f32 %v8061_v48, %v7997_v49  ;;  %v8086_v52 = vpop.f32.mrf.mxu1 }
 0x29b   :  { %v7999_v1 = vpop.f32.mrf.mxu0 }
 0x29c   :  { %v1812_v21 = vpack.c.bf16 %v1760_v35, %v1757_v6  ;;  %v8000_v38 = vadd.f32 %v7999_v1, %v7998_v55 }
 0x29d   :  { %v8001_v61 = vpop.f32.mrf.mxu0 }
 0x29e   :  { %9163 = vmatmul.mubr.msk.bf16.vlgmr.msra.gmra.mxu0 %vm1174_vm1, %v1812_v21  ;;  %v1765_v28 = vadd.f32 %v8064_v34, %v8000_v38 }
 0x29f   :  { %v8002_v63 = vpop.f32.mrf.mxu0  ;;  %8172 = vmatpush3.bf16.msra.mxu0 %v10900_v15 }
 0x2a0   :  { %v8003_v59 = vadd.f32 %v8002_v63, %v8001_v61  ;;  %8173 = vmatprep.subr.bf16.mxu0 %v10906_v18  ;;  %v8070_v18 = vadd.f32 %v11205_v14, %v11203_v5 }
 0x2a1   :  { %v8004_v51 = vpop.f32.mrf.mxu0 }
 0x2a2   :  { %v1768_v25 = vadd.f32 %v8067_v4, %v8003_v59 }
 0x2a3   :  { %v8005_v17 = vpop.f32.mrf.mxu0  ;;  %8174 = vmatpush3.bf16.msra.mxu0 %v10912_v24 }
 0x2a4   :  { %v1813_v39 = vpack.c.bf16 %v1768_v25, %v1765_v28  ;;  %8175 = vmatprep.subr.bf16.mxu0 %v10918_v27  ;;  %v8006_v15 = vadd.f32 %v8005_v17, %v8004_v51  ;;  %v11266_v51 = vld [vmem:[%s12665_s0 + $0x78] sm:$0xff]  }
 0x2a5   :  { %v8007_v0 = vpop.f32.mrf.mxu0 }
 0x2a6   :  { %9166 = vmatprep.mubr.msk.bf16.mxu0 %vm1174_vm1, %v1813_v39  ;;  %v1773_v48 = vadd.f32 %v8070_v18, %v8006_v15 }
 0x2a7   :  { %v8008_v19 = vpop.f32.mrf.mxu0  ;;  %8176 = vmatpush3.bf16.msra.mxu0 %v10925_v33  ;;  %v8087_v33 = vpop.f32.mrf.mxu1 }
 0x2a8   :  { %v8009_v45 = vadd.f32 %v8008_v19, %v8007_v0  ;;  %8177 = vmatprep.subr.bf16.mxu0 %v10931_v37  ;;  %v8076_v37 = vadd.f32 %v11224_v22, %v11222_v10  ;;  %v8088_v7 = vadd.f32 %v8087_v33, %v8086_v52  ;;  %v9906_v52 = vld [vmem:[#allocation2 + $0x30c] ss:$16 sps:$4 sm:$0xff]   ;;  %v9904_v33 = vld [vmem:[#allocation2 + $0x308] ss:$16 sps:$4 sm:$0xff]  }
 0x2a9   :  { %v8010_v24 = vpop.f32.mrf.mxu0 }
 0x2aa   :  { %v1776_v27 = vadd.f32 %v8073_v50, %v8009_v45 }
 0x2ab   :  { %v8011_v49 = vpop.f32.mrf.mxu0  ;;  %8178 = vmatpush3.bf16.msra.mxu0 %v10937_v43  ;;  %v8089_v43 = vpop.f32.mrf.mxu1 }
 0x2ac   :  { %v1814_v55 = vpack.c.bf16 %v1776_v27, %v1773_v48  ;;  %8179 = vmatprep.subr.bf16.mxu0 %v10943_v46  ;;  %v8012_v35 = vadd.f32 %v8011_v49, %v8010_v24 }
 0x2ad   :  { %v8013_v6 = vpop.f32.mrf.mxu0  ;;  %v8090_v63 = vpop.f32.mrf.mxu1 }
 0x2ae   :  { %9167 = vmatmul.mubr.msk.bf16.gmra.mxu0 %vm1174_vm1, %v1814_v55  ;;  %v1781_v1 = vadd.f32 %v8076_v37, %v8012_v35  ;;  %v8091_v28 = vadd.f32 %v8090_v63, %v8089_v43  ;;  %v9912_v35 = vld [vmem:[#allocation2 + $0x32c] ss:$16 sps:$4 sm:$0xff]  }
 0x2af   :  { %v8014_v5 = vpop.f32.mrf.mxu0  ;;  %8180 = vmatpush3.bf16.msra.mxu0 %v10950_v53  ;;  %v8092_v34 = vpop.f32.mrf.mxu1  ;;  %v9918_v37 = vld [vmem:[#allocation2 + $0x34c] ss:$16 sps:$4 sm:$0xff]  }
 0x2b0   :  { %v8015_v14 = vadd.f32 %v8014_v5, %v8013_v6  ;;  %8181 = vmatprep.subr.bf16.mxu0 %v10956_v56  ;;  %v8082_v56 = vadd.f32 %v8081_v30, %v11234_v3  ;;  %v9910_v5 = vld [vmem:[#allocation2 + $0x328] ss:$16 sps:$4 sm:$0xff]  }
 0x2b1   :  { %v8016_v16 = vpop.f32.mrf.mxu0  ;;  %v8093_v3 = vpop.f32.mrf.mxu1 }
 0x2b2   :  { %v1784_v21 = vadd.f32 %v8079_v36, %v8015_v14  ;;  %v8094_v24 = vadd.f32 %v8093_v3, %v8092_v34  ;;  %v9916_v36 = vld [vmem:[#allocation2 + $0x348] ss:$16 sps:$4 sm:$0xff]   ;;  %v9924_v14 = vld [vmem:[#allocation2 + $0x36c] ss:$16 sps:$4 sm:$0xff]  }
 0x2b3   :  { %v8017_v46 = vpop.f32.mrf.mxu0  ;;  %8182 = vmatpush3.bf16.msra.mxu0 %v10962_v62  ;;  %v8095_v17 = vpop.f32.mrf.mxu1 }
 0x2b4   :  { %v1815_v61 = vpack.c.bf16 %v1784_v21, %v1781_v1  ;;  %8183 = vmatprep.subr.bf16.mxu0 %v10968_v2  ;;  %v8018_v53 = vadd.f32 %v8017_v46, %v8016_v16  ;;  %v9942_v46 = vld [vmem:[#allocation2 + $0x404] ss:$16 sps:$4 sm:$0xff]  }
 0x2b5   :  { %v8019_v38 = vpop.f32.mrf.mxu0  ;;  %v8096_v19 = vpop.f32.mrf.mxu1 }
 0x2b6   :  { %9170 = vmatprep.mubr.msk.bf16.mxu0 %vm1174_vm1, %v1815_v61  ;;  %v1789_v62 = vadd.f32 %v8082_v56, %v8018_v53  ;;  %v8097_v48 = vadd.f32 %v8096_v19, %v8095_v17  ;;  %v9940_v61 = vld [vmem:[#allocation2 + $0x400] ss:$16 sps:$4 sm:$0xff]   ;;  %v9948_v53 = vld [vmem:[#allocation2 + $0x424] ss:$16 sps:$4 sm:$0xff]  }
 0x2b7   :  { %v8020_v10 = vpop.f32.mrf.mxu0  ;;  %8184 = vmatpush3.bf16.msra.mxu0 %v10975_v9 }
 0x2b8   :  { %v8021_v22 = vadd.f32 %v8020_v10, %v8019_v38  ;;  %8185 = vmatprep.subr.bf16.mxu0 %v10981_v12  ;;  %v9946_v10 = vld [vmem:[#allocation2 + $0x420] ss:$16 sps:$4 sm:$0xff]  }
 0x2b9   :  { %v8022_v31 = vpop.f32.mrf.mxu0 }
 0x2ba   :  { %v1792_v4 = vadd.f32 %v8085_v13, %v8021_v22  ;;  %v12711_v13 = vld [vmem:[#allocation29_spill] sm:$0xff] }
 0x2bb   :  { %v8023_v59 = vpop.f32.mrf.mxu0  ;;  %8186 = vmatpush3.bf16.msra.mxu0 %v10987_v20 }
 0x2bc   :  { %v1816_v2 = vpack.c.bf16 %v1792_v4, %v1789_v62  ;;  %8244 = vmatprep.subr.bf16.mxu0 %v11266_v51  ;;  %v8024_v30 = vadd.f32 %v8023_v59, %v8022_v31  ;;  %v12712_v62 = vld [vmem:[#allocation30_spill] sm:$0xff] }
 0x2bd   :  { %v8025_v9 = vpop.f32.mrf.mxu0 }
 0x2be   :  { %9171 = vmatmul.mubr.msk.bf16.gmra.mxu0 %vm1174_vm1, %v1816_v2  ;;  %v1797_v20 = vadd.f32 %v8088_v7, %v8024_v30  ;;  %v12713_v2 = vld [vmem:[#allocation31_spill] sm:$0xff] }
 0x2bf   :  { %v8026_v12 = vpop.f32.mrf.mxu0  ;;  %v9954_v30 = vld [vmem:[#allocation2 + $0x444] ss:$16 sps:$4 sm:$0xff]  }
 0x2c0   :  { %v8027_v25 = vadd.f32 %v8026_v12, %v8025_v9  ;;  %v9952_v12 = vld [vmem:[#allocation2 + $0x440] ss:$16 sps:$4 sm:$0xff]  }
 0x2c1   :  { %v8028_v39 = vpop.f32.mrf.mxu0 }
 0x2c2   :  { %v1800_v0 = vadd.f32 %v8091_v28, %v8027_v25  ;;  %v9960_v25 = vld [vmem:[#allocation2 + $0x464] ss:$16 sps:$4 sm:$0xff]  }
 0x2c3   :  { %v8029_v41 = vpop.f32.mrf.mxu0 }
 0x2c4   :  { %v1817_v15 = vpack.c.bf16 %v1800_v0, %v1797_v20  ;;  %v8030_v50 = vadd.f32 %v8029_v41, %v8028_v39  ;;  %v9958_v39 = vld [vmem:[#allocation2 + $0x460] ss:$16 sps:$4 sm:$0xff]   ;;  %v12715_v0 = vld [vmem:[#allocation33_spill] sm:$0xff] }
 0x2c5   :  { %v8031_v18 = vpop.f32.mrf.mxu0 }
 0x2c6   :  { %9174 = vmatprep.mubr.msk.bf16.mxu0 %vm1174_vm1, %v1817_v15  ;;  %v1805_v49 = vadd.f32 %v8094_v24, %v8030_v50  ;;  %v12717_v24 = vld [vmem:[#allocation35_spill] sm:$0xff] }
 0x2c7   :  { %v8032_v45 = vpop.f32.mrf.mxu0 }
 0x2c8   :  { %v8033_v27 = vadd.f32 %v8032_v45, %v8031_v18  ;;  %v12716_v18 = vld [vmem:[#allocation34_spill] sm:$0xff] }
 0x2ca   :  { %v1808_v55 = vadd.f32 %v8097_v48, %v8033_v27 }
 0x2cc   :  { %v1818_v6 = vpack.c.bf16 %v1808_v55, %v1805_v49  ;;  %v9966_v49 = vld [vmem:[#allocation2 + $0x484] ss:$16 sps:$4 sm:$0xff]   ;;  %v9964_v55 = vld [vmem:[#allocation2 + $0x480] ss:$16 sps:$4 sm:$0xff]  }
 0x2ce   :  { %9175 = vmatmul.mubr.msk.bf16.gmra.mxu0 %vm1174_vm1, %v1818_v6 }
 0x2cf   :  { %2283 = vmatprep.mubr.bf16.mxu0 %v9906_v52 }
 0x2d6   :  { %2284 = vmatmul.mubr.bf16.vlgmr.msra.gmra.mxu0 %v9904_v33  ;;  %v9972_v33 = vld [vmem:[#allocation2 + $0x4a4] ss:$16 sps:$4 sm:$0xff]  }
 0x2d7   :  { %2291 = vmatprep.mubr.bf16.mxu0 %v9912_v35  ;;  %8245 = vmatpush3.bf16.msra.mxu0 %v10998_v29  ;;  %v9922_v29 = vld [vmem:[#allocation2 + $0x368] ss:$16 sps:$4 sm:$0xff]  }
 0x2d8   :  { %8246 = vmatprep.subr.bf16.mxu0 %v11004_v32  ;;  %v9930_v32 = vld [vmem:[#allocation2 + $0x38c] ss:$16 sps:$4 sm:$0xff]  }
 0x2db   :  { %8247 = vmatpush3.bf16.msra.mxu0 %v11010_v44  ;;  %v9928_v44 = vld [vmem:[#allocation2 + $0x388] ss:$16 sps:$4 sm:$0xff]  }
 0x2dc   :  { %8248 = vmatprep.subr.bf16.mxu0 %v11016_v47  ;;  %v9936_v47 = vld [vmem:[#allocation2 + $0x3ac] ss:$16 sps:$4 sm:$0xff]  }
 0x2de   :  { %2292 = vmatmul.mubr.bf16.gmra.mxu0 %v9910_v5  ;;  %v9970_v5 = vld [vmem:[#allocation2 + $0x4a0] ss:$16 sps:$4 sm:$0xff]  }
 0x2df   :  { %2299 = vmatprep.mubr.bf16.mxu0 %v9918_v37  ;;  %8249 = vmatpush3.bf16.msra.mxu0 %v11025_v58  ;;  %v12709_v58 = vld [vmem:[#allocation23_spill] sm:$0xff] }
 0x2e0   :  { %8250 = vmatprep.subr.bf16.mxu0 %v11031_v60  ;;  %v9934_v60 = vld [vmem:[#allocation2 + $0x3a8] ss:$16 sps:$4 sm:$0xff]  }
 0x2e3   :  { %8251 = vmatpush3.bf16.msra.mxu0 %v11039_v8  ;;  %v9939_v8 = vld [vmem:[#allocation2 + $0x3cc] ss:$16 sps:$4 sm:$0xff]  }
 0x2e4   :  { %8252 = vmatprep.subr.bf16.mxu0 %v11045_v11  ;;  %v9937_v11 = vld [vmem:[#allocation2 + $0x3c8] ss:$16 sps:$4 sm:$0xff]  }
 0x2e6   :  { %2300 = vmatmul.mubr.bf16.gmra.mxu0 %v9916_v36  ;;  %v12719_v36 = vld [vmem:[#allocation37_spill] sm:$0xff] }
 0x2e7   :  { %2307 = vmatprep.mubr.bf16.mxu0 %v9924_v14  ;;  %8253 = vmatpush3.bf16.msra.mxu0 %v11054_v23  ;;  %v2357_v23 = vld [vmem:[#allocation5 + $0xc] sm:$0xf] }
 0x2e8   :  { %8254 = vmatprep.subr.bf16.mxu0 %v11060_v26  ;;  %9695 = vmatprep.subr.msk.bf16.mxu1 %vm1199_vm0, %v2357_v23  ;;  %v2383_v26 = vsel %vm1199_vm0, %v2357_v23, 0  ;;  %v9978_v23 = vld [vmem:[#allocation2 + $0x4c4] ss:$16 sps:$4 sm:$0xff]  }
 0x2e9   :  { %9179 = vmatpush3.bf16.msra.mxu1 %v2383_v26  ;;  %v9976_v26 = vld [vmem:[#allocation2 + $0x4c0] ss:$16 sps:$4 sm:$0xff]  }
 0x2eb   :  { %8255 = vmatpush3.bf16.msra.mxu0 %v11068_v40  ;;  %v12710_v40 = vld [vmem:[#allocation24_spill] sm:$0xff] }
 0x2ec   :  { %8256 = vmatprep.subr.bf16.mxu0 %v11074_v42  ;;  %8308 = vmatprep.subr.bf16.mxu1 %v12710_v40  ;;  %v11290_v42 = vpop.f32.mrf.mxu1 }
 0x2ee   :  { %2308 = vmatmul.mubr.bf16.gmra.mxu0 %v9922_v29 }
 0x2ef   :  { %2315 = vmatprep.mubr.bf16.mxu0 %v9930_v32  ;;  %8257 = vmatpush3.bf16.msra.mxu0 %v11083_v54  ;;  %v11292_v54 = vpop.f32.mrf.mxu1 }
 0x2f0   :  { %8258 = vmatprep.subr.bf16.mxu0 %v11089_v57 }
 0x2f1   :  { %v11294_v57 = vpop.f32.mrf.mxu1 }
 0x2f3   :  { %8259 = vmatpush3.bf16.msra.mxu0 %v12709_v58  ;;  %v11296_v16 = vpop.f32.mrf.mxu1 }
 0x2f5   :  { %v11298_v43 = vpop.f32.mrf.mxu1 }
 0x2f6   :  { %2316 = vmatmul.mubr.bf16.gmra.mxu0 %v9928_v44  ;;  %v12720_v44 = vld [vmem:[#allocation38_spill] sm:$0xff] }
 0x2f7   :  { %2323 = vmatprep.mubr.bf16.mxu0 %v9936_v47  ;;  %v11300_v1 = vpop.f32.mrf.mxu1 }
 0x2f9   :  { %v11302_v21 = vpop.f32.mrf.mxu1 }
 0x2fb   :  { %v11304_v38 = vpop.f32.mrf.mxu1 }
 0x2fd   :  { %v11306_v63 = vpop.f32.mrf.mxu1 }
 0x2fe   :  { %2324 = vmatmul.mubr.bf16.gmra.mxu0 %v9934_v60  ;;  %v12721_v60 = vld [vmem:[#allocation39_spill] sm:$0xff] }
 0x2ff   :  { %2331 = vmatprep.mubr.bf16.mxu0 %v9939_v8  ;;  %v11311_v31 = vpop.f32.mrf.mxu1 }
 0x301   :  { %v11319_v3 = vpop.f32.mrf.mxu1 }
 0x303   :  { %v11321_v7 = vpop.f32.mrf.mxu1 }
 0x305   :  { %v11323_v28 = vpop.f32.mrf.mxu1 }
 0x306   :  { %2332 = vmatmul.mubr.bf16.gmra.mxu0 %v9937_v11 }
 0x307   :  { %2723 = vmatprep.mubr.bf16.mxu0 %v9942_v46  ;;  %v11330_v15 = vpop.f32.mrf.mxu1 }
 0x309   :  { %v11338_v27 = vpop.f32.mrf.mxu1 }
 0x30b   :  { %v11340_v52 = vpop.f32.mrf.mxu1 }
 0x30d   :  { %v11342_v6 = vpop.f32.mrf.mxu1 }
 0x30e   :  { %2724 = vmatmul.mubr.bf16.vlgmr.msra.gmra.mxu0 %v9940_v61  ;;  %v9984_v61 = vld [vmem:[#allocation2 + $0x4e4] ss:$16 sps:$4 sm:$0xff]  }
 0x30f   :  { %2731 = vmatprep.mubr.bf16.mxu0 %v9948_v53  ;;  %v11349_v29 = vpop.f32.mrf.mxu1 }
 0x311   :  { %v11357_v11 = vpop.f32.mrf.mxu1 }
 0x313   :  { %v11359_v40 = vpop.f32.mrf.mxu1 }
 0x315   :  { %v11361_v46 = vpop.f32.mrf.mxu1 }
 0x316   :  { %2732 = vmatmul.mubr.bf16.gmra.mxu0 %v9946_v10  ;;  %v9982_v10 = vld [vmem:[#allocation2 + $0x4e0] ss:$16 sps:$4 sm:$0xff]  }
 0x317   :  { %2739 = vmatprep.mubr.bf16.mxu0 %v9954_v30 }
 0x31e   :  { %2740 = vmatmul.mubr.bf16.gmra.mxu0 %v9952_v12 }
 0x31f   :  { %2747 = vmatprep.mubr.bf16.mxu0 %v9960_v25  ;;  %v12725_v25 = vld [vmem:[#allocation43_spill] sm:$0xff] }
 0x326   :  { %2748 = vmatmul.mubr.bf16.gmra.mxu0 %v9958_v39 }
 0x327   :  { %2755 = vmatprep.mubr.bf16.mxu0 %v9966_v49 }
 0x32e   :  { %2756 = vmatmul.mubr.bf16.gmra.mxu0 %v9964_v55 }
 0x32f   :  { %2763 = vmatprep.mubr.bf16.mxu0 %v9972_v33 }
 0x336   :  { %2764 = vmatmul.mubr.bf16.gmra.mxu0 %v9970_v5  ;;  %v8125_v5 = vadd.f32 %v11292_v54, %v11290_v42  ;;  %v8131_v42 = vadd.f32 %v11300_v1, %v11298_v43  ;;  %v8134_v54 = vadd.f32 %v11304_v38, %v11302_v21  ;;  %v11405_v43 = vld [vmem:[%s12665_s0 + $0xb8] sm:$0xff]   ;;  %v8137_v1 = vadd.f32 %v11311_v31, %v11306_v63  ;;  %v11423_v63 = vld [vmem:[%s12665_s0 + $0xb0] sm:$0xff]  }
 0x337   :  { %2771 = vmatprep.mubr.bf16.mxu0 %v9978_v23  ;;  %v8140_v21 = vadd.f32 %v11321_v7, %v11319_v3  ;;  %v11429_v3 = vld [vmem:[%s12665_s0 + $0xe8] sm:$0xff]  }
 0x33e   :  { %2772 = vmatmul.mubr.bf16.gmra.mxu0 %v9976_v26 }
 0x33f   :  { %2779 = vmatprep.mubr.bf16.mxu0 %v9984_v61 }
 0x346   :  { %2780 = vmatmul.mubr.bf16.gmra.mxu0 %v9982_v10 }
 0x35e   :  { %v9164_v56 = vpop.f32.mrf.mxu0 }
 0x35f   :  { %v11309_v22 = vadd.f32 %v9164_v56, %v12711_v13  ;;  %v12723_v13 = vld [vmem:[#allocation41_spill] sm:$0xff] }
 0x360   :  { %v1882_v34 = vpop.f32.mrf.mxu0 }
 0x361   :  { %v11314_v4 = vadd.f32 %v1882_v34, %v12712_v62  ;;  %v11368_v62 = vpop.f32.mrf.mxu1 }
 0x362   :  { %v9165_v59 = vpop.f32.mrf.mxu0 }
 0x363   :  { %v11317_v9 = vadd.f32 %v9165_v59, %v12713_v2  ;;  %v12724_v2 = vld [vmem:[#allocation42_spill] sm:$0xff] }
 0x364   :  { %v11325_v17 = vpop.f32.mrf.mxu0 }
 0x365   :  { %12714 = vst [vmem:[#allocation23_spill] sm:$0xff] %v11325_v17  ;;  %v10012_v17 = vld [vmem:[#allocation2 + $0x580] ss:$16 sps:$4 sm:$0xff]  }
 0x36e   :  { %v9168_v20 = vpop.f32.mrf.mxu0 }
 0x36f   :  { %v11328_v41 = vadd.f32 %v9168_v20, %v12715_v0  ;;  %v11376_v20 = vpop.f32.mrf.mxu1 }
 0x370   :  { %v1898_v19 = vpop.f32.mrf.mxu0 }
 0x371   :  { %v11333_v50 = vadd.f32 %v1898_v19, %v12716_v18  ;;  %v11380_v18 = vpop.f32.mrf.mxu1 }
 0x372   :  { %v9169_v45 = vpop.f32.mrf.mxu0 }
 0x373   :  { %v11336_v48 = vadd.f32 %v9169_v45, %v12717_v24  ;;  %v11382_v55 = vpop.f32.mrf.mxu1 }
 0x374   :  { %v11344_v35 = vpop.f32.mrf.mxu0 }
 0x375   :  { %12718 = vst [vmem:[#allocation24_spill] sm:$0xff] %v11344_v35 }
 0x37e   :  { %v9172_v37 = vpop.f32.mrf.mxu0 }
 0x37f   :  { %v11347_v14 = vadd.f32 %v9172_v37, %v12719_v36  ;;  %v8128_v37 = vadd.f32 %v11296_v16, %v11294_v57 }
 0x380   :  { %v1914_v32 = vpop.f32.mrf.mxu0 }
 0x381   :  { %v11352_v47 = vadd.f32 %v1914_v32, %v12720_v44 }
 0x382   :  { %v9173_v58 = vpop.f32.mrf.mxu0 }
 0x383   :  { %v11355_v8 = vadd.f32 %v9173_v58, %v12721_v60  ;;  %v11388_v60 = vpop.f32.mrf.mxu1 }
 0x384   :  { %v11363_v53 = vpop.f32.mrf.mxu0 }
 0x385   :  { %12722 = vst [vmem:[#allocation29_spill] sm:$0xff] %v11363_v53 }
 0x38e   :  { %v9176_v56 = vpop.f32.mrf.mxu0 }
 0x38f   :  { %v11366_v34 = vadd.f32 %v9176_v56, %v12723_v13  ;;  %v11391_v56 = vpop.f32.mrf.mxu1 }
 0x390   :  { %v1930_v59 = vpop.f32.mrf.mxu0 }
 0x391   :  { %v11371_v30 = vadd.f32 %v1930_v59, %v12724_v2 }
 0x392   :  { %v9177_v12 = vpop.f32.mrf.mxu0 }
 0x393   :  { %v11374_v39 = vadd.f32 %v9177_v12, %v12725_v25  ;;  %v11397_v12 = vpop.f32.mrf.mxu1 }
 0x394   :  { %v11378_v0 = vpop.f32.mrf.mxu0 }
 0x395   :  { %12726 = vst [vmem:[#allocation30_spill] sm:$0xff] %v11378_v0  ;;  %v10006_v0 = vld [vmem:[#allocation2 + $0x560] ss:$16 sps:$4 sm:$0xff]  }
 0x396   :  { %v8187_v19 = vpop.f32.mrf.mxu0 }
 0x398   :  { %v8188_v45 = vpop.f32.mrf.mxu0 }
 0x399   :  { %v8189_v49 = vadd.f32 %v8188_v45, %v8187_v19 }
 0x39a   :  { %v8190_v24 = vpop.f32.mrf.mxu0 }
 0x39b   :  { %v2286_v44 = vadd.f32 %v8189_v49, %v8125_v5  ;;  %v11400_v49 = vpop.f32.mrf.mxu1  ;;  %v11415_v5 = vld [vmem:[%s12665_s0 + $0xf0] sm:$0xff]  }
 0x39c   :  { %v8191_v33 = vpop.f32.mrf.mxu0 }
 0x39d   :  { %v8192_v36 = vadd.f32 %v8191_v33, %v8190_v24 }
 0x39e   :  { %v8193_v32 = vpop.f32.mrf.mxu0 }
 0x39f   :  { %v2289_v58 = vadd.f32 %v8192_v36, %v8128_v37 }
 0x3a0   :  { %v8194_v23 = vpop.f32.mrf.mxu0 }
 0x3a1   :  { %v2348_v26 = vpack.c.bf16 %v2289_v58, %v2286_v44  ;;  %v8195_v10 = vadd.f32 %v8194_v23, %v8193_v32  ;;  %v11418_v44 = vpop.f32.mrf.mxu1 }
 0x3a2   :  { %v8196_v61 = vpop.f32.mrf.mxu0 }
 0x3a3   :  { %9180 = vmatprep.mubr.msk.bf16.mxu1 %vm1174_vm1, %v2348_v26  ;;  %v2294_v59 = vadd.f32 %v8195_v10, %v8131_v42  ;;  %v11433_v26 = vpop.f32.mrf.mxu1  ;;  %v11438_v10 = vld [vmem:[%s12665_s0 + $0xa8] sm:$0xff]   ;;  %v8146_v42 = vadd.f32 %v11340_v52, %v11338_v27  ;;  %v11460_v27 = vld [vmem:[%s12665_s0 + $0xd8] sm:$0xff]  }
 0x3a4   :  { %v8197_v13 = vpop.f32.mrf.mxu0 }
 0x3a5   :  { %v8198_v57 = vadd.f32 %v8197_v13, %v8196_v61  ;;  %v8143_v13 = vadd.f32 %v11330_v15, %v11323_v28  ;;  %v11454_v28 = vld [vmem:[%s12665_s0 + $0xa0] sm:$0xff]  }
 0x3a6   :  { %v8199_v16 = vpop.f32.mrf.mxu0 }
 0x3a7   :  { %v2297_v2 = vadd.f32 %v8198_v57, %v8134_v54  ;;  %v11448_v57 = vld [vmem:[%s12665_s0 + $0xe0] sm:$0xff]  }
 0x3a8   :  { %v8200_v25 = vpop.f32.mrf.mxu0 }
 0x3a9   :  { %v2349_v19 = vpack.c.bf16 %v2297_v2, %v2294_v59  ;;  %v8201_v24 = vadd.f32 %v8200_v25, %v8199_v16  ;;  %v8169_v25 = vpop.f32.mrf.mxu1 }
 0x3aa   :  { %v8202_v45 = vpop.f32.mrf.mxu0 }
 0x3ab   :  { %9181 = vmatmul.mubr.msk.bf16.vlgmr.msra.gmra.mxu1 %vm1174_vm1, %v2349_v19  ;;  %v2302_v36 = vadd.f32 %v8201_v24, %v8137_v1  ;;  %v8229_v24 = vpop.f32.mrf.mxu1  ;;  %v11467_v1 = vld [vmem:[%s12665_s0 + $0x98] sm:$0xff]  }
 0x3ac   :  { %v8203_v33 = vpop.f32.mrf.mxu0  ;;  %8309 = vmatpush3.bf16.msra.mxu1 %v11405_v43 }
 0x3ad   :  { %v8204_v38 = vadd.f32 %v8203_v33, %v8202_v45  ;;  %8310 = vmatprep.subr.bf16.mxu1 %v11415_v5 }
 0x3ae   :  { %v8205_v37 = vpop.f32.mrf.mxu0 }
 0x3af   :  { %v2305_v32 = vadd.f32 %v8204_v38, %v8140_v21  ;;  %v8149_v21 = vadd.f32 %v11349_v29, %v11342_v6  ;;  %v8152_v38 = vadd.f32 %v11359_v40, %v11357_v11  ;;  %v11483_v6 = vld [vmem:[%s12665_s0 + $0x90] sm:$0xff]   ;;  %v11489_v11 = vld [vmem:[%s12665_s0 + $0xc8] sm:$0xff]  }
 0x3b0   :  { %v8206_v58 = vpop.f32.mrf.mxu0  ;;  %8311 = vmatpush3.bf16.msra.mxu1 %v11423_v63 }
 0x3b1   :  { %v2350_v31 = vpack.c.bf16 %v2305_v32, %v2302_v36  ;;  %8312 = vmatprep.subr.bf16.mxu1 %v11429_v3  ;;  %v8207_v23 = vadd.f32 %v8206_v58, %v8205_v37  ;;  %v11477_v36 = vld [vmem:[%s12665_s0 + $0xd0] sm:$0xff]  }
 0x3b2   :  { %v8208_v7 = vpop.f32.mrf.mxu0 }
 0x3b3   :  { %9184 = vmatprep.mubr.msk.bf16.mxu1 %vm1174_vm1, %v2350_v31  ;;  %v2310_v59 = vadd.f32 %v8207_v23, %v8143_v13  ;;  %v8230_v31 = vpop.f32.mrf.mxu1 }
 0x3b4   :  { %v8209_v61 = vpop.f32.mrf.mxu0  ;;  %8313 = vmatpush3.bf16.msra.mxu1 %v11438_v10 }
 0x3b5   :  { %v8210_v54 = vadd.f32 %v8209_v61, %v8208_v7  ;;  %8314 = vmatprep.subr.bf16.mxu1 %v11448_v57  ;;  %v8232_v61 = vpop.f32.mrf.mxu1 }
 0x3b6   :  { %v8211_v16 = vpop.f32.mrf.mxu0 }
 0x3b7   :  { %v2313_v2 = vadd.f32 %v8210_v54, %v8146_v42  ;;  %v11496_v54 = vld [vmem:[%s12665_s0 + $0x88] sm:$0xff]  }
 0x3b8   :  { %v8212_v19 = vpop.f32.mrf.mxu0  ;;  %8315 = vmatpush3.bf16.msra.mxu1 %v11454_v28 }
 0x3b9   :  { %v2351_v15 = vpack.c.bf16 %v2313_v2, %v2310_v59  ;;  %8316 = vmatprep.subr.bf16.mxu1 %v11460_v27  ;;  %v8213_v45 = vadd.f32 %v8212_v19, %v8211_v16  ;;  %v8155_v16 = vadd.f32 %v11368_v62, %v11361_v46  ;;  %v8158_v59 = vadd.f32 %v11380_v18, %v11376_v20  ;;  %v11506_v19 = vld [vmem:[%s12665_s0 + $0xc0] sm:$0xff]  }
 0x3ba   :  { %v8214_v52 = vpop.f32.mrf.mxu0  ;;  %v11512_v46 = vld [vmem:[%s12665_s0 + $0x80] sm:$0xff]   ;;  %v8167_v20 = vadd.f32 %v11418_v44, %v11400_v49  ;;  %v8170_v18 = vadd.f32 %v8169_v25, %v11433_v26  ;;  %v9945_v26 = vld [vmem:[#allocation2 + $0x40c] ss:$16 sps:$4 sm:$0xff]  }
 0x3bb   :  { %9185 = vmatmul.mubr.msk.bf16.gmra.mxu1 %vm1174_vm1, %v2351_v15  ;;  %v2318_v58 = vadd.f32 %v8213_v45, %v8149_v21 }
 0x3bc   :  { %v8215_v33 = vpop.f32.mrf.mxu0  ;;  %8317 = vmatpush3.bf16.msra.mxu1 %v11467_v1 }
 0x3bd   :  { %v8216_v37 = vadd.f32 %v8215_v33, %v8214_v52  ;;  %8318 = vmatprep.subr.bf16.mxu1 %v11477_v36  ;;  %v8233_v52 = vpop.f32.mrf.mxu1 }
 0x3be   :  { %v8217_v32 = vpop.f32.mrf.mxu0 }
 0x3bf   :  { %v2321_v7 = vadd.f32 %v8216_v37, %v8152_v38  ;;  %v8231_v38 = vadd.f32 %v8230_v31, %v8229_v24  ;;  %v8234_v37 = vadd.f32 %v8233_v52, %v8232_v61  ;;  %v9943_v24 = vld [vmem:[#allocation2 + $0x408] ss:$16 sps:$4 sm:$0xff]   ;;  %v9951_v31 = vld [vmem:[#allocation2 + $0x42c] ss:$16 sps:$4 sm:$0xff]   ;;  %v11541_v61 = vld [vmem:[%s12665_s0 + $0x30] sm:$0xff]  }
 0x3c0   :  { %v8218_v23 = vpop.f32.mrf.mxu0  ;;  %8319 = vmatpush3.bf16.msra.mxu1 %v11483_v6  ;;  %v9955_v52 = vld [vmem:[#allocation2 + $0x448] ss:$16 sps:$4 sm:$0xff]  }
 0x3c1   :  { %v2352_v29 = vpack.c.bf16 %v2321_v7, %v2318_v58  ;;  %8320 = vmatprep.subr.bf16.mxu1 %v11489_v11  ;;  %v8219_v13 = vadd.f32 %v8218_v23, %v8217_v32  ;;  %v8161_v23 = vadd.f32 %v11388_v60, %v11382_v55  ;;  %v11529_v55 = vld [vmem:[%s12665_s0 + $0x38] sm:$0xff]   ;;  %v11535_v60 = vld [vmem:[%s12665_s0 + $0x70] sm:$0xff]  }
 0x3c2   :  { %v8220_v40 = vpop.f32.mrf.mxu0 }
 0x3c3   :  { %9188 = vmatprep.mubr.msk.bf16.mxu1 %vm1174_vm1, %v2352_v29  ;;  %v2326_v45 = vadd.f32 %v8219_v13, %v8155_v16  ;;  %v8164_v29 = vadd.f32 %v11397_v12, %v11391_v56  ;;  %v2342_v13 = vadd.f32 %v8231_v38, %v8167_v20  ;;  %v9949_v56 = vld [vmem:[#allocation2 + $0x428] ss:$16 sps:$4 sm:$0xff]   ;;  %v9957_v12 = vld [vmem:[#allocation2 + $0x44c] ss:$16 sps:$4 sm:$0xff]   ;;  %v11583_v20 = vld [vmem:[%s12665_s0 + $0x50] sm:$0xff]  }
 0x3c4   :  { %v8221_v42 = vpop.f32.mrf.mxu0  ;;  %8321 = vmatpush3.bf16.msra.mxu1 %v11496_v54  ;;  %v9969_v38 = vld [vmem:[#allocation2 + $0x48c] ss:$16 sps:$4 sm:$0xff]  }
 0x3c5   :  { %v8222_v2 = vadd.f32 %v8221_v42, %v8220_v40  ;;  %8322 = vmatprep.subr.bf16.mxu1 %v11506_v19  ;;  %v2345_v42 = vadd.f32 %v8234_v37, %v8170_v18  ;;  %v9961_v18 = vld [vmem:[#allocation2 + $0x468] ss:$16 sps:$4 sm:$0xff]   ;;  %v11589_v37 = vld [vmem:[%s12665_s0 + $0x10] sm:$0xff]  }
 0x3c6   :  { %v8223_v15 = vpop.f32.mrf.mxu0 }
 0x3c7   :  { %v2329_v33 = vadd.f32 %v8222_v2, %v8158_v59  ;;  %v2355_v25 = vpack.c.bf16 %v2345_v42, %v2342_v13  ;;  %v11547_v59 = vld [vmem:[%s12665_s0 + $0x68] sm:$0xff]  }
 0x3c8   :  { %v8224_v21 = vpop.f32.mrf.mxu0  ;;  %8323 = vmatpush3.bf16.msra.mxu1 %v11512_v46  ;;  %v11553_v2 = vld [vmem:[%s12665_s0 + $0x28] sm:$0xff]  }
 0x3c9   :  { %v2353_v62 = vpack.c.bf16 %v2329_v33, %v2326_v45  ;;  %8381 = vmatprep.subr.bf16.mxu1 %v11266_v51  ;;  %v8225_v58 = vadd.f32 %v8224_v21, %v8223_v15  ;;  %v11559_v15 = vld [vmem:[%s12665_s0 + $0x60] sm:$0xff]   ;;  %v9963_v45 = vld [vmem:[#allocation2 + $0x46c] ss:$16 sps:$4 sm:$0xff]   ;;  %v9973_v13 = vld [vmem:[#allocation2 + $0x4a8] ss:$16 sps:$4 sm:$0xff]  }
 0x3ca   :  { %v8226_v32 = vpop.f32.mrf.mxu0  ;;  %v11565_v33 = vld [vmem:[%s12665_s0 + $0x20] sm:$0xff]   ;;  %v11571_v21 = vld [vmem:[%s12665_s0 + $0x58] sm:$0xff]  }
 0x3cb   :  { %9189 = vmatmul.mubr.msk.bf16.gmra.mxu1 %vm1174_vm1, %v2353_v62  ;;  %v2334_v16 = vadd.f32 %v8225_v58, %v8161_v23  ;;  %v11577_v62 = vld [vmem:[%s12665_s0 + $0x18] sm:$0xff]   ;;  %v11601_v58 = vld [vmem:[%s12665_s0 + $0x8] sm:$0xff]  }
 0x3cc   :  { %v8227_v7 = vpop.f32.mrf.mxu0  ;;  %v9967_v23 = vld [vmem:[#allocation2 + $0x488] ss:$16 sps:$4 sm:$0xff]   ;;  %v9981_v42 = vld [vmem:[#allocation2 + $0x4cc] ss:$16 sps:$4 sm:$0xff]  }
 0x3cd   :  { %v8228_v40 = vadd.f32 %v8227_v7, %v8226_v32  ;;  %v11595_v32 = vld [vmem:[%s12665_s0 + $0x48] sm:$0xff]   ;;  %v11607_v7 = vld [vmem:[%s12665_s0 + $0x40] sm:$0xff]  }
 0x3ce   :  { %12727 = vst [vmem:[#allocation31_spill] sm:$0xff] %v11607_v7 }
 0x3cf   :  { %v2337_v49 = vadd.f32 %v8228_v40, %v8164_v29  ;;  %v9975_v29 = vld [vmem:[#allocation2 + $0x4ac] ss:$16 sps:$4 sm:$0xff]   ;;  %v11613_v40 = vld [vmem:[%s12665_s0] sm:$0xff]  }
 0x3d0   :  { %12728 = vst [vmem:[#allocation33_spill] sm:$0xff] %v11613_v40 }
 0x3d1   :  { %v2354_v44 = vpack.c.bf16 %v2337_v49, %v2334_v16  ;;  %v9979_v16 = vld [vmem:[#allocation2 + $0x4c8] ss:$16 sps:$4 sm:$0xff]   ;;  %v9987_v49 = vld [vmem:[#allocation2 + $0x4ec] ss:$16 sps:$4 sm:$0xff]  }
 0x3d3   :  { %9192 = vmatprep.mubr.msk.bf16.mxu1 %vm1174_vm1, %v2354_v44  ;;  %v2894_v44 = vld [vmem:[#allocation5 + $0x10] sm:$0xf] }
 0x3d4   :  { %9193 = vmatmul.mubr.msk.bf16.gmra.mxu1 %vm1174_vm1, %v2355_v25  ;;  %9696 = vmatprep.subr.msk.bf16.mxu0 %vm1199_vm0, %v2894_v44  ;;  %v11621_v25 = vld [vmem:[%s12665_s0 + $0xf8] sm:$0xff]  }
 0x3d5   :  { %2820 = vmatprep.mubr.bf16.mxu1 %v9945_v26  ;;  %v2920_v26 = vsel %vm1199_vm0, %v2894_v44, 0  ;;  %12729 = vst [vmem:[#allocation34_spill] sm:$0xff] %v11621_v25 }
 0x3d6   :  { %9197 = vmatpush3.bf16.msra.mxu0 %v2920_v26 }
 0x3d7   :  { %8445 = vmatprep.subr.bf16.mxu0 %v11621_v25 }
 0x3dc   :  { %2821 = vmatmul.mubr.bf16.vlgmr.msra.gmra.mxu1 %v9943_v24  ;;  %v9985_v24 = vld [vmem:[#allocation2 + $0x4e8] ss:$16 sps:$4 sm:$0xff]  }
 0x3dd   :  { %2828 = vmatprep.mubr.bf16.mxu1 %v9951_v31  ;;  %8382 = vmatpush3.bf16.msra.mxu1 %v11529_v55  ;;  %v11624_v31 = vpop.f32.mrf.mxu0 }
 0x3de   :  { %8383 = vmatprep.subr.bf16.mxu1 %v11535_v60 }
 0x3e1   :  { %8384 = vmatpush3.bf16.msra.mxu1 %v11541_v61 }
 0x3e2   :  { %8385 = vmatprep.subr.bf16.mxu1 %v11547_v59 }
 0x3e4   :  { %2829 = vmatmul.mubr.bf16.gmra.mxu1 %v9949_v56  ;;  %v11626_v56 = vpop.f32.mrf.mxu0 }
 0x3e5   :  { %2836 = vmatprep.mubr.bf16.mxu1 %v9957_v12  ;;  %8386 = vmatpush3.bf16.msra.mxu1 %v11553_v2  ;;  %v9990_v12 = vld [vmem:[#allocation2 + $0x504] ss:$16 sps:$4 sm:$0xff]  }
 0x3e6   :  { %8387 = vmatprep.subr.bf16.mxu1 %v11559_v15 }
 0x3e9   :  { %8388 = vmatpush3.bf16.msra.mxu1 %v11565_v33 }
 0x3ea   :  { %8389 = vmatprep.subr.bf16.mxu1 %v11571_v21 }
 0x3ec   :  { %2837 = vmatmul.mubr.bf16.gmra.mxu1 %v9955_v52  ;;  %v9988_v52 = vld [vmem:[#allocation2 + $0x500] ss:$16 sps:$4 sm:$0xff]  }
 0x3ed   :  { %2844 = vmatprep.mubr.bf16.mxu1 %v9963_v45  ;;  %8390 = vmatpush3.bf16.msra.mxu1 %v11577_v62  ;;  %v11628_v45 = vpop.f32.mrf.mxu0 }
 0x3ee   :  { %8391 = vmatprep.subr.bf16.mxu1 %v11583_v20 }
 0x3f1   :  { %8392 = vmatpush3.bf16.msra.mxu1 %v11589_v37 }
 0x3f2   :  { %8393 = vmatprep.subr.bf16.mxu1 %v11595_v32 }
 0x3f4   :  { %2845 = vmatmul.mubr.bf16.gmra.mxu1 %v9961_v18  ;;  %v11630_v18 = vpop.f32.mrf.mxu0 }
 0x3f5   :  { %2852 = vmatprep.mubr.bf16.mxu1 %v9969_v38  ;;  %8394 = vmatpush3.bf16.msra.mxu1 %v11601_v58  ;;  %v9996_v38 = vld [vmem:[#allocation2 + $0x524] ss:$16 sps:$4 sm:$0xff]  }
 0x3f6   :  { %8395 = vmatprep.subr.bf16.mxu1 %v11607_v7 }
 0x3f9   :  { %8396 = vmatpush3.bf16.msra.mxu1 %v11613_v40 }
 0x3fc   :  { %2853 = vmatmul.mubr.bf16.gmra.mxu1 %v9967_v23  ;;  %v9994_v23 = vld [vmem:[#allocation2 + $0x520] ss:$16 sps:$4 sm:$0xff]  }
 0x3fd   :  { %2860 = vmatprep.mubr.bf16.mxu1 %v9975_v29 }
 0x404   :  { %2861 = vmatmul.mubr.bf16.gmra.mxu1 %v9973_v13 }
 0x405   :  { %2868 = vmatprep.mubr.bf16.mxu1 %v9981_v42  ;;  %v11635_v42 = vpop.f32.mrf.mxu0 }
 0x40c   :  { %2869 = vmatmul.mubr.bf16.gmra.mxu1 %v9979_v16 }
 0x40d   :  { %2876 = vmatprep.mubr.bf16.mxu1 %v9987_v49 }
 0x414   :  { %2877 = vmatmul.mubr.bf16.gmra.mxu1 %v9985_v24  ;;  %v11643_v24 = vpop.f32.mrf.mxu0 }
 0x415   :  { %3260 = vmatprep.mubr.bf16.mxu1 %v9990_v12  ;;  %v10002_v12 = vld [vmem:[#allocation2 + $0x544] ss:$16 sps:$4 sm:$0xff]  }
 0x41c   :  { %3261 = vmatmul.mubr.bf16.vlgmr.msra.gmra.mxu1 %v9988_v52  ;;  %v10000_v52 = vld [vmem:[#allocation2 + $0x540] ss:$16 sps:$4 sm:$0xff]  }
 0x41d   :  { %3268 = vmatprep.mubr.bf16.mxu1 %v9996_v38  ;;  %v11645_v38 = vpop.f32.mrf.mxu0 }
 0x424   :  { %3269 = vmatmul.mubr.bf16.gmra.mxu1 %v9994_v23  ;;  %v10008_v23 = vld [vmem:[#allocation2 + $0x564] ss:$16 sps:$4 sm:$0xff]  }
 0x425   :  { %3276 = vmatprep.mubr.bf16.mxu1 %v10002_v12 }
 0x42c   :  { %3277 = vmatmul.mubr.bf16.gmra.mxu1 %v10000_v52 }
 0x42d   :  { %3284 = vmatprep.mubr.bf16.mxu1 %v10008_v23  ;;  %v10020_v23 = vld [vmem:[#allocation2 + $0x5a4] ss:$16 sps:$4 sm:$0xff]  }
 0x434   :  { %3285 = vmatmul.mubr.bf16.gmra.mxu1 %v10006_v0 }
 0x46b   :  { %v9182_v29 = vpop.f32.mrf.mxu1 }
 0x46c   :  { %v11633_v13 = vadd.f32 %v9182_v29, %v11309_v22  ;;  %v11647_v22 = vpop.f32.mrf.mxu0 }
 0x46d   :  { %v2419_v16 = vpop.f32.mrf.mxu1 }
 0x46e   :  { %12730 = vst [vmem:[#allocation35_spill] sm:$0xff] %v11633_v13  ;;  %v11638_v49 = vadd.f32 %v2419_v16, %v11314_v4  ;;  %v11654_v16 = vpop.f32.mrf.mxu0 }
 0x46f   :  { %v9183_v44 = vpop.f32.mrf.mxu1 }
 0x470   :  { %12731 = vst [vmem:[#allocation37_spill] sm:$0xff] %v11638_v49  ;;  %v11641_v26 = vadd.f32 %v9183_v44, %v11317_v9  ;;  %v11662_v35 = vpop.f32.mrf.mxu0 }
 0x471   :  { %v11649_v29 = vpop.f32.mrf.mxu1 }
 0x472   :  { %12732 = vst [vmem:[#allocation38_spill] sm:$0xff] %v11641_v26  ;;  %12733 = vst [vmem:[#allocation39_spill] sm:$0xff] %v11649_v29  ;;  %v10014_v29 = vld [vmem:[#allocation2 + $0x584] ss:$16 sps:$4 sm:$0xff]   ;;  %v11664_v0 = vpop.f32.mrf.mxu0 }
 0x473   :  { %3292 = vmatprep.mubr.bf16.mxu1 %v10014_v29 }
 0x474   :  { %3293 = vmatmul.mubr.bf16.gmra.mxu1 %v10012_v17 }
 0x475   :  { %3300 = vmatprep.mubr.bf16.mxu1 %v10020_v23  ;;  %v10024_v23 = vld [vmem:[#allocation2 + $0x5c0] ss:$16 sps:$4 sm:$0xff]  }
 0x47b   :  { %v9186_v4 = vpop.f32.mrf.mxu1 }
 0x47c   :  { %v11652_v9 = vadd.f32 %v9186_v4, %v11328_v41  ;;  %v11666_v41 = vpop.f32.mrf.mxu0 }
 0x47d   :  { %v2435_v44 = vpop.f32.mrf.mxu1 }
 0x47e   :  { %12734 = vst [vmem:[#allocation41_spill] sm:$0xff] %v11652_v9  ;;  %v11657_v12 = vadd.f32 %v2435_v44, %v11333_v50  ;;  %v10018_v9 = vld [vmem:[#allocation2 + $0x5a0] ss:$16 sps:$4 sm:$0xff]   ;;  %v11673_v44 = vpop.f32.mrf.mxu0 }
 0x47f   :  { %v9187_v52 = vpop.f32.mrf.mxu1  ;;  %3301 = vmatmul.mubr.bf16.gmra.mxu1 %v10018_v9 }
 0x480   :  { %12735 = vst [vmem:[#allocation42_spill] sm:$0xff] %v11657_v12  ;;  %v11660_v53 = vadd.f32 %v9187_v52, %v11336_v48  ;;  %v11681_v12 = vpop.f32.mrf.mxu0 }
 0x481   :  { %v11668_v4 = vpop.f32.mrf.mxu1 }
 0x482   :  { %12736 = vst [vmem:[#allocation43_spill] sm:$0xff] %v11660_v53  ;;  %12737 = vst [vmem:[#allocation45_spill] sm:$0xff] %v11668_v4  ;;  %v10026_v4 = vld [vmem:[#allocation2 + $0x5c4] ss:$16 sps:$4 sm:$0xff]   ;;  %v11685_v9 = vpop.f32.mrf.mxu0 }
 0x483   :  { %3308 = vmatprep.mubr.bf16.mxu1 %v10026_v4 }
 0x487   :  { %3309 = vmatmul.mubr.bf16.gmra.mxu1 %v10024_v23 }
 0x48b   :  { %v9190_v50 = vpop.f32.mrf.mxu1 }
 0x48c   :  { %v11671_v48 = vadd.f32 %v9190_v50, %v11347_v14 }
 0x48d   :  { %v2451_v52 = vpop.f32.mrf.mxu1 }
 0x48e   :  { %12738 = vst [vmem:[#allocation46_spill] sm:$0xff] %v11671_v48  ;;  %v11676_v29 = vadd.f32 %v2451_v52, %v11352_v47 }
 0x48f   :  { %v9191_v17 = vpop.f32.mrf.mxu1 }
 0x490   :  { %12739 = vst [vmem:[#allocation47_spill] sm:$0xff] %v11676_v29  ;;  %v11679_v53 = vadd.f32 %v9191_v17, %v11355_v8  ;;  %v8282_v17 = vpop.f32.mrf.mxu0 }
 0x491   :  { %v11683_v26 = vpop.f32.mrf.mxu1 }
 0x492   :  { %12740 = vst [vmem:[#allocation48_spill] sm:$0xff] %v11679_v53  ;;  %12741 = vst [vmem:[#allocation49_spill] sm:$0xff] %v11683_v26  ;;  %v10032_v53 = vld [vmem:[#allocation2 + $0x5e4] ss:$16 sps:$4 sm:$0xff]   ;;  %v10030_v26 = vld [vmem:[#allocation2 + $0x5e0] ss:$16 sps:$4 sm:$0xff]   ;;  %v11698_v23 = vpop.f32.mrf.mxu0 }
 0x493   :  { %3316 = vmatprep.mubr.bf16.mxu1 %v10032_v53 }
 0x494   :  { %v9194_v14 = vpop.f32.mrf.mxu1  ;;  %3317 = vmatmul.mubr.bf16.gmra.mxu1 %v10030_v26 }
 0x495   :  { %v11688_v50 = vadd.f32 %v9194_v14, %v11366_v34 }
 0x496   :  { %v2467_v47 = vpop.f32.mrf.mxu1 }
 0x497   :  { %12742 = vst [vmem:[#allocation50_spill] sm:$0xff] %v11688_v50  ;;  %v11691_v52 = vadd.f32 %v2467_v47, %v11371_v30  ;;  %v11700_v50 = vpop.f32.mrf.mxu0 }
 0x498   :  { %v9195_v8 = vpop.f32.mrf.mxu1 }
 0x499   :  { %12743 = vst [vmem:[#allocation51_spill] sm:$0xff] %v11691_v52  ;;  %v11694_v29 = vadd.f32 %v9195_v8, %v11374_v39  ;;  %v8262_v52 = vadd.f32 %v11626_v56, %v11624_v31  ;;  %v8265_v39 = vadd.f32 %v11630_v18, %v11628_v45  ;;  %v8271_v31 = vadd.f32 %v11647_v22, %v11645_v38 }
 0x49a   :  { %v11696_v48 = vpop.f32.mrf.mxu1 }
 0x49b   :  { %12744 = vst [vmem:[#allocation52_spill] sm:$0xff] %v11694_v29  ;;  %12745 = vst [vmem:[#allocation53_spill] sm:$0xff] %v11696_v48  ;;  %v8287_v48 = vpop.f32.mrf.mxu0 }
 0x49c   :  { %v8324_v4 = vpop.f32.mrf.mxu1 }
 0x49d   :  { %v8288_v40 = vpop.f32.mrf.mxu0 }
 0x49e   :  { %v8325_v34 = vpop.f32.mrf.mxu1 }
 0x49f   :  { %v8326_v30 = vadd.f32 %v8325_v34, %v8324_v4  ;;  %v8268_v34 = vadd.f32 %v11643_v24, %v11635_v42  ;;  %v11711_v18 = vpop.f32.mrf.mxu0  ;;  %v8274_v42 = vadd.f32 %v11662_v35, %v11654_v16  ;;  %v8280_v16 = vadd.f32 %v11681_v12, %v11673_v44 }
 0x4a0   :  { %v8327_v14 = vpop.f32.mrf.mxu1  ;;  %v8286_v44 = vadd.f32 %v11700_v50, %v11698_v23 }
 0x4a1   :  { %v2823_v53 = vadd.f32 %v8326_v30, %v8262_v52 }
 0x4a2   :  { %v8328_v47 = vpop.f32.mrf.mxu1 }
 0x4a3   :  { %v8329_v8 = vadd.f32 %v8328_v47, %v8327_v14 }
 0x4a4   :  { %v8330_v29 = vpop.f32.mrf.mxu1 }
 0x4a5   :  { %v2826_v26 = vadd.f32 %v8329_v8, %v8265_v39  ;;  %v8291_v8 = vpop.f32.mrf.mxu0 }
 0x4a6   :  { %v8331_v49 = vpop.f32.mrf.mxu1 }
 0x4a7   :  { %v2885_v13 = vpack.c.bf16 %v2826_v26, %v2823_v53  ;;  %v8332_v7 = vadd.f32 %v8331_v49, %v8330_v29  ;;  %v8293_v38 = vpop.f32.mrf.mxu0 }
 0x4a8   :  { %v8333_v25 = vpop.f32.mrf.mxu1 }
 0x4a9   :  { %9198 = vmatprep.mubr.msk.bf16.mxu0 %vm1174_vm1, %v2885_v13  ;;  %v2831_v52 = vadd.f32 %v8332_v7, %v8268_v34  ;;  %v8294_v34 = vpop.f32.mrf.mxu0 }
 0x4aa   :  { %v8334_v4 = vpop.f32.mrf.mxu1 }
 0x4ab   :  { %v8335_v56 = vadd.f32 %v8334_v4, %v8333_v25  ;;  %v8277_v25 = vadd.f32 %v11666_v41, %v11664_v0  ;;  %v8283_v0 = vadd.f32 %v8282_v17, %v11685_v9  ;;  %v8289_v9 = vadd.f32 %v8288_v40, %v8287_v48 }
 0x4ac   :  { %v8336_v45 = vpop.f32.mrf.mxu1  ;;  %v8292_v40 = vadd.f32 %v8291_v8, %v11711_v18  ;;  %v8295_v48 = vadd.f32 %v8294_v34, %v8293_v38 }
 0x4ad   :  { %v2834_v14 = vadd.f32 %v8335_v56, %v8271_v31 }
 0x4ae   :  { %v8337_v30 = vpop.f32.mrf.mxu1 }
 0x4af   :  { %v2886_v47 = vpack.c.bf16 %v2834_v14, %v2831_v52  ;;  %v8338_v49 = vadd.f32 %v8337_v30, %v8336_v45  ;;  %v8296_v45 = vpop.f32.mrf.mxu0 }
 0x4b0   :  { %v8339_v39 = vpop.f32.mrf.mxu1 }
 0x4b1   :  { %9199 = vmatmul.mubr.msk.bf16.vlgmr.msra.gmra.mxu0 %vm1174_vm1, %v2886_v47  ;;  %v2839_v22 = vadd.f32 %v8338_v49, %v8274_v42  ;;  %v8297_v49 = vpop.f32.mrf.mxu0 }
 0x4b2   :  { %v8340_v13 = vpop.f32.mrf.mxu1  ;;  %8446 = vmatpush3.bf16.msra.mxu0 %v11405_v43  ;;  %v8298_v8 = vadd.f32 %v8297_v49, %v8296_v45  ;;  %v9993_v45 = vld [vmem:[#allocation2 + $0x50c] ss:$16 sps:$4 sm:$0xff]  }
 0x4b3   :  { %v8341_v24 = vadd.f32 %v8340_v13, %v8339_v39  ;;  %8447 = vmatprep.subr.bf16.mxu0 %v11415_v5 }
 0x4b4   :  { %v8342_v7 = vpop.f32.mrf.mxu1 }
 0x4b5   :  { %v2842_v29 = vadd.f32 %v8341_v24, %v8277_v25  ;;  %v8299_v25 = vpop.f32.mrf.mxu0 }
 0x4b6   :  { %v8343_v53 = vpop.f32.mrf.mxu1  ;;  %8448 = vmatpush3.bf16.msra.mxu0 %v11423_v63 }
 0x4b7   :  { %v2887_v26 = vpack.c.bf16 %v2842_v29, %v2839_v22  ;;  %8449 = vmatprep.subr.bf16.mxu0 %v11429_v3  ;;  %v8344_v31 = vadd.f32 %v8343_v53, %v8342_v7 }
 0x4b8   :  { %v8345_v4 = vpop.f32.mrf.mxu1 }
 0x4b9   :  { %9202 = vmatprep.mubr.msk.bf16.mxu0 %vm1174_vm1, %v2887_v26  ;;  %v2847_v52 = vadd.f32 %v8344_v31, %v8280_v16  ;;  %v8300_v26 = vpop.f32.mrf.mxu0 }
 0x4ba   :  { %v8346_v35 = vpop.f32.mrf.mxu1  ;;  %8450 = vmatpush3.bf16.msra.mxu0 %v11438_v10  ;;  %v8301_v38 = vadd.f32 %v8300_v26, %v8299_v25  ;;  %v9991_v25 = vld [vmem:[#allocation2 + $0x508] ss:$16 sps:$4 sm:$0xff]   ;;  %v9999_v26 = vld [vmem:[#allocation2 + $0x52c] ss:$16 sps:$4 sm:$0xff]  }
 0x4bb   :  { %v8347_v41 = vadd.f32 %v8346_v35, %v8345_v4  ;;  %8451 = vmatprep.subr.bf16.mxu0 %v11448_v57  ;;  %v8302_v35 = vpop.f32.mrf.mxu0 }
 0x4bc   :  { %v8348_v56 = vpop.f32.mrf.mxu1 }
 0x4bd   :  { %v2850_v14 = vadd.f32 %v8347_v41, %v8283_v0 }
 0x4be   :  { %v8349_v30 = vpop.f32.mrf.mxu1  ;;  %8452 = vmatpush3.bf16.msra.mxu0 %v11454_v28 }
 0x4bf   :  { %v2888_v47 = vpack.c.bf16 %v2850_v14, %v2847_v52  ;;  %8453 = vmatprep.subr.bf16.mxu0 %v11460_v27  ;;  %v8350_v13 = vadd.f32 %v8349_v30, %v8348_v56  ;;  %v8303_v52 = vpop.f32.mrf.mxu0 }
 0x4c0   :  { %v8351_v39 = vpop.f32.mrf.mxu1 }
 0x4c1   :  { %9203 = vmatmul.mubr.msk.bf16.gmra.mxu0 %vm1174_vm1, %v2888_v47  ;;  %v2855_v24 = vadd.f32 %v8350_v13, %v8286_v44  ;;  %v8305_v47 = vpop.f32.mrf.mxu0 }
 0x4c2   :  { %v8352_v12 = vpop.f32.mrf.mxu1  ;;  %8454 = vmatpush3.bf16.msra.mxu0 %v11467_v1 }
 0x4c3   :  { %v8353_v17 = vadd.f32 %v8352_v12, %v8351_v39  ;;  %8455 = vmatprep.subr.bf16.mxu0 %v11477_v36 }
 0x4c4   :  { %v8354_v42 = vpop.f32.mrf.mxu1 }
 0x4c5   :  { %v2858_v7 = vadd.f32 %v8353_v17, %v8289_v9  ;;  %v8306_v17 = vpop.f32.mrf.mxu0 }
 0x4c6   :  { %v8355_v22 = vpop.f32.mrf.mxu1  ;;  %8456 = vmatpush3.bf16.msra.mxu0 %v11483_v6 }
 0x4c7   :  { %v2889_v29 = vpack.c.bf16 %v2858_v7, %v2855_v24  ;;  %8457 = vmatprep.subr.bf16.mxu0 %v11489_v11  ;;  %v8356_v4 = vadd.f32 %v8355_v22, %v8354_v42  ;;  %v8304_v7 = vadd.f32 %v8303_v52, %v8302_v35  ;;  %v8307_v22 = vadd.f32 %v8306_v17, %v8305_v47 }
 0x4c8   :  { %v8357_v53 = vpop.f32.mrf.mxu1 }
 0x4c9   :  { %9206 = vmatprep.mubr.msk.bf16.mxu0 %vm1174_vm1, %v2889_v29  ;;  %v2863_v16 = vadd.f32 %v8356_v4, %v8292_v40  ;;  %v10005_v40 = vld [vmem:[#allocation2 + $0x54c] ss:$16 sps:$4 sm:$0xff]  }
 0x4ca   :  { %v8358_v50 = vpop.f32.mrf.mxu1  ;;  %8458 = vmatpush3.bf16.msra.mxu0 %v11496_v54 }
 0x4cb   :  { %v8359_v23 = vadd.f32 %v8358_v50, %v8357_v53  ;;  %8459 = vmatprep.subr.bf16.mxu0 %v11506_v19  ;;  %v9997_v50 = vld [vmem:[#allocation2 + $0x528] ss:$16 sps:$4 sm:$0xff]  }
 0x4cc   :  { %v8360_v31 = vpop.f32.mrf.mxu1 }
 0x4cd   :  { %v2866_v0 = vadd.f32 %v8359_v23, %v8295_v48  ;;  %v10003_v48 = vld [vmem:[#allocation2 + $0x548] ss:$16 sps:$4 sm:$0xff]   ;;  %v10011_v23 = vld [vmem:[#allocation2 + $0x56c] ss:$16 sps:$4 sm:$0xff]  }
 0x4ce   :  { %v8361_v41 = vpop.f32.mrf.mxu1  ;;  %8460 = vmatpush3.bf16.msra.mxu0 %v11512_v46 }
 0x4cf   :  { %v2890_v56 = vpack.c.bf16 %v2866_v0, %v2863_v16  ;;  %8518 = vmatprep.subr.bf16.mxu0 %v11266_v51  ;;  %v8362_v30 = vadd.f32 %v8361_v41, %v8360_v31  ;;  %v10033_v31 = vld [vmem:[#allocation2 + $0x5e8] ss:$16 sps:$4 sm:$0xff]   ;;  %v10038_v0 = vld [vmem:[#allocation2 + $0x604] ss:$16 sps:$4 sm:$0xff]   ;;  %v10036_v41 = vld [vmem:[#allocation2 + $0x600] ss:$16 sps:$4 sm:$0xff]  }
 0x4d0   :  { %v8363_v14 = vpop.f32.mrf.mxu1 }
 0x4d1   :  { %9207 = vmatmul.mubr.msk.bf16.gmra.mxu0 %vm1174_vm1, %v2890_v56  ;;  %v2871_v13 = vadd.f32 %v8362_v30, %v8298_v8  ;;  %v12750_v8 = vld [vmem:[#allocation37_spill] sm:$0xff] }
 0x4d2   :  { %v8364_v18 = vpop.f32.mrf.mxu1 }
 0x4d3   :  { %v8365_v34 = vadd.f32 %v8364_v18, %v8363_v14  ;;  %v12749_v14 = vld [vmem:[#allocation35_spill] sm:$0xff] }
 0x4d4   :  { %v8366_v39 = vpop.f32.mrf.mxu1 }
 0x4d5   :  { %v2874_v12 = vadd.f32 %v8365_v34, %v8301_v38 }
 0x4d6   :  { %v8367_v44 = vpop.f32.mrf.mxu1 }
 0x4d7   :  { %v2891_v9 = vpack.c.bf16 %v2874_v12, %v2871_v13  ;;  %v8368_v24 = vadd.f32 %v8367_v44, %v8366_v39  ;;  %v10044_v39 = vld [vmem:[#allocation2 + $0x624] ss:$16 sps:$4 sm:$0xff]   ;;  %v12751_v13 = vld [vmem:[#allocation38_spill] sm:$0xff] }
 0x4d8   :  { %v8369_v42 = vpop.f32.mrf.mxu1  ;;  %v10042_v44 = vld [vmem:[#allocation2 + $0x620] ss:$16 sps:$4 sm:$0xff]  }
 0x4d9   :  { %9210 = vmatprep.mubr.msk.bf16.mxu0 %vm1174_vm1, %v2891_v9  ;;  %v2879_v53 = vadd.f32 %v8368_v24, %v8304_v7  ;;  %v10048_v24 = vld [vmem:[#allocation2 + $0x640] ss:$16 sps:$4 sm:$0xff]  }
 0x4da   :  { %v8370_v51 = vpop.f32.mrf.mxu1 }
 0x4db   :  { %v8371_v29 = vadd.f32 %v8370_v51, %v8369_v42  ;;  %v10050_v42 = vld [vmem:[#allocation2 + $0x644] ss:$16 sps:$4 sm:$0xff]  }
 0x4dc   :  { %v11764_v35 = vpop.f32.mrf.mxu1 }
 0x4dd   :  { %v2882_v4 = vadd.f32 %v8371_v29, %v8307_v22  ;;  %v12753_v29 = vld [vmem:[#allocation41_spill] sm:$0xff] }
 0x4de   :  { %v11766_v16 = vpop.f32.mrf.mxu1 }
 0x4df   :  { %v2892_v49 = vpack.c.bf16 %v2882_v4, %v2879_v53 }
 0x4e0   :  { %v11768_v52 = vpop.f32.mrf.mxu1 }
 0x4e1   :  { %9211 = vmatmul.mubr.msk.bf16.gmra.mxu0 %vm1174_vm1, %v2892_v49 }
 0x4e2   :  { %3357 = vmatprep.mubr.bf16.mxu0 %v9993_v45  ;;  %v11776_v47 = vpop.f32.mrf.mxu1  ;;  %v12754_v45 = vld [vmem:[#allocation42_spill] sm:$0xff] }
 0x4e4   :  { %v11781_v9 = vpop.f32.mrf.mxu1 }
 0x4e6   :  { %v11783_v17 = vpop.f32.mrf.mxu1 }
 0x4e8   :  { %v11787_v22 = vpop.f32.mrf.mxu1 }
 0x4e9   :  { %3358 = vmatmul.mubr.bf16.vlgmr.msra.gmra.mxu0 %v9991_v25 }
 0x4ea   :  { %3365 = vmatprep.mubr.bf16.mxu0 %v9999_v26  ;;  %8519 = vmatpush3.bf16.msra.mxu0 %v11529_v55  ;;  %v10009_v55 = vld [vmem:[#allocation2 + $0x568] ss:$16 sps:$4 sm:$0xff]   ;;  %v11795_v26 = vpop.f32.mrf.mxu1 }
 0x4eb   :  { %8520 = vmatprep.subr.bf16.mxu0 %v11535_v60  ;;  %v10017_v60 = vld [vmem:[#allocation2 + $0x58c] ss:$16 sps:$4 sm:$0xff]  }
 0x4ee   :  { %8521 = vmatpush3.bf16.msra.mxu0 %v11541_v61  ;;  %v12746_v61 = vld [vmem:[#allocation31_spill] sm:$0xff] }
 0x4ef   :  { %8522 = vmatprep.subr.bf16.mxu0 %v11547_v59  ;;  %v10015_v59 = vld [vmem:[#allocation2 + $0x588] ss:$16 sps:$4 sm:$0xff]  }
 0x4f1   :  { %3366 = vmatmul.mubr.bf16.gmra.mxu0 %v9997_v50  ;;  %v10056_v50 = vld [vmem:[#allocation2 + $0x664] ss:$16 sps:$4 sm:$0xff]  }
 0x4f2   :  { %3373 = vmatprep.mubr.bf16.mxu0 %v10005_v40  ;;  %8523 = vmatpush3.bf16.msra.mxu0 %v11553_v2  ;;  %v10023_v2 = vld [vmem:[#allocation2 + $0x5ac] ss:$16 sps:$4 sm:$0xff]   ;;  %v12755_v40 = vld [vmem:[#allocation43_spill] sm:$0xff] }
 0x4f3   :  { %8524 = vmatprep.subr.bf16.mxu0 %v11559_v15  ;;  %v12747_v15 = vld [vmem:[#allocation33_spill] sm:$0xff] }
 0x4f6   :  { %8525 = vmatpush3.bf16.msra.mxu0 %v11565_v33  ;;  %v10021_v33 = vld [vmem:[#allocation2 + $0x5a8] ss:$16 sps:$4 sm:$0xff]  }
 0x4f7   :  { %8526 = vmatprep.subr.bf16.mxu0 %v11571_v21  ;;  %v10029_v21 = vld [vmem:[#allocation2 + $0x5cc] ss:$16 sps:$4 sm:$0xff]  }
 0x4f9   :  { %3374 = vmatmul.mubr.bf16.gmra.mxu0 %v10003_v48 }
 0x4fa   :  { %3381 = vmatprep.mubr.bf16.mxu0 %v10011_v23  ;;  %8527 = vmatpush3.bf16.msra.mxu0 %v11577_v62  ;;  %v10027_v62 = vld [vmem:[#allocation2 + $0x5c8] ss:$16 sps:$4 sm:$0xff]   ;;  %v10054_v23 = vld [vmem:[#allocation2 + $0x660] ss:$16 sps:$4 sm:$0xff]  }
 0x4fb   :  { %8528 = vmatprep.subr.bf16.mxu0 %v11583_v20  ;;  %v10035_v20 = vld [vmem:[#allocation2 + $0x5ec] ss:$16 sps:$4 sm:$0xff]  }
 0x4fe   :  { %8529 = vmatpush3.bf16.msra.mxu0 %v11589_v37  ;;  %v3431_v37 = vld [vmem:[#allocation5 + $0x14] sm:$0xf] }
 0x4ff   :  { %8530 = vmatprep.subr.bf16.mxu0 %v11595_v32  ;;  %9697 = vmatprep.subr.msk.bf16.mxu1 %vm1199_vm0, %v3431_v37  ;;  %v3457_v32 = vsel %vm1199_vm0, %v3431_v37, 0  ;;  %v12758_v37 = vld [vmem:[#allocation47_spill] sm:$0xff] }
 0x500   :  { %9215 = vmatpush3.bf16.msra.mxu1 %v3457_v32 }
 0x501   :  { %3382 = vmatmul.mubr.bf16.gmra.mxu0 %v10009_v55  ;;  %v11800_v55 = vpop.f32.mrf.mxu1 }
 0x502   :  { %3389 = vmatprep.mubr.bf16.mxu0 %v10017_v60  ;;  %8531 = vmatpush3.bf16.msra.mxu0 %v11601_v58  ;;  %v12748_v58 = vld [vmem:[#allocation34_spill] sm:$0xff] }
 0x503   :  { %8532 = vmatprep.subr.bf16.mxu0 %v12746_v61  ;;  %8582 = vmatprep.subr.bf16.mxu1 %v12748_v58  ;;  %v11802_v60 = vpop.f32.mrf.mxu1  ;;  %v10062_v61 = vld [vmem:[#allocation2 + $0x684] ss:$16 sps:$4 sm:$0xff]  }
 0x506   :  { %8533 = vmatpush3.bf16.msra.mxu0 %v12747_v15 }
 0x509   :  { %3390 = vmatmul.mubr.bf16.gmra.mxu0 %v10015_v59  ;;  %v10060_v59 = vld [vmem:[#allocation2 + $0x680] ss:$16 sps:$4 sm:$0xff]  }
 0x50a   :  { %3397 = vmatprep.mubr.bf16.mxu0 %v10023_v2 }
 0x511   :  { %3398 = vmatmul.mubr.bf16.gmra.mxu0 %v10021_v33  ;;  %v11806_v33 = vpop.f32.mrf.mxu1 }
 0x512   :  { %3405 = vmatprep.mubr.bf16.mxu0 %v10029_v21  ;;  %v12757_v21 = vld [vmem:[#allocation46_spill] sm:$0xff] }
 0x519   :  { %3406 = vmatmul.mubr.bf16.gmra.mxu0 %v10027_v62 }
 0x51a   :  { %3413 = vmatprep.mubr.bf16.mxu0 %v10035_v20 }
 0x521   :  { %3414 = vmatmul.mubr.bf16.gmra.mxu0 %v10033_v31  ;;  %v11814_v31 = vpop.f32.mrf.mxu1 }
 0x522   :  { %3797 = vmatprep.mubr.bf16.mxu0 %v10038_v0  ;;  %v10068_v0 = vld [vmem:[#allocation2 + $0x6a4] ss:$16 sps:$4 sm:$0xff]  }
 0x529   :  { %3798 = vmatmul.mubr.bf16.vlgmr.msra.gmra.mxu0 %v10036_v41  ;;  %v12759_v41 = vld [vmem:[#allocation48_spill] sm:$0xff] }
 0x52a   :  { %3805 = vmatprep.mubr.bf16.mxu0 %v10044_v39  ;;  %v10072_v39 = vld [vmem:[#allocation2 + $0x6c0] ss:$16 sps:$4 sm:$0xff]  }
 0x531   :  { %3806 = vmatmul.mubr.bf16.gmra.mxu0 %v10042_v44 }
 0x532   :  { %3813 = vmatprep.mubr.bf16.mxu0 %v10050_v42 }
 0x539   :  { %3814 = vmatmul.mubr.bf16.gmra.mxu0 %v10048_v24  ;;  %v12761_v24 = vld [vmem:[#allocation50_spill] sm:$0xff] }
 0x53a   :  { %3821 = vmatprep.mubr.bf16.mxu0 %v10056_v50 }
 0x541   :  { %3822 = vmatmul.mubr.bf16.gmra.mxu0 %v10054_v23  ;;  %v12763_v23 = vld [vmem:[#allocation52_spill] sm:$0xff] }
 0x542   :  { %3829 = vmatprep.mubr.bf16.mxu0 %v10062_v61 }
 0x549   :  { %3830 = vmatmul.mubr.bf16.gmra.mxu0 %v10060_v59  ;;  %v10078_v59 = vld [vmem:[#allocation2 + $0x6e0] ss:$16 sps:$4 sm:$0xff]  }
 0x54a   :  { %3837 = vmatprep.mubr.bf16.mxu0 %v10068_v0 }
 0x571   :  { %v9200_v56 = vpop.f32.mrf.mxu0 }
 0x572   :  { %v11771_v30 = vadd.f32 %v9200_v56, %v12749_v14  ;;  %v10066_v14 = vld [vmem:[#allocation2 + $0x6a0] ss:$16 sps:$4 sm:$0xff]  }
 0x573   :  { %v2956_v18 = vpop.f32.mrf.mxu0  ;;  %3838 = vmatmul.mubr.bf16.gmra.mxu0 %v10066_v14 }
 0x574   :  { %v11774_v38 = vadd.f32 %v2956_v18, %v12750_v8  ;;  %v11819_v18 = vpop.f32.mrf.mxu1 }
 0x575   :  { %v9201_v34 = vpop.f32.mrf.mxu0 }
 0x576   :  { %v11779_v12 = vadd.f32 %v9201_v34, %v12751_v13  ;;  %v11821_v8 = vpop.f32.mrf.mxu1  ;;  %v10074_v34 = vld [vmem:[#allocation2 + $0x6c4] ss:$16 sps:$4 sm:$0xff]  }
 0x577   :  { %v11785_v51 = vpop.f32.mrf.mxu0  ;;  %3845 = vmatprep.mubr.bf16.mxu0 %v10074_v34  ;;  %v8399_v34 = vadd.f32 %v11766_v16, %v11764_v35  ;;  %v8408_v35 = vadd.f32 %v11795_v26, %v11787_v22 }
 0x578   :  { %12752 = vst [vmem:[#allocation31_spill] sm:$0xff] %v11785_v51  ;;  %v11825_v42 = vpop.f32.mrf.mxu1 }
 0x57a   :  { %v8419_v50 = vpop.f32.mrf.mxu1 }
 0x57b   :  { %3846 = vmatmul.mubr.bf16.gmra.mxu0 %v10072_v39  ;;  %v8402_v39 = vadd.f32 %v11776_v47, %v11768_v52 }
 0x581   :  { %v9204_v7 = vpop.f32.mrf.mxu0 }
 0x582   :  { %v11790_v53 = vadd.f32 %v9204_v7, %v12753_v29 }
 0x583   :  { %v2972_v4 = vpop.f32.mrf.mxu0 }
 0x584   :  { %v11793_v49 = vadd.f32 %v2972_v4, %v12754_v45  ;;  %v12762_v4 = vld [vmem:[#allocation51_spill] sm:$0xff] }
 0x585   :  { %v9205_v25 = vpop.f32.mrf.mxu0 }
 0x586   :  { %v11798_v48 = vadd.f32 %v9205_v25, %v12755_v40  ;;  %v10080_v40 = vld [vmem:[#allocation2 + $0x6e4] ss:$16 sps:$4 sm:$0xff]  }
 0x587   :  { %v11804_v2 = vpop.f32.mrf.mxu0  ;;  %3853 = vmatprep.mubr.bf16.mxu0 %v10080_v40 }
 0x588   :  { %12756 = vst [vmem:[#allocation33_spill] sm:$0xff] %v11804_v2  ;;  %3854 = vmatmul.mubr.bf16.gmra.mxu0 %v10078_v59 }
 0x591   :  { %v9208_v15 = vpop.f32.mrf.mxu0 }
 0x592   :  { %v11809_v62 = vadd.f32 %v9208_v15, %v12757_v21 }
 0x593   :  { %v2988_v20 = vpop.f32.mrf.mxu0 }
 0x594   :  { %v11812_v32 = vadd.f32 %v2988_v20, %v12758_v37  ;;  %v11838_v20 = vpop.f32.mrf.mxu1 }
 0x595   :  { %v9209_v58 = vpop.f32.mrf.mxu0 }
 0x596   :  { %v11817_v56 = vadd.f32 %v9209_v58, %v12759_v41  ;;  %v11840_v0 = vpop.f32.mrf.mxu1 }
 0x597   :  { %v11823_v13 = vpop.f32.mrf.mxu0 }
 0x598   :  { %12760 = vst [vmem:[#allocation34_spill] sm:$0xff] %v11823_v13 }
 0x5a1   :  { %v9212_v44 = vpop.f32.mrf.mxu0 }
 0x5a2   :  { %v11828_v7 = vadd.f32 %v9212_v44, %v12761_v24 }
 0x5a3   :  { %v3004_v29 = vpop.f32.mrf.mxu0 }
 0x5a4   :  { %v11831_v45 = vadd.f32 %v3004_v29, %v12762_v4  ;;  %v8424_v29 = vpop.f32.mrf.mxu1 }
 0x5a5   :  { %v9213_v25 = vpop.f32.mrf.mxu0 }
 0x5a6   :  { %v11834_v61 = vadd.f32 %v9213_v25, %v12763_v23 }
 0x5a7   :  { %v11836_v15 = vpop.f32.mrf.mxu0 }
 0x5a8   :  { %12764 = vst [vmem:[#allocation35_spill] sm:$0xff] %v11836_v15  ;;  %v8425_v15 = vpop.f32.mrf.mxu1 }
 0x5a9   :  { %v8461_v21 = vpop.f32.mrf.mxu0 }
 0x5aa   :  { %v11851_v47 = vpop.f32.mrf.mxu1 }
 0x5ab   :  { %v8462_v37 = vpop.f32.mrf.mxu0 }
 0x5ac   :  { %v8463_v41 = vadd.f32 %v8462_v37, %v8461_v21  ;;  %v8405_v37 = vadd.f32 %v11783_v17, %v11781_v9  ;;  %v8411_v9 = vadd.f32 %v11802_v60, %v11800_v55  ;;  %v8414_v17 = vadd.f32 %v11814_v31, %v11806_v33 }
 0x5ad   :  { %v8464_v58 = vpop.f32.mrf.mxu0  ;;  %v8420_v60 = vadd.f32 %v8419_v50, %v11825_v42 }
 0x5ae   :  { %v3360_v4 = vadd.f32 %v8463_v41, %v8399_v34 }
 0x5af   :  { %v8465_v14 = vpop.f32.mrf.mxu0 }
 0x5b0   :  { %v8466_v44 = vadd.f32 %v8465_v14, %v8464_v58 }
 0x5b1   :  { %v8467_v24 = vpop.f32.mrf.mxu0 }
 0x5b2   :  { %v3363_v25 = vadd.f32 %v8466_v44, %v8402_v39  ;;  %v8428_v44 = vpop.f32.mrf.mxu1 }
 0x5b3   :  { %v8468_v40 = vpop.f32.mrf.mxu0 }
 0x5b4   :  { %v3422_v23 = vpack.c.bf16 %v3363_v25, %v3360_v4  ;;  %v8469_v13 = vadd.f32 %v8468_v40, %v8467_v24 }
 0x5b5   :  { %v8470_v59 = vpop.f32.mrf.mxu0 }
 0x5b6   :  { %9216 = vmatprep.mubr.msk.bf16.mxu1 %vm1174_vm1, %v3422_v23  ;;  %v3368_v58 = vadd.f32 %v8469_v13, %v8405_v37  ;;  %v8430_v13 = vpop.f32.mrf.mxu1 }
 0x5b7   :  { %v8471_v21 = vpop.f32.mrf.mxu0 }
 0x5b8   :  { %v8472_v16 = vadd.f32 %v8471_v21, %v8470_v59  ;;  %v8431_v21 = vpop.f32.mrf.mxu1 }
 0x5b9   :  { %v8473_v52 = vpop.f32.mrf.mxu0 }
 0x5ba   :  { %v3371_v41 = vadd.f32 %v8472_v16, %v8408_v35  ;;  %v8433_v31 = vpop.f32.mrf.mxu1 }
 0x5bb   :  { %v8474_v14 = vpop.f32.mrf.mxu0 }
 0x5bc   :  { %v3423_v34 = vpack.c.bf16 %v3371_v41, %v3368_v58  ;;  %v8475_v24 = vadd.f32 %v8474_v14, %v8473_v52 }
 0x5bd   :  { %v8476_v39 = vpop.f32.mrf.mxu0 }
 0x5be   :  { %9217 = vmatmul.mubr.msk.bf16.vlgmr.msra.gmra.mxu1 %vm1174_vm1, %v3423_v34  ;;  %v3376_v25 = vadd.f32 %v8475_v24, %v8411_v9 }
 0x5bf   :  { %v8477_v4 = vpop.f32.mrf.mxu0  ;;  %8583 = vmatpush3.bf16.msra.mxu1 %v11405_v43 }
 0x5c0   :  { %v8478_v22 = vadd.f32 %v8477_v4, %v8476_v39  ;;  %8584 = vmatprep.subr.bf16.mxu1 %v11415_v5  ;;  %v8417_v5 = vadd.f32 %v11821_v8, %v11819_v18  ;;  %v8426_v8 = vadd.f32 %v8425_v15, %v8424_v29  ;;  %v8432_v15 = vadd.f32 %v8431_v21, %v8430_v13 }
 0x5c1   :  { %v8479_v26 = vpop.f32.mrf.mxu0 }
 0x5c2   :  { %v3379_v40 = vadd.f32 %v8478_v22, %v8414_v17 }
 0x5c3   :  { %v8480_v23 = vpop.f32.mrf.mxu0  ;;  %8585 = vmatpush3.bf16.msra.mxu1 %v11423_v63 }
 0x5c4   :  { %v3424_v59 = vpack.c.bf16 %v3379_v40, %v3376_v25  ;;  %8586 = vmatprep.subr.bf16.mxu1 %v11429_v3  ;;  %v8481_v37 = vadd.f32 %v8480_v23, %v8479_v26  ;;  %v11885_v26 = vld [vmem:[%s12665_s0 + $0x78] sm:$0xff]  }
 0x5c5   :  { %v8482_v43 = vpop.f32.mrf.mxu0 }
 0x5c6   :  { %9220 = vmatprep.mubr.msk.bf16.mxu1 %vm1174_vm1, %v3424_v59  ;;  %v3384_v35 = vadd.f32 %v8481_v37, %v8417_v5 }
 0x5c7   :  { %v8483_v55 = vpop.f32.mrf.mxu0  ;;  %8587 = vmatpush3.bf16.msra.mxu1 %v11438_v10  ;;  %v8434_v10 = vpop.f32.mrf.mxu1 }
 0x5c8   :  { %v8484_v33 = vadd.f32 %v8483_v55, %v8482_v43  ;;  %8588 = vmatprep.subr.bf16.mxu1 %v11448_v57  ;;  %v8423_v57 = vadd.f32 %v11840_v0, %v11838_v20  ;;  %v8435_v13 = vadd.f32 %v8434_v10, %v8433_v31  ;;  %v10041_v31 = vld [vmem:[#allocation2 + $0x60c] ss:$16 sps:$4 sm:$0xff]   ;;  %v10039_v10 = vld [vmem:[#allocation2 + $0x608] ss:$16 sps:$4 sm:$0xff]  }
 0x5c9   :  { %v8485_v63 = vpop.f32.mrf.mxu0 }
 0x5ca   :  { %v3387_v3 = vadd.f32 %v8484_v33, %v8420_v60 }
 0x5cb   :  { %v8486_v16 = vpop.f32.mrf.mxu0  ;;  %8589 = vmatpush3.bf16.msra.mxu1 %v11454_v28  ;;  %v8436_v28 = vpop.f32.mrf.mxu1 }
 0x5cc   :  { %v3425_v52 = vpack.c.bf16 %v3387_v3, %v3384_v35  ;;  %8590 = vmatprep.subr.bf16.mxu1 %v11460_v27  ;;  %v8487_v41 = vadd.f32 %v8486_v16, %v8485_v63 }
 0x5cd   :  { %v8488_v58 = vpop.f32.mrf.mxu0  ;;  %v8437_v4 = vpop.f32.mrf.mxu1 }
 0x5ce   :  { %9221 = vmatmul.mubr.msk.bf16.gmra.mxu1 %vm1174_vm1, %v3425_v52  ;;  %v3392_v14 = vadd.f32 %v8487_v41, %v8423_v57  ;;  %v8438_v25 = vadd.f32 %v8437_v4, %v8436_v28  ;;  %v10047_v41 = vld [vmem:[#allocation2 + $0x62c] ss:$16 sps:$4 sm:$0xff]   ;;  %v11900_v57 = vld [vmem:[%s12665_s0 + $0x70] sm:$0xff]  }
 0x5cf   :  { %v8489_v18 = vpop.f32.mrf.mxu0  ;;  %8591 = vmatpush3.bf16.msra.mxu1 %v11467_v1  ;;  %v8439_v9 = vpop.f32.mrf.mxu1  ;;  %v11912_v28 = vld [vmem:[%s12665_s0 + $0x68] sm:$0xff]   ;;  %v11936_v4 = vld [vmem:[%s12665_s0 + $0x58] sm:$0xff]  }
 0x5d0   :  { %v8490_v42 = vadd.f32 %v8489_v18, %v8488_v58  ;;  %8592 = vmatprep.subr.bf16.mxu1 %v11477_v36  ;;  %v8429_v36 = vadd.f32 %v8428_v44, %v11851_v47  ;;  %v11894_v18 = vld [vmem:[%s12665_s0 + $0x38] sm:$0xff]  }
 0x5d1   :  { %v8491_v50 = vpop.f32.mrf.mxu0 }
 0x5d2   :  { %v3395_v34 = vadd.f32 %v8490_v42, %v8426_v8  ;;  %v10045_v8 = vld [vmem:[#allocation2 + $0x628] ss:$16 sps:$4 sm:$0xff]   ;;  %v10053_v42 = vld [vmem:[#allocation2 + $0x64c] ss:$16 sps:$4 sm:$0xff]  }
 0x5d3   :  { %v8492_v27 = vpop.f32.mrf.mxu0  ;;  %8593 = vmatpush3.bf16.msra.mxu1 %v11483_v6 }
 0x5d4   :  { %v3426_v39 = vpack.c.bf16 %v3395_v34, %v3392_v14  ;;  %8594 = vmatprep.subr.bf16.mxu1 %v11489_v11  ;;  %v8493_v1 = vadd.f32 %v8492_v27, %v8491_v50  ;;  %v11906_v50 = vld [vmem:[%s12665_s0 + $0x30] sm:$0xff]   ;;  %v11918_v14 = vld [vmem:[%s12665_s0 + $0x28] sm:$0xff]   ;;  %v11924_v34 = vld [vmem:[%s12665_s0 + $0x60] sm:$0xff]  }
 0x5d5   :  { %v8494_v24 = vpop.f32.mrf.mxu0  ;;  %v10051_v27 = vld [vmem:[#allocation2 + $0x648] ss:$16 sps:$4 sm:$0xff]  }
 0x5d6   :  { %9224 = vmatprep.mubr.msk.bf16.mxu1 %vm1174_vm1, %v3426_v39  ;;  %v3400_v6 = vadd.f32 %v8493_v1, %v8429_v36  ;;  %v10059_v39 = vld [vmem:[#allocation2 + $0x66c] ss:$16 sps:$4 sm:$0xff]   ;;  %v10057_v36 = vld [vmem:[#allocation2 + $0x668] ss:$16 sps:$4 sm:$0xff]  }
 0x5d7   :  { %v8495_v20 = vpop.f32.mrf.mxu0  ;;  %8595 = vmatpush3.bf16.msra.mxu1 %v11496_v54  ;;  %v8440_v54 = vpop.f32.mrf.mxu1  ;;  %v11942_v1 = vld [vmem:[%s12665_s0 + $0x18] sm:$0xff]  }
 0x5d8   :  { %v8496_v0 = vadd.f32 %v8495_v20, %v8494_v24  ;;  %8596 = vmatprep.subr.bf16.mxu1 %v11506_v19  ;;  %v8441_v63 = vadd.f32 %v8440_v54, %v8439_v9  ;;  %v11930_v24 = vld [vmem:[%s12665_s0 + $0x20] sm:$0xff]   ;;  %v11948_v20 = vld [vmem:[%s12665_s0 + $0x50] sm:$0xff]   ;;  %v11966_v9 = vld [vmem:[%s12665_s0 + $0x8] sm:$0xff]  }
 0x5d9   :  { %v8497_v29 = vpop.f32.mrf.mxu0  ;;  %v8442_v23 = vpop.f32.mrf.mxu1  ;;  %v10069_v54 = vld [vmem:[#allocation2 + $0x6a8] ss:$16 sps:$4 sm:$0xff]  }
 0x5da   :  { %v3403_v17 = vadd.f32 %v8496_v0, %v8432_v15  ;;  %v10065_v15 = vld [vmem:[#allocation2 + $0x68c] ss:$16 sps:$4 sm:$0xff]   ;;  %v11954_v0 = vld [vmem:[%s12665_s0 + $0x10] sm:$0xff]  }
 0x5db   :  { %v8498_v22 = vpop.f32.mrf.mxu0  ;;  %8597 = vmatpush3.bf16.msra.mxu1 %v11512_v46  ;;  %v8443_v55 = vpop.f32.mrf.mxu1 }
 0x5dc   :  { %v3427_v11 = vpack.c.bf16 %v3403_v17, %v3400_v6  ;;  %8655 = vmatprep.subr.bf16.mxu1 %v11885_v26  ;;  %v8499_v44 = vadd.f32 %v8498_v22, %v8497_v29  ;;  %v8444_v35 = vadd.f32 %v8443_v55, %v8442_v23  ;;  %v11960_v29 = vld [vmem:[%s12665_s0 + $0x48] sm:$0xff]   ;;  %v11972_v6 = vld [vmem:[%s12665_s0 + $0x40] sm:$0xff]  }
 0x5dd   :  { %v8500_v47 = vpop.f32.mrf.mxu0  ;;  %v10063_v17 = vld [vmem:[#allocation2 + $0x688] ss:$16 sps:$4 sm:$0xff]   ;;  %v10071_v22 = vld [vmem:[#allocation2 + $0x6ac] ss:$16 sps:$4 sm:$0xff]  }
 0x5de   :  { %9225 = vmatmul.mubr.msk.bf16.gmra.mxu1 %vm1174_vm1, %v3427_v11  ;;  %v3408_v46 = vadd.f32 %v8499_v44, %v8435_v13  ;;  %v11978_v11 = vld [vmem:[%s12665_s0] sm:$0xff]   ;;  %v10075_v44 = vld [vmem:[#allocation2 + $0x6c8] ss:$16 sps:$4 sm:$0xff]  }
 0x5df   :  { %v8501_v19 = vpop.f32.mrf.mxu0  ;;  %v3968_v13 = vld [vmem:[#allocation5 + $0x18] sm:$0xf] }
 0x5e0   :  { %v8502_v40 = vadd.f32 %v8501_v19, %v8500_v47  ;;  %v10077_v47 = vld [vmem:[#allocation2 + $0x6cc] ss:$16 sps:$4 sm:$0xff]   ;;  %9698 = vmatprep.subr.msk.bf16.mxu0 %vm1199_vm0, %v3968_v13  ;;  %v10081_v23 = vld [vmem:[#allocation2 + $0x6e8] ss:$16 sps:$4 sm:$0xff]  }
 0x5e1   :  { %v8503_v59 = vpop.f32.mrf.mxu0  ;;  %v10083_v19 = vld [vmem:[#allocation2 + $0x6ec] ss:$16 sps:$4 sm:$0xff]  }
 0x5e2   :  { %v3411_v43 = vadd.f32 %v8502_v40, %v8438_v25  ;;  %v3994_v25 = vsel %vm1199_vm0, %v3968_v13, 0  ;;  %v11986_v40 = vld [vmem:[%s12665_s0 + $0xf8] sm:$0xff]  }
 0x5e3   :  { %v8504_v21 = vpop.f32.mrf.mxu0  ;;  %9233 = vmatpush3.bf16.msra.mxu0 %v3994_v25 }
 0x5e4   :  { %v3428_v37 = vpack.c.bf16 %v3411_v43, %v3408_v46  ;;  %v8505_v60 = vadd.f32 %v8504_v21, %v8503_v59  ;;  %8719 = vmatprep.subr.bf16.mxu0 %v11986_v40  ;;  %v10086_v43 = vld [vmem:[#allocation2 + $0x704] ss:$16 sps:$4 sm:$0xff]   ;;  %v10084_v21 = vld [vmem:[#allocation2 + $0x700] ss:$16 sps:$4 sm:$0xff]  }
 0x5e5   :  { %v8506_v5 = vpop.f32.mrf.mxu0 }
 0x5e6   :  { %9228 = vmatprep.mubr.msk.bf16.mxu1 %vm1174_vm1, %v3428_v37  ;;  %v3416_v16 = vadd.f32 %v8505_v60, %v8441_v63 }
 0x5e7   :  { %v8507_v33 = vpop.f32.mrf.mxu0 }
 0x5e8   :  { %v8508_v3 = vadd.f32 %v8507_v33, %v8506_v5 }
 0x5e9   :  { %v11989_v59 = vpop.f32.mrf.mxu0 }
 0x5ea   :  { %v3419_v52 = vadd.f32 %v8508_v3, %v8444_v35  ;;  %v10092_v3 = vld [vmem:[#allocation2 + $0x724] ss:$16 sps:$4 sm:$0xff]  }
 0x5eb   :  { %v11991_v46 = vpop.f32.mrf.mxu0 }
 0x5ec   :  { %v3429_v58 = vpack.c.bf16 %v3419_v52, %v3416_v16  ;;  %v10090_v52 = vld [vmem:[#allocation2 + $0x720] ss:$16 sps:$4 sm:$0xff]  }
 0x5ed   :  { %v11993_v55 = vpop.f32.mrf.mxu0 }
 0x5ee   :  { %9229 = vmatmul.mubr.msk.bf16.gmra.mxu1 %vm1174_vm1, %v3429_v58 }
 0x5ef   :  { %3894 = vmatprep.mubr.bf16.mxu1 %v10041_v31  ;;  %v12001_v35 = vpop.f32.mrf.mxu0 }
 0x5f1   :  { %v12006_v31 = vpop.f32.mrf.mxu0 }
 0x5f3   :  { %v12008_v58 = vpop.f32.mrf.mxu0 }
 0x5f6   :  { %3895 = vmatmul.mubr.bf16.vlgmr.msra.gmra.mxu1 %v10039_v10  ;;  %v10096_v10 = vld [vmem:[#allocation2 + $0x740] ss:$16 sps:$4 sm:$0xff]  }
 0x5f7   :  { %3902 = vmatprep.mubr.bf16.mxu1 %v10047_v41  ;;  %8656 = vmatpush3.bf16.msra.mxu1 %v11894_v18 }
 0x5f8   :  { %8657 = vmatprep.subr.bf16.mxu1 %v11900_v57 }
 0x5fb   :  { %8658 = vmatpush3.bf16.msra.mxu1 %v11906_v50 }
 0x5fc   :  { %8659 = vmatprep.subr.bf16.mxu1 %v11912_v28 }
 0x5fe   :  { %3903 = vmatmul.mubr.bf16.gmra.mxu1 %v10045_v8  ;;  %v12012_v8 = vpop.f32.mrf.mxu0 }
 0x5ff   :  { %3910 = vmatprep.mubr.bf16.mxu1 %v10053_v42  ;;  %8660 = vmatpush3.bf16.msra.mxu1 %v11918_v14 }
 0x600   :  { %8661 = vmatprep.subr.bf16.mxu1 %v11924_v34 }
 0x603   :  { %8662 = vmatpush3.bf16.msra.mxu1 %v11930_v24 }
 0x604   :  { %8663 = vmatprep.subr.bf16.mxu1 %v11936_v4 }
 0x606   :  { %3911 = vmatmul.mubr.bf16.gmra.mxu1 %v10051_v27 }
 0x607   :  { %3918 = vmatprep.mubr.bf16.mxu1 %v10059_v39  ;;  %8664 = vmatpush3.bf16.msra.mxu1 %v11942_v1 }
 0x608   :  { %8665 = vmatprep.subr.bf16.mxu1 %v11948_v20 }
 0x60b   :  { %8666 = vmatpush3.bf16.msra.mxu1 %v11954_v0 }
 0x60c   :  { %8667 = vmatprep.subr.bf16.mxu1 %v11960_v29 }
 0x60e   :  { %3919 = vmatmul.mubr.bf16.gmra.mxu1 %v10057_v36  ;;  %v12020_v36 = vpop.f32.mrf.mxu0 }
 0x60f   :  { %3926 = vmatprep.mubr.bf16.mxu1 %v10065_v15  ;;  %8668 = vmatpush3.bf16.msra.mxu1 %v11966_v9  ;;  %v10104_v15 = vld [vmem:[#allocation2 + $0x764] ss:$16 sps:$4 sm:$0xff]  }
 0x610   :  { %8669 = vmatprep.subr.bf16.mxu1 %v11972_v6 }
 0x613   :  { %8670 = vmatpush3.bf16.msra.mxu1 %v11978_v11 }
 0x616   :  { %3927 = vmatmul.mubr.bf16.gmra.mxu1 %v10063_v17 }
 0x617   :  { %3934 = vmatprep.mubr.bf16.mxu1 %v10071_v22  ;;  %v10102_v22 = vld [vmem:[#allocation2 + $0x760] ss:$16 sps:$4 sm:$0xff]  }
 0x61e   :  { %3935 = vmatmul.mubr.bf16.gmra.mxu1 %v10069_v54  ;;  %v12025_v54 = vpop.f32.mrf.mxu0 }
 0x61f   :  { %3942 = vmatprep.mubr.bf16.mxu1 %v10077_v47 }
 0x620   :  { %v12027_v47 = vpop.f32.mrf.mxu0 }
 0x622   :  { %v12031_v13 = vpop.f32.mrf.mxu0 }
 0x626   :  { %3943 = vmatmul.mubr.bf16.gmra.mxu1 %v10075_v44  ;;  %v10108_v44 = vld [vmem:[#allocation2 + $0x780] ss:$16 sps:$4 sm:$0xff]  }
 0x627   :  { %3950 = vmatprep.mubr.bf16.mxu1 %v10083_v19 }
 0x62e   :  { %3951 = vmatmul.mubr.bf16.gmra.mxu1 %v10081_v23 }
 0x62f   :  { %4334 = vmatprep.mubr.bf16.mxu1 %v10086_v43 }
 0x636   :  { %4335 = vmatmul.mubr.bf16.vlgmr.msra.gmra.mxu1 %v10084_v21  ;;  %v12039_v21 = vpop.f32.mrf.mxu0 }
 0x637   :  { %4342 = vmatprep.mubr.bf16.mxu1 %v10092_v3 }
 0x638   :  { %v12044_v3 = vpop.f32.mrf.mxu0 }
 0x63e   :  { %4343 = vmatmul.mubr.bf16.gmra.mxu1 %v10090_v52  ;;  %v12046_v52 = vpop.f32.mrf.mxu0 }
 0x67e   :  { %v9218_v37 = vpop.f32.mrf.mxu1 }
 0x67f   :  { %v11996_v5 = vadd.f32 %v9218_v37, %v11771_v30  ;;  %v10098_v30 = vld [vmem:[#allocation2 + $0x744] ss:$16 sps:$4 sm:$0xff]  }
 0x680   :  { %v3493_v60 = vpop.f32.mrf.mxu1  ;;  %4350 = vmatprep.mubr.bf16.mxu1 %v10098_v30  ;;  %v10116_v37 = vld [vmem:[#allocation2 + $0x7a4] ss:$16 sps:$4 sm:$0xff]   ;;  %v10120_v30 = vld [vmem:[#allocation2 + $0x7c0] ss:$16 sps:$4 sm:$0xff]  }
 0x681   :  { %v11999_v33 = vadd.f32 %v3493_v60, %v11774_v38  ;;  %4351 = vmatmul.mubr.bf16.gmra.mxu1 %v10096_v10 }
 0x682   :  { %v9219_v63 = vpop.f32.mrf.mxu1  ;;  %4358 = vmatprep.mubr.bf16.mxu1 %v10104_v15 }
 0x683   :  { %v12004_v16 = vadd.f32 %v9219_v63, %v11779_v12  ;;  %v10114_v63 = vld [vmem:[#allocation2 + $0x7a0] ss:$16 sps:$4 sm:$0xff]  }
 0x684   :  { %v12010_v41 = vpop.f32.mrf.mxu1 }
 0x685   :  { %12765 = vst [vmem:[#allocation37_spill] sm:$0xff] %v12010_v41 }
 0x689   :  { %4359 = vmatmul.mubr.bf16.gmra.mxu1 %v10102_v22 }
 0x68e   :  { %v9222_v38 = vpop.f32.mrf.mxu1 }
 0x68f   :  { %v12015_v42 = vadd.f32 %v9222_v38, %v11790_v53  ;;  %v10110_v53 = vld [vmem:[#allocation2 + $0x784] ss:$16 sps:$4 sm:$0xff]   ;;  %v12050_v38 = vpop.f32.mrf.mxu0 }
 0x690   :  { %v3509_v12 = vpop.f32.mrf.mxu1  ;;  %4366 = vmatprep.mubr.bf16.mxu1 %v10110_v53  ;;  %v10128_v53 = vld [vmem:[#allocation2 + $0x7e4] ss:$16 sps:$4 sm:$0xff]  }
 0x691   :  { %v12018_v27 = vadd.f32 %v3509_v12, %v11793_v49  ;;  %4367 = vmatmul.mubr.bf16.gmra.mxu1 %v10108_v44  ;;  %v12058_v22 = vpop.f32.mrf.mxu0 }
 0x692   :  { %v9223_v39 = vpop.f32.mrf.mxu1  ;;  %4374 = vmatprep.mubr.bf16.mxu1 %v10116_v37 }
 0x693   :  { %v12023_v17 = vadd.f32 %v9223_v39, %v11798_v48  ;;  %v12065_v37 = vpop.f32.mrf.mxu0 }
 0x694   :  { %v12029_v19 = vpop.f32.mrf.mxu1 }
 0x695   :  { %12766 = vst [vmem:[#allocation38_spill] sm:$0xff] %v12029_v19 }
 0x699   :  { %4375 = vmatmul.mubr.bf16.gmra.mxu1 %v10114_v63 }
 0x69e   :  { %v9226_v49 = vpop.f32.mrf.mxu1 }
 0x69f   :  { %v12034_v25 = vadd.f32 %v9226_v49, %v11809_v62  ;;  %v10122_v62 = vld [vmem:[#allocation2 + $0x7c4] ss:$16 sps:$4 sm:$0xff]   ;;  %v10126_v49 = vld [vmem:[#allocation2 + $0x7e0] ss:$16 sps:$4 sm:$0xff]  }
 0x6a0   :  { %v3525_v48 = vpop.f32.mrf.mxu1  ;;  %4382 = vmatprep.mubr.bf16.mxu1 %v10122_v62  ;;  %v12067_v62 = vpop.f32.mrf.mxu0 }
 0x6a1   :  { %v12037_v23 = vadd.f32 %v3525_v48, %v11812_v32  ;;  %4383 = vmatmul.mubr.bf16.gmra.mxu1 %v10120_v30 }
 0x6a2   :  { %v9227_v43 = vpop.f32.mrf.mxu1  ;;  %4390 = vmatprep.mubr.bf16.mxu1 %v10128_v53 }
 0x6a3   :  { %v12042_v60 = vadd.f32 %v9227_v43, %v11817_v56 }
 0x6a4   :  { %v12048_v10 = vpop.f32.mrf.mxu1 }
 0x6a5   :  { %12767 = vst [vmem:[#allocation41_spill] sm:$0xff] %v12048_v10 }
 0x6a9   :  { %4391 = vmatmul.mubr.bf16.gmra.mxu1 %v10126_v49 }
 0x6ae   :  { %v9230_v32 = vpop.f32.mrf.mxu1 }
 0x6af   :  { %v12053_v12 = vadd.f32 %v9230_v32, %v11828_v7  ;;  %v8536_v32 = vadd.f32 %v11991_v46, %v11989_v59  ;;  %v8542_v59 = vadd.f32 %v12008_v58, %v12006_v31  ;;  %v8545_v46 = vadd.f32 %v12020_v36, %v12012_v8  ;;  %v12090_v31 = vld [vmem:[%s12665_s0 + $0xb8] sm:$0xff]   ;;  %v12100_v8 = vld [vmem:[%s12665_s0 + $0xf0] sm:$0xff]  }
 0x6b0   :  { %v3541_v56 = vpop.f32.mrf.mxu1 }
 0x6b1   :  { %v12056_v39 = vadd.f32 %v3541_v56, %v11831_v45 }
 0x6b2   :  { %v9231_v15 = vpop.f32.mrf.mxu1 }
 0x6b3   :  { %v12061_v44 = vadd.f32 %v9231_v15, %v11834_v61  ;;  %v8539_v61 = vadd.f32 %v12001_v35, %v11993_v55 }
 0x6b4   :  { %v12063_v48 = vpop.f32.mrf.mxu1 }
 0x6b5   :  { %12768 = vst [vmem:[#allocation42_spill] sm:$0xff] %v12063_v48  ;;  %v12073_v48 = vpop.f32.mrf.mxu0 }
 0x6b6   :  { %v8598_v43 = vpop.f32.mrf.mxu1 }
 0x6b7   :  { %v12075_v41 = vpop.f32.mrf.mxu0 }
 0x6b8   :  { %v8599_v7 = vpop.f32.mrf.mxu1 }
 0x6b9   :  { %v8600_v45 = vadd.f32 %v8599_v7, %v8598_v43  ;;  %v12082_v7 = vpop.f32.mrf.mxu0 }
 0x6ba   :  { %v8601_v63 = vpop.f32.mrf.mxu1 }
 0x6bb   :  { %v3897_v53 = vadd.f32 %v8600_v45, %v8536_v32 }
 0x6bc   :  { %v8602_v30 = vpop.f32.mrf.mxu1 }
 0x6bd   :  { %v8603_v56 = vadd.f32 %v8602_v30, %v8601_v63 }
 0x6be   :  { %v8604_v15 = vpop.f32.mrf.mxu1 }
 0x6bf   :  { %v3900_v49 = vadd.f32 %v8603_v56, %v8539_v61  ;;  %v12084_v56 = vpop.f32.mrf.mxu0 }
 0x6c0   :  { %v8605_v10 = vpop.f32.mrf.mxu1 }
 0x6c1   :  { %v3959_v19 = vpack.c.bf16 %v3900_v49, %v3897_v53  ;;  %v8606_v51 = vadd.f32 %v8605_v10, %v8604_v15  ;;  %v8567_v15 = vpop.f32.mrf.mxu0 }
 0x6c2   :  { %v8607_v2 = vpop.f32.mrf.mxu1 }
 0x6c3   :  { %9234 = vmatprep.mubr.msk.bf16.mxu0 %vm1174_vm1, %v3959_v19  ;;  %v3905_v63 = vadd.f32 %v8606_v51, %v8542_v59  ;;  %v8548_v51 = vadd.f32 %v12027_v47, %v12025_v54  ;;  %v12106_v54 = vld [vmem:[%s12665_s0 + $0xb0] sm:$0xff]   ;;  %v8568_v59 = vpop.f32.mrf.mxu0 }
 0x6c4   :  { %v8608_v43 = vpop.f32.mrf.mxu1 }
 0x6c5   :  { %v8609_v55 = vadd.f32 %v8608_v43, %v8607_v2  ;;  %v8551_v2 = vadd.f32 %v12039_v21, %v12031_v13  ;;  %v12112_v13 = vld [vmem:[%s12665_s0 + $0xe8] sm:$0xff]  }
 0x6c6   :  { %v8610_v35 = vpop.f32.mrf.mxu1 }
 0x6c7   :  { %v3908_v45 = vadd.f32 %v8609_v55, %v8545_v46 }
 0x6c8   :  { %v8611_v30 = vpop.f32.mrf.mxu1 }
 0x6c9   :  { %v3960_v32 = vpack.c.bf16 %v3908_v45, %v3905_v63  ;;  %v8612_v10 = vadd.f32 %v8611_v30, %v8610_v35  ;;  %v12119_v35 = vld [vmem:[%s12665_s0 + $0xa8] sm:$0xff]   ;;  %v8554_v63 = vadd.f32 %v12046_v52, %v12044_v3  ;;  %v8557_v45 = vadd.f32 %v12058_v22, %v12050_v38  ;;  %v12135_v3 = vld [vmem:[%s12665_s0 + $0xa0] sm:$0xff]   ;;  %v12141_v38 = vld [vmem:[%s12665_s0 + $0xd8] sm:$0xff]  }
 0x6ca   :  { %v8613_v61 = vpop.f32.mrf.mxu1 }
 0x6cb   :  { %9235 = vmatmul.mubr.msk.bf16.vlgmr.msra.gmra.mxu0 %vm1174_vm1, %v3960_v32  ;;  %v3913_v53 = vadd.f32 %v8612_v10, %v8548_v51  ;;  %v12129_v32 = vld [vmem:[%s12665_s0 + $0xe0] sm:$0xff]   ;;  %v8570_v10 = vpop.f32.mrf.mxu0 }
 0x6cc   :  { %v8614_v19 = vpop.f32.mrf.mxu1  ;;  %8720 = vmatpush3.bf16.msra.mxu0 %v12090_v31 }
 0x6cd   :  { %v8615_v58 = vadd.f32 %v8614_v19, %v8613_v61  ;;  %8721 = vmatprep.subr.bf16.mxu0 %v12100_v8 }
 0x6ce   :  { %v8616_v36 = vpop.f32.mrf.mxu1 }
 0x6cf   :  { %v3916_v49 = vadd.f32 %v8615_v58, %v8551_v2  ;;  %v8571_v58 = vpop.f32.mrf.mxu0 }
 0x6d0   :  { %v8617_v43 = vpop.f32.mrf.mxu1  ;;  %8722 = vmatpush3.bf16.msra.mxu0 %v12106_v54 }
 0x6d1   :  { %v3961_v47 = vpack.c.bf16 %v3916_v49, %v3913_v53  ;;  %8723 = vmatprep.subr.bf16.mxu0 %v12112_v13  ;;  %v8618_v46 = vadd.f32 %v8617_v43, %v8616_v36  ;;  %v12148_v49 = vld [vmem:[%s12665_s0 + $0x98] sm:$0xff]   ;;  %v8560_v43 = vadd.f32 %v12067_v62, %v12065_v37  ;;  %v12164_v37 = vld [vmem:[%s12665_s0 + $0x90] sm:$0xff]  }
 0x6d2   :  { %v8619_v21 = vpop.f32.mrf.mxu1  ;;  %12770 = vst [vmem:[#allocation46_spill] sm:$0xff] %v12164_v37 }
 0x6d3   :  { %9238 = vmatprep.mubr.msk.bf16.mxu0 %vm1174_vm1, %v3961_v47  ;;  %v3921_v19 = vadd.f32 %v8618_v46, %v8554_v63  ;;  %v8563_v47 = vadd.f32 %v12075_v41, %v12073_v48  ;;  %v12158_v46 = vld [vmem:[%s12665_s0 + $0xd0] sm:$0xff]   ;;  %v8573_v63 = vpop.f32.mrf.mxu0  ;;  %v12170_v48 = vld [vmem:[%s12665_s0 + $0xc8] sm:$0xff]  }
 0x6d4   :  { %v8620_v55 = vpop.f32.mrf.mxu1  ;;  %8724 = vmatpush3.bf16.msra.mxu0 %v12119_v35  ;;  %12769 = vst [vmem:[#allocation43_spill] sm:$0xff] %v12158_v46  ;;  %12771 = vst [vmem:[#allocation47_spill] sm:$0xff] %v12170_v48 }
 0x6d5   :  { %v8621_v30 = vadd.f32 %v8620_v55, %v8619_v21  ;;  %8725 = vmatprep.subr.bf16.mxu0 %v12129_v32 }
 0x6d6   :  { %v8622_v61 = vpop.f32.mrf.mxu1 }
 0x6d7   :  { %v3924_v51 = vadd.f32 %v8621_v30, %v8557_v45 }
 0x6d8   :  { %v8623_v2 = vpop.f32.mrf.mxu1  ;;  %8726 = vmatpush3.bf16.msra.mxu0 %v12135_v3 }
 0x6d9   :  { %v3962_v52 = vpack.c.bf16 %v3924_v51, %v3921_v19  ;;  %8727 = vmatprep.subr.bf16.mxu0 %v12141_v38  ;;  %v8624_v36 = vadd.f32 %v8623_v2, %v8622_v61  ;;  %v8574_v19 = vpop.f32.mrf.mxu0 }
 0x6da   :  { %v8625_v22 = vpop.f32.mrf.mxu1 }
 0x6db   :  { %9239 = vmatmul.mubr.msk.bf16.gmra.mxu0 %vm1174_vm1, %v3962_v52  ;;  %v3929_v45 = vadd.f32 %v8624_v36, %v8560_v43  ;;  %v12177_v52 = vld [vmem:[%s12665_s0 + $0x88] sm:$0xff]   ;;  %v8569_v36 = vadd.f32 %v8568_v59, %v8567_v15  ;;  %v12185_v43 = vld [vmem:[%s12665_s0 + $0xc0] sm:$0xff]  }
 0x6dc   :  { %v8626_v53 = vpop.f32.mrf.mxu1  ;;  %8728 = vmatpush3.bf16.msra.mxu0 %v12148_v49  ;;  %12772 = vst [vmem:[#allocation48_spill] sm:$0xff] %v12177_v52  ;;  %12773 = vst [vmem:[#allocation50_spill] sm:$0xff] %v12185_v43 }
 0x6dd   :  { %v8627_v21 = vadd.f32 %v8626_v53, %v8625_v22  ;;  %8729 = vmatprep.subr.bf16.mxu0 %v12158_v46  ;;  %v8566_v22 = vadd.f32 %v12084_v56, %v12082_v7 }
 0x6de   :  { %v8628_v55 = vpop.f32.mrf.mxu1 }
 0x6df   :  { %v3932_v30 = vadd.f32 %v8627_v21, %v8563_v47  ;;  %v8576_v21 = vpop.f32.mrf.mxu0 }
 0x6e0   :  { %v8629_v61 = vpop.f32.mrf.mxu1  ;;  %8730 = vmatpush3.bf16.msra.mxu0 %v12164_v37 }
 0x6e1   :  { %v3963_v41 = vpack.c.bf16 %v3932_v30, %v3929_v45  ;;  %8731 = vmatprep.subr.bf16.mxu0 %v12170_v48  ;;  %v8630_v51 = vadd.f32 %v8629_v61, %v8628_v55  ;;  %v12191_v61 = vld [vmem:[%s12665_s0 + $0x80] sm:$0xff]   ;;  %v8577_v56 = vpop.f32.mrf.mxu0 }
 0x6e2   :  { %v8631_v62 = vpop.f32.mrf.mxu1  ;;  %12774 = vst [vmem:[#allocation51_spill] sm:$0xff] %v12191_v61 }
 0x6e3   :  { %9242 = vmatprep.mubr.msk.bf16.mxu0 %vm1174_vm1, %v3963_v41  ;;  %v3937_v55 = vadd.f32 %v8630_v51, %v8566_v22  ;;  %v8575_v51 = vadd.f32 %v8574_v19, %v8573_v63  ;;  %v8579_v22 = vpop.f32.mrf.mxu0  ;;  %v10087_v63 = vld [vmem:[#allocation2 + $0x708] ss:$16 sps:$4 sm:$0xff]   ;;  %v10095_v19 = vld [vmem:[#allocation2 + $0x72c] ss:$16 sps:$4 sm:$0xff]  }
 0x6e4   :  { %v8632_v2 = vpop.f32.mrf.mxu1  ;;  %8732 = vmatpush3.bf16.msra.mxu0 %v12177_v52 }
 0x6e5   :  { %v8633_v53 = vadd.f32 %v8632_v2, %v8631_v62  ;;  %8733 = vmatprep.subr.bf16.mxu0 %v12185_v43  ;;  %v8572_v62 = vadd.f32 %v8571_v58, %v8570_v10  ;;  %v8580_v37 = vpop.f32.mrf.mxu0  ;;  %v10089_v10 = vld [vmem:[#allocation2 + $0x70c] ss:$16 sps:$4 sm:$0xff]  }
 0x6e6   :  { %v8634_v47 = vpop.f32.mrf.mxu1 }
 0x6e7   :  { %v3940_v45 = vadd.f32 %v8633_v53, %v8569_v36 }
 0x6e8   :  { %v8635_v30 = vpop.f32.mrf.mxu1  ;;  %8734 = vmatpush3.bf16.msra.mxu0 %v12191_v61 }
 0x6e9   :  { %v3964_v7 = vpack.c.bf16 %v3940_v45, %v3937_v55  ;;  %8792 = vmatprep.subr.bf16.mxu0 %v11885_v26  ;;  %v8636_v59 = vadd.f32 %v8635_v30, %v8634_v47  ;;  %v8578_v45 = vadd.f32 %v8577_v56, %v8576_v21  ;;  %v8581_v47 = vadd.f32 %v8580_v37, %v8579_v22  ;;  %v10107_v37 = vld [vmem:[#allocation2 + $0x76c] ss:$16 sps:$4 sm:$0xff]  }
 0x6ea   :  { %v8637_v15 = vpop.f32.mrf.mxu1 }
 0x6eb   :  { %9243 = vmatmul.mubr.msk.bf16.gmra.mxu0 %vm1174_vm1, %v3964_v7  ;;  %v3945_v53 = vadd.f32 %v8636_v59, %v8572_v62 }
 0x6ec   :  { %v8638_v41 = vpop.f32.mrf.mxu1 }
 0x6ed   :  { %v8639_v2 = vadd.f32 %v8638_v41, %v8637_v15  ;;  %v10140_v41 = vld [vmem:[#allocation2 + $0x824] ss:$16 sps:$4 sm:$0xff]  }
 0x6ee   :  { %v8640_v36 = vpop.f32.mrf.mxu1 }
 0x6ef   :  { %v3948_v43 = vadd.f32 %v8639_v2, %v8575_v51  ;;  %v10138_v51 = vld [vmem:[#allocation2 + $0x820] ss:$16 sps:$4 sm:$0xff]  }
 0x6f0   :  { %v8641_v52 = vpop.f32.mrf.mxu1 }
 0x6f1   :  { %v3965_v48 = vpack.c.bf16 %v3948_v43, %v3945_v53  ;;  %v8642_v55 = vadd.f32 %v8641_v52, %v8640_v36  ;;  %v10101_v52 = vld [vmem:[#allocation2 + $0x74c] ss:$16 sps:$4 sm:$0xff]   ;;  %v10144_v36 = vld [vmem:[#allocation2 + $0x840] ss:$16 sps:$4 sm:$0xff]  }
 0x6f2   :  { %v8643_v61 = vpop.f32.mrf.mxu1 }
 0x6f3   :  { %9246 = vmatprep.mubr.msk.bf16.mxu0 %vm1174_vm1, %v3965_v48  ;;  %v3953_v7 = vadd.f32 %v8642_v55, %v8578_v45  ;;  %v10093_v48 = vld [vmem:[#allocation2 + $0x728] ss:$16 sps:$4 sm:$0xff]  }
 0x6f4   :  { %v8644_v26 = vpop.f32.mrf.mxu1 }
 0x6f5   :  { %v8645_v30 = vadd.f32 %v8644_v26, %v8643_v61 }
 0x6f7   :  { %v3956_v46 = vadd.f32 %v8645_v30, %v8581_v47 }
 0x6f9   :  { %v3966_v58 = vpack.c.bf16 %v3956_v46, %v3953_v7  ;;  %v10099_v46 = vld [vmem:[#allocation2 + $0x748] ss:$16 sps:$4 sm:$0xff]   ;;  %v10152_v7 = vld [vmem:[#allocation2 + $0x864] ss:$16 sps:$4 sm:$0xff]  }
 0x6fb   :  { %9247 = vmatmul.mubr.msk.bf16.gmra.mxu0 %vm1174_vm1, %v3966_v58  ;;  %v10150_v58 = vld [vmem:[#allocation2 + $0x860] ss:$16 sps:$4 sm:$0xff]  }
 0x6fc   :  { %4431 = vmatprep.mubr.bf16.mxu0 %v10089_v10 }
 0x703   :  { %4432 = vmatmul.mubr.bf16.vlgmr.msra.gmra.mxu0 %v10087_v63 }
 0x704   :  { %4439 = vmatprep.mubr.bf16.mxu0 %v10095_v19  ;;  %8793 = vmatpush3.bf16.msra.mxu0 %v11894_v18  ;;  %v10105_v18 = vld [vmem:[#allocation2 + $0x768] ss:$16 sps:$4 sm:$0xff]  }
 0x705   :  { %8794 = vmatprep.subr.bf16.mxu0 %v11900_v57  ;;  %v10113_v57 = vld [vmem:[#allocation2 + $0x78c] ss:$16 sps:$4 sm:$0xff]  }
 0x708   :  { %8795 = vmatpush3.bf16.msra.mxu0 %v11906_v50  ;;  %v10111_v50 = vld [vmem:[#allocation2 + $0x788] ss:$16 sps:$4 sm:$0xff]  }
 0x709   :  { %8796 = vmatprep.subr.bf16.mxu0 %v11912_v28  ;;  %v10119_v28 = vld [vmem:[#allocation2 + $0x7ac] ss:$16 sps:$4 sm:$0xff]  }
 0x70b   :  { %4440 = vmatmul.mubr.bf16.gmra.mxu0 %v10093_v48  ;;  %v10156_v48 = vld [vmem:[#allocation2 + $0x880] ss:$16 sps:$4 sm:$0xff]  }
 0x70c   :  { %4447 = vmatprep.mubr.bf16.mxu0 %v10101_v52  ;;  %8797 = vmatpush3.bf16.msra.mxu0 %v11918_v14  ;;  %v10117_v14 = vld [vmem:[#allocation2 + $0x7a8] ss:$16 sps:$4 sm:$0xff]  }
 0x70d   :  { %8798 = vmatprep.subr.bf16.mxu0 %v11924_v34  ;;  %v10125_v34 = vld [vmem:[#allocation2 + $0x7cc] ss:$16 sps:$4 sm:$0xff]  }
 0x710   :  { %8799 = vmatpush3.bf16.msra.mxu0 %v11930_v24  ;;  %v10123_v24 = vld [vmem:[#allocation2 + $0x7c8] ss:$16 sps:$4 sm:$0xff]  }
 0x711   :  { %8800 = vmatprep.subr.bf16.mxu0 %v11936_v4  ;;  %v10131_v4 = vld [vmem:[#allocation2 + $0x7ec] ss:$16 sps:$4 sm:$0xff]  }
 0x713   :  { %4448 = vmatmul.mubr.bf16.gmra.mxu0 %v10099_v46 }
 0x714   :  { %4455 = vmatprep.mubr.bf16.mxu0 %v10107_v37  ;;  %8801 = vmatpush3.bf16.msra.mxu0 %v11942_v1  ;;  %v4505_v1 = vld [vmem:[#allocation5 + $0x1c] sm:$0xf] }
 0x715   :  { %8802 = vmatprep.subr.bf16.mxu0 %v11948_v20  ;;  %9699 = vmatprep.subr.msk.bf16.mxu1 %vm1199_vm0, %v4505_v1  ;;  %v4531_v20 = vsel %vm1199_vm0, %v4505_v1, 0  ;;  %v10168_v1 = vld [vmem:[#allocation2 + $0x8c0] ss:$16 sps:$4 sm:$0xff]  }
 0x716   :  { %9251 = vmatpush3.bf16.msra.mxu1 %v4531_v20 }
 0x717   :  { %8856 = vmatprep.subr.bf16.mxu1 %v11986_v40 }
 0x718   :  { %8803 = vmatpush3.bf16.msra.mxu0 %v11954_v0  ;;  %v10129_v0 = vld [vmem:[#allocation2 + $0x7e8] ss:$16 sps:$4 sm:$0xff]  }
 0x719   :  { %8804 = vmatprep.subr.bf16.mxu0 %v11960_v29  ;;  %v12216_v29 = vpop.f32.mrf.mxu1 }
 0x71b   :  { %4456 = vmatmul.mubr.bf16.gmra.mxu0 %v10105_v18 }
 0x71c   :  { %4463 = vmatprep.mubr.bf16.mxu0 %v10113_v57  ;;  %8805 = vmatpush3.bf16.msra.mxu0 %v11966_v9  ;;  %v12218_v9 = vpop.f32.mrf.mxu1 }
 0x71d   :  { %8806 = vmatprep.subr.bf16.mxu0 %v11972_v6  ;;  %v10134_v6 = vld [vmem:[#allocation2 + $0x804] ss:$16 sps:$4 sm:$0xff]  }
 0x71e   :  { %v12220_v21 = vpop.f32.mrf.mxu1 }
 0x720   :  { %8807 = vmatpush3.bf16.msra.mxu0 %v11978_v11  ;;  %v10132_v11 = vld [vmem:[#allocation2 + $0x800] ss:$16 sps:$4 sm:$0xff]   ;;  %v12228_v59 = vpop.f32.mrf.mxu1 }
 0x722   :  { %v12233_v2 = vpop.f32.mrf.mxu1 }
 0x723   :  { %4464 = vmatmul.mubr.bf16.gmra.mxu0 %v10111_v50 }
 0x724   :  { %4471 = vmatprep.mubr.bf16.mxu0 %v10119_v28  ;;  %v12235_v22 = vpop.f32.mrf.mxu1  ;;  %v10164_v28 = vld [vmem:[#allocation2 + $0x8a4] ss:$16 sps:$4 sm:$0xff]  }
 0x726   :  { %v12239_v55 = vpop.f32.mrf.mxu1 }
 0x728   :  { %v12247_v30 = vpop.f32.mrf.mxu1 }
 0x72b   :  { %4472 = vmatmul.mubr.bf16.gmra.mxu0 %v10117_v14 }
 0x72c   :  { %4479 = vmatprep.mubr.bf16.mxu0 %v10125_v34  ;;  %v10162_v34 = vld [vmem:[#allocation2 + $0x8a0] ss:$16 sps:$4 sm:$0xff]  }
 0x733   :  { %4480 = vmatmul.mubr.bf16.gmra.mxu0 %v10123_v24 }
 0x734   :  { %4487 = vmatprep.mubr.bf16.mxu0 %v10131_v4 }
 0x73b   :  { %4488 = vmatmul.mubr.bf16.gmra.mxu0 %v10129_v0 }
 0x73c   :  { %4871 = vmatprep.mubr.bf16.mxu0 %v10134_v6 }
 0x741   :  { %v12252_v63 = vpop.f32.mrf.mxu1 }
 0x743   :  { %4872 = vmatmul.mubr.bf16.vlgmr.msra.gmra.mxu0 %v10132_v11  ;;  %v12254_v19 = vpop.f32.mrf.mxu1 }
 0x744   :  { %4879 = vmatprep.mubr.bf16.mxu0 %v10140_v41 }
 0x745   :  { %v12258_v46 = vpop.f32.mrf.mxu1 }
 0x747   :  { %v12266_v50 = vpop.f32.mrf.mxu1 }
 0x749   :  { %v12271_v24 = vpop.f32.mrf.mxu1 }
 0x74b   :  { %4880 = vmatmul.mubr.bf16.gmra.mxu0 %v10138_v51  ;;  %v12273_v4 = vpop.f32.mrf.mxu1  ;;  %v10174_v51 = vld [vmem:[#allocation2 + $0x8e0] ss:$16 sps:$4 sm:$0xff]  }
 0x74d   :  { %v12277_v0 = vpop.f32.mrf.mxu1 }
 0x78b   :  { %v9236_v43 = vpop.f32.mrf.mxu0 }
 0x78c   :  { %v12223_v61 = vadd.f32 %v9236_v43, %v11996_v5  ;;  %v10146_v5 = vld [vmem:[#allocation2 + $0x844] ss:$16 sps:$4 sm:$0xff]  }
 0x78d   :  { %v4030_v56 = vpop.f32.mrf.mxu0  ;;  %4887 = vmatprep.mubr.bf16.mxu0 %v10146_v5 }
 0x78e   :  { %v12226_v15 = vadd.f32 %v4030_v56, %v11999_v33  ;;  %4888 = vmatmul.mubr.bf16.gmra.mxu0 %v10144_v36  ;;  %v8693_v56 = vpop.f32.mrf.mxu1 }
 0x78f   :  { %v9237_v40 = vpop.f32.mrf.mxu0  ;;  %4895 = vmatprep.mubr.bf16.mxu0 %v10152_v7 }
 0x790   :  { %v12231_v62 = vadd.f32 %v9237_v40, %v12004_v16  ;;  %v10176_v40 = vld [vmem:[#allocation2 + $0x8e4] ss:$16 sps:$4 sm:$0xff]  }
 0x791   :  { %v12237_v53 = vpop.f32.mrf.mxu0 }
 0x796   :  { %4896 = vmatmul.mubr.bf16.gmra.mxu0 %v10150_v58  ;;  %v8673_v58 = vadd.f32 %v12218_v9, %v12216_v29  ;;  %v8682_v29 = vadd.f32 %v12247_v30, %v12239_v55 }
 0x79b   :  { %v9240_v33 = vpop.f32.mrf.mxu0 }
 0x79c   :  { %v12242_v26 = vadd.f32 %v9240_v33, %v12015_v42  ;;  %v10158_v42 = vld [vmem:[#allocation2 + $0x884] ss:$16 sps:$4 sm:$0xff]   ;;  %v12290_v33 = vpop.f32.mrf.mxu1 }
 0x79d   :  { %v4046_v16 = vpop.f32.mrf.mxu0  ;;  %4903 = vmatprep.mubr.bf16.mxu0 %v10158_v42 }
 0x79e   :  { %v12245_v45 = vadd.f32 %v4046_v16, %v12018_v27  ;;  %4904 = vmatmul.mubr.bf16.gmra.mxu0 %v10156_v48 }
 0x79f   :  { %v9241_v47 = vpop.f32.mrf.mxu0  ;;  %4911 = vmatprep.mubr.bf16.mxu0 %v10164_v28 }
 0x7a0   :  { %v12250_v10 = vadd.f32 %v9241_v47, %v12023_v17  ;;  %v12292_v47 = vpop.f32.mrf.mxu1 }
 0x7a1   :  { %v12256_v52 = vpop.f32.mrf.mxu0 }
 0x7a6   :  { %4912 = vmatmul.mubr.bf16.gmra.mxu0 %v10162_v34 }
 0x7ab   :  { %v9244_v27 = vpop.f32.mrf.mxu0 }
 0x7ac   :  { %v12261_v37 = vadd.f32 %v9244_v27, %v12034_v25  ;;  %v10170_v25 = vld [vmem:[#allocation2 + $0x8c4] ss:$16 sps:$4 sm:$0xff]   ;;  %v8698_v27 = vpop.f32.mrf.mxu1 }
 0x7ad   :  { %v4062_v17 = vpop.f32.mrf.mxu0  ;;  %4919 = vmatprep.mubr.bf16.mxu0 %v10170_v25 }
 0x7ae   :  { %v12264_v18 = vadd.f32 %v4062_v17, %v12037_v23  ;;  %4920 = vmatmul.mubr.bf16.gmra.mxu0 %v10168_v1  ;;  %v8699_v1 = vpop.f32.mrf.mxu1 }
 0x7af   :  { %v9245_v57 = vpop.f32.mrf.mxu0  ;;  %4927 = vmatprep.mubr.bf16.mxu0 %v10176_v40 }
 0x7b0   :  { %v12269_v14 = vadd.f32 %v9245_v57, %v12042_v60 }
 0x7b1   :  { %v12275_v20 = vpop.f32.mrf.mxu0 }
 0x7b6   :  { %4928 = vmatmul.mubr.bf16.gmra.mxu0 %v10174_v51 }
 0x7bb   :  { %v9248_v23 = vpop.f32.mrf.mxu0 }
 0x7bc   :  { %v12280_v6 = vadd.f32 %v9248_v23, %v12053_v12 }
 0x7bd   :  { %v4078_v60 = vpop.f32.mrf.mxu0 }
 0x7be   :  { %v12283_v11 = vadd.f32 %v4078_v60, %v12056_v39 }
 0x7bf   :  { %v9249_v43 = vpop.f32.mrf.mxu0 }
 0x7c0   :  { %v12286_v41 = vadd.f32 %v9249_v43, %v12061_v44  ;;  %v8676_v44 = vadd.f32 %v12228_v59, %v12220_v21  ;;  %v8679_v43 = vadd.f32 %v12235_v22, %v12233_v2  ;;  %v12303_v59 = vpop.f32.mrf.mxu1  ;;  %v8685_v2 = vadd.f32 %v12254_v19, %v12252_v63 }
 0x7c1   :  { %v12288_v5 = vpop.f32.mrf.mxu0  ;;  %v8688_v22 = vadd.f32 %v12266_v50, %v12258_v46  ;;  %v8694_v19 = vadd.f32 %v8693_v56, %v12277_v0  ;;  %v12775_v56 = vld [vmem:[#allocation43_spill] sm:$0xff] }
 0x7c3   :  { %v8735_v36 = vpop.f32.mrf.mxu0 }
 0x7c5   :  { %v8736_v12 = vpop.f32.mrf.mxu0 }
 0x7c6   :  { %v8737_v39 = vadd.f32 %v8736_v12, %v8735_v36 }
 0x7c7   :  { %v8738_v16 = vpop.f32.mrf.mxu0 }
 0x7c8   :  { %v4434_v17 = vadd.f32 %v8737_v39, %v8673_v58  ;;  %v8702_v39 = vpop.f32.mrf.mxu1 }
 0x7c9   :  { %v8739_v7 = vpop.f32.mrf.mxu0 }
 0x7ca   :  { %v8740_v42 = vadd.f32 %v8739_v7, %v8738_v16 }
 0x7cb   :  { %v8741_v48 = vpop.f32.mrf.mxu0 }
 0x7cc   :  { %v4437_v57 = vadd.f32 %v8740_v42, %v8676_v44  ;;  %v8704_v44 = vpop.f32.mrf.mxu1 }
 0x7cd   :  { %v8742_v28 = vpop.f32.mrf.mxu0 }
 0x7ce   :  { %v4496_v34 = vpack.c.bf16 %v4437_v57, %v4434_v17  ;;  %v8743_v23 = vadd.f32 %v8742_v28, %v8741_v48  ;;  %v8705_v28 = vpop.f32.mrf.mxu1 }
 0x7cf   :  { %v8744_v25 = vpop.f32.mrf.mxu0 }
 0x7d0   :  { %9252 = vmatprep.mubr.msk.bf16.mxu1 %vm1174_vm1, %v4496_v34  ;;  %v4442_v40 = vadd.f32 %v8743_v23, %v8679_v43  ;;  %v8707_v50 = vpop.f32.mrf.mxu1 }
 0x7d1   :  { %v8745_v60 = vpop.f32.mrf.mxu0 }
 0x7d2   :  { %v8746_v9 = vadd.f32 %v8745_v60, %v8744_v25 }
 0x7d3   :  { %v8747_v21 = vpop.f32.mrf.mxu0 }
 0x7d4   :  { %v4445_v51 = vadd.f32 %v8746_v9, %v8682_v29 }
 0x7d5   :  { %v8748_v36 = vpop.f32.mrf.mxu0 }
 0x7d6   :  { %v4497_v12 = vpack.c.bf16 %v4445_v51, %v4442_v40  ;;  %v8749_v7 = vadd.f32 %v8748_v36, %v8747_v21  ;;  %v12776_v51 = vld [vmem:[#allocation46_spill] sm:$0xff] }
 0x7d7   :  { %v8750_v16 = vpop.f32.mrf.mxu0 }
 0x7d8   :  { %9253 = vmatmul.mubr.msk.bf16.vlgmr.msra.gmra.mxu1 %vm1174_vm1, %v4497_v12  ;;  %v4450_v42 = vadd.f32 %v8749_v7, %v8685_v2  ;;  %v12777_v12 = vld [vmem:[#allocation47_spill] sm:$0xff]  ;;  %v12779_v2 = vld [vmem:[#allocation50_spill] sm:$0xff] }
 0x7d9   :  { %v8751_v58 = vpop.f32.mrf.mxu0  ;;  %8857 = vmatpush3.bf16.msra.mxu1 %v12090_v31 }
 0x7da   :  { %v8752_v55 = vadd.f32 %v8751_v58, %v8750_v16  ;;  %8858 = vmatprep.subr.bf16.mxu1 %v12100_v8  ;;  %v8691_v8 = vadd.f32 %v12273_v4, %v12271_v24  ;;  %v8700_v4 = vadd.f32 %v8699_v1, %v8698_v27  ;;  %v8703_v27 = vadd.f32 %v8702_v39, %v12303_v59 }
 0x7db   :  { %v8753_v30 = vpop.f32.mrf.mxu0  ;;  %v8706_v1 = vadd.f32 %v8705_v28, %v8704_v44 }
 0x7dc   :  { %v4453_v48 = vadd.f32 %v8752_v55, %v8688_v22 }
 0x7dd   :  { %v8754_v17 = vpop.f32.mrf.mxu0  ;;  %8859 = vmatpush3.bf16.msra.mxu1 %v12106_v54 }
 0x7de   :  { %v4498_v57 = vpack.c.bf16 %v4453_v48, %v4450_v42  ;;  %8860 = vmatprep.subr.bf16.mxu1 %v12112_v13  ;;  %v8755_v34 = vadd.f32 %v8754_v17, %v8753_v30  ;;  %v12780_v17 = vld [vmem:[#allocation51_spill] sm:$0xff] }
 0x7df   :  { %v8756_v31 = vpop.f32.mrf.mxu0 }
 0x7e0   :  { %9256 = vmatprep.mubr.msk.bf16.mxu1 %vm1174_vm1, %v4498_v57  ;;  %v4458_v25 = vadd.f32 %v8755_v34, %v8691_v8 }
 0x7e1   :  { %v8757_v63 = vpop.f32.mrf.mxu0  ;;  %8861 = vmatpush3.bf16.msra.mxu1 %v12119_v35  ;;  %v8708_v35 = vpop.f32.mrf.mxu1 }
 0x7e2   :  { %v8758_v46 = vadd.f32 %v8757_v63, %v8756_v31  ;;  %8862 = vmatprep.subr.bf16.mxu1 %v12129_v32  ;;  %v8697_v32 = vadd.f32 %v12292_v47, %v12290_v33  ;;  %v12778_v47 = vld [vmem:[#allocation48_spill] sm:$0xff] }
 0x7e3   :  { %v8759_v54 = vpop.f32.mrf.mxu0 }
 0x7e4   :  { %v4461_v13 = vadd.f32 %v8758_v46, %v8694_v19  ;;  %v8709_v19 = vadd.f32 %v8708_v35, %v8707_v50  ;;  %v10137_v50 = vld [vmem:[#allocation2 + $0x80c] ss:$16 sps:$4 sm:$0xff]  }
 0x7e5   :  { %v8760_v23 = vpop.f32.mrf.mxu0  ;;  %8863 = vmatpush3.bf16.msra.mxu1 %v12135_v3  ;;  %v8710_v3 = vpop.f32.mrf.mxu1 }
 0x7e6   :  { %v4499_v60 = vpack.c.bf16 %v4461_v13, %v4458_v25  ;;  %8864 = vmatprep.subr.bf16.mxu1 %v12141_v38  ;;  %v8761_v29 = vadd.f32 %v8760_v23, %v8759_v54 }
 0x7e7   :  { %v8762_v43 = vpop.f32.mrf.mxu0  ;;  %v8711_v7 = vpop.f32.mrf.mxu1 }
 0x7e8   :  { %9257 = vmatmul.mubr.msk.bf16.gmra.mxu1 %vm1174_vm1, %v4499_v60  ;;  %v4466_v21 = vadd.f32 %v8761_v29, %v8697_v32  ;;  %v8712_v59 = vadd.f32 %v8711_v7, %v8710_v3  ;;  %v10143_v3 = vld [vmem:[#allocation2 + $0x82c] ss:$16 sps:$4 sm:$0xff]  }
 0x7e9   :  { %v8763_v24 = vpop.f32.mrf.mxu0  ;;  %8865 = vmatpush3.bf16.msra.mxu1 %v12148_v49  ;;  %v8713_v55 = vpop.f32.mrf.mxu1  ;;  %v10167_v7 = vld [vmem:[#allocation2 + $0x8ac] ss:$16 sps:$4 sm:$0xff]  }
 0x7ea   :  { %v8764_v0 = vadd.f32 %v8763_v24, %v8762_v43  ;;  %8866 = vmatprep.subr.bf16.mxu1 %v12775_v56 }
 0x7eb   :  { %v8765_v9 = vpop.f32.mrf.mxu0  ;;  %v8714_v31 = vpop.f32.mrf.mxu1 }
 0x7ec   :  { %v4469_v40 = vadd.f32 %v8764_v0, %v8700_v4  ;;  %v8715_v24 = vadd.f32 %v8714_v31, %v8713_v55 }
 0x7ed   :  { %v8766_v38 = vpop.f32.mrf.mxu0  ;;  %8867 = vmatpush3.bf16.msra.mxu1 %v12776_v51  ;;  %v8716_v44 = vpop.f32.mrf.mxu1  ;;  %v10155_v51 = vld [vmem:[#allocation2 + $0x86c] ss:$16 sps:$4 sm:$0xff]  }
 0x7ee   :  { %v4500_v36 = vpack.c.bf16 %v4469_v40, %v4466_v21  ;;  %8868 = vmatprep.subr.bf16.mxu1 %v12777_v12  ;;  %v8767_v49 = vadd.f32 %v8766_v38, %v8765_v9  ;;  %v10135_v9 = vld [vmem:[#allocation2 + $0x808] ss:$16 sps:$4 sm:$0xff]   ;;  %v10149_v40 = vld [vmem:[#allocation2 + $0x84c] ss:$16 sps:$4 sm:$0xff]  }
 0x7ef   :  { %v8768_v16 = vpop.f32.mrf.mxu0  ;;  %v8717_v23 = vpop.f32.mrf.mxu1  ;;  %v10141_v21 = vld [vmem:[#allocation2 + $0x828] ss:$16 sps:$4 sm:$0xff]   ;;  %v10161_v12 = vld [vmem:[#allocation2 + $0x88c] ss:$16 sps:$4 sm:$0xff]  }
 0x7f0   :  { %9260 = vmatprep.mubr.msk.bf16.mxu1 %vm1174_vm1, %v4500_v36  ;;  %v4474_v30 = vadd.f32 %v8767_v49, %v8703_v27  ;;  %v8718_v32 = vadd.f32 %v8717_v23, %v8716_v44  ;;  %v10147_v38 = vld [vmem:[#allocation2 + $0x848] ss:$16 sps:$4 sm:$0xff]   ;;  %v10179_v27 = vld [vmem:[#allocation2 + $0x8ec] ss:$16 sps:$4 sm:$0xff]  }
 0x7f1   :  { %v8769_v33 = vpop.f32.mrf.mxu0  ;;  %8869 = vmatpush3.bf16.msra.mxu1 %v12778_v47  ;;  %v10153_v36 = vld [vmem:[#allocation2 + $0x868] ss:$16 sps:$4 sm:$0xff]  }
 0x7f2   :  { %v8770_v58 = vadd.f32 %v8769_v33, %v8768_v16  ;;  %8870 = vmatprep.subr.bf16.mxu1 %v12779_v2  ;;  %v10159_v16 = vld [vmem:[#allocation2 + $0x888] ss:$16 sps:$4 sm:$0xff]   ;;  %v10173_v33 = vld [vmem:[#allocation2 + $0x8cc] ss:$16 sps:$4 sm:$0xff]  }
 0x7f3   :  { %v8771_v22 = vpop.f32.mrf.mxu0  ;;  %v10165_v49 = vld [vmem:[#allocation2 + $0x8a8] ss:$16 sps:$4 sm:$0xff]  }
 0x7f4   :  { %v4477_v42 = vadd.f32 %v8770_v58, %v8706_v1  ;;  %v10171_v47 = vld [vmem:[#allocation2 + $0x8c8] ss:$16 sps:$4 sm:$0xff]   ;;  %v5042_v1 = vld [vmem:[#allocation5 + $0x20] sm:$0xf] }
 0x7f5   :  { %v8772_v48 = vpop.f32.mrf.mxu0  ;;  %8871 = vmatpush3.bf16.msra.mxu1 %v12780_v17  ;;  %9700 = vmatprep.subr.msk.bf16.mxu0 %vm1199_vm0, %v5042_v1  ;;  %v5068_v58 = vsel %vm1199_vm0, %v5042_v1, 0  ;;  %v10177_v2 = vld [vmem:[#allocation2 + $0x8e8] ss:$16 sps:$4 sm:$0xff]  }
 0x7f6   :  { %v4501_v57 = vpack.c.bf16 %v4477_v42, %v4474_v30  ;;  %v8773_v63 = vadd.f32 %v8772_v48, %v8771_v22  ;;  %9269 = vmatpush3.bf16.msra.mxu0 %v5068_v58 }
 0x7f7   :  { %v8774_v34 = vpop.f32.mrf.mxu0 }
 0x7f8   :  { %9261 = vmatmul.mubr.msk.bf16.gmra.mxu1 %vm1174_vm1, %v4501_v57  ;;  %v4482_v46 = vadd.f32 %v8773_v63, %v8709_v19 }
 0x7f9   :  { %v8775_v8 = vpop.f32.mrf.mxu0 }
 0x7fa   :  { %v8776_v39 = vadd.f32 %v8775_v8, %v8774_v34 }
 0x7fb   :  { %v8777_v28 = vpop.f32.mrf.mxu0 }
 0x7fc   :  { %v4485_v54 = vadd.f32 %v8776_v39, %v8712_v59 }
 0x7fd   :  { %v8778_v25 = vpop.f32.mrf.mxu0 }
 0x7fe   :  { %v4502_v13 = vpack.c.bf16 %v4485_v54, %v4482_v46  ;;  %v8779_v43 = vadd.f32 %v8778_v25, %v8777_v28 }
 0x7ff   :  { %v8780_v60 = vpop.f32.mrf.mxu0 }
 0x800   :  { %9264 = vmatprep.mubr.msk.bf16.mxu1 %vm1174_vm1, %v4502_v13  ;;  %v4490_v0 = vadd.f32 %v8779_v43, %v8715_v24 }
 0x801   :  { %v8781_v29 = vpop.f32.mrf.mxu0 }
 0x802   :  { %v8782_v4 = vadd.f32 %v8781_v29, %v8780_v60 }
 0x803   :  { %v8808_v22 = vpop.f32.mrf.mxu0 }
 0x804   :  { %v4493_v56 = vadd.f32 %v8782_v4, %v8718_v32 }
 0x805   :  { %v8809_v55 = vpop.f32.mrf.mxu0 }
 0x806   :  { %v4503_v35 = vpack.c.bf16 %v4493_v56, %v4490_v0 }
 0x807   :  { %v8811_v42 = vpop.f32.mrf.mxu0 }
 0x808   :  { %9265 = vmatmul.mubr.msk.bf16.gmra.mxu1 %vm1174_vm1, %v4503_v35 }
 0x809   :  { %4968 = vmatprep.mubr.bf16.mxu1 %v10137_v50  ;;  %v8812_v34 = vpop.f32.mrf.mxu0 }
 0x80b   :  { %v8814_v8 = vpop.f32.mrf.mxu0 }
 0x80d   :  { %v8815_v19 = vpop.f32.mrf.mxu0 }
 0x80f   :  { %v8817_v44 = vpop.f32.mrf.mxu0 }
 0x810   :  { %4969 = vmatmul.mubr.bf16.vlgmr.msra.gmra.mxu1 %v10135_v9 }
 0x811   :  { %4976 = vmatprep.mubr.bf16.mxu1 %v10143_v3  ;;  %v8818_v54 = vpop.f32.mrf.mxu0 }
 0x818   :  { %4977 = vmatmul.mubr.bf16.gmra.mxu1 %v10141_v21 }
 0x819   :  { %4984 = vmatprep.mubr.bf16.mxu1 %v10149_v40 }
 0x820   :  { %4985 = vmatmul.mubr.bf16.gmra.mxu1 %v10147_v38 }
 0x821   :  { %4992 = vmatprep.mubr.bf16.mxu1 %v10155_v51 }
 0x828   :  { %4993 = vmatmul.mubr.bf16.gmra.mxu1 %v10153_v36 }
 0x829   :  { %5000 = vmatprep.mubr.bf16.mxu1 %v10161_v12 }
 0x830   :  { %5001 = vmatmul.mubr.bf16.gmra.mxu1 %v10159_v16 }
 0x831   :  { %5008 = vmatprep.mubr.bf16.mxu1 %v10167_v7 }
 0x838   :  { %5009 = vmatmul.mubr.bf16.gmra.mxu1 %v10165_v49 }
 0x839   :  { %5016 = vmatprep.mubr.bf16.mxu1 %v10173_v33  ;;  %v8813_v33 = vadd.f32 %v8812_v34, %v8811_v42 }
 0x840   :  { %5017 = vmatmul.mubr.bf16.gmra.mxu1 %v10171_v47 }
 0x841   :  { %5024 = vmatprep.mubr.bf16.mxu1 %v10179_v27 }
 0x848   :  { %5025 = vmatmul.mubr.bf16.gmra.mxu1 %v10177_v2 }
 0x898   :  { %v9254_v30 = vpop.f32.mrf.mxu1 }
 0x899   :  { %v12340_v48 = vadd.f32 %v9254_v30, %v12223_v61 }
 0x89a   :  { %v4567_v17 = vpop.f32.mrf.mxu1 }
 0x89b   :  { %v12343_v57 = vadd.f32 %v4567_v17, %v12226_v15 }
 0x89c   :  { %v9255_v31 = vpop.f32.mrf.mxu1 }
 0x89d   :  { %v12346_v63 = vadd.f32 %v9255_v31, %v12231_v62  ;;  %v8820_v62 = vpop.f32.mrf.mxu0 }
 0x89e   :  { %v12348_v59 = vpop.f32.mrf.mxu1 }
 0x89f   :  { %v8821_v13 = vpop.f32.mrf.mxu0 }
 0x8a1   :  { %v8823_v43 = vpop.f32.mrf.mxu0 }
 0x8a3   :  { %v8824_v32 = vpop.f32.mrf.mxu0 }
 0x8a8   :  { %v9258_v39 = vpop.f32.mrf.mxu1 }
 0x8a9   :  { %v12351_v28 = vadd.f32 %v9258_v39, %v12242_v26 }
 0x8aa   :  { %v4583_v61 = vpop.f32.mrf.mxu1 }
 0x8ab   :  { %v12354_v46 = vadd.f32 %v4583_v61, %v12245_v45  ;;  %v8816_v61 = vadd.f32 %v8815_v19, %v8814_v8 }
 0x8ac   :  { %v9259_v15 = vpop.f32.mrf.mxu1 }
 0x8ad   :  { %v12357_v25 = vadd.f32 %v9259_v15, %v12250_v10  ;;  %v8826_v10 = vpop.f32.mrf.mxu0  ;;  %v8819_v15 = vadd.f32 %v8818_v54, %v8817_v44 }
 0x8ae   :  { %v12359_v23 = vpop.f32.mrf.mxu1 }
 0x8af   :  { %v8827_v0 = vpop.f32.mrf.mxu0 }
 0x8b1   :  { %v8829_v35 = vpop.f32.mrf.mxu0 }
 0x8b3   :  { %v8830_v21 = vpop.f32.mrf.mxu0 }
 0x8b5   :  { %v8832_v51 = vpop.f32.mrf.mxu0 }
 0x8b7   :  { %v8833_v16 = vpop.f32.mrf.mxu0 }
 0x8b8   :  { %v9262_v60 = vpop.f32.mrf.mxu1 }
 0x8b9   :  { %v12362_v29 = vadd.f32 %v9262_v60, %v12261_v37 }
 0x8ba   :  { %v4599_v26 = vpop.f32.mrf.mxu1 }
 0x8bb   :  { %v12365_v24 = vadd.f32 %v4599_v26, %v12264_v18 }
 0x8bc   :  { %v9263_v45 = vpop.f32.mrf.mxu1 }
 0x8bd   :  { %v12368_v4 = vadd.f32 %v9263_v45, %v12269_v14 }
 0x8be   :  { %v12370_v56 = vpop.f32.mrf.mxu1 }
 0x8c8   :  { %v9266_v50 = vpop.f32.mrf.mxu1 }
 0x8c9   :  { %v12373_v9 = vadd.f32 %v9266_v50, %v12280_v6  ;;  %v8810_v6 = vadd.f32 %v8809_v55, %v8808_v22 }
 0x8ca   :  { %v4615_v37 = vpop.f32.mrf.mxu1 }
 0x8cb   :  { %v12376_v3 = vadd.f32 %v4615_v37, %v12283_v11  ;;  %v8835_v11 = vpop.f32.mrf.mxu0 }
 0x8cc   :  { %v9267_v18 = vpop.f32.mrf.mxu1 }
 0x8cd   :  { %v12379_v40 = vadd.f32 %v9267_v18, %v12286_v41  ;;  %v8836_v17 = vpop.f32.mrf.mxu0 }
 0x8ce   :  { %v12381_v14 = vpop.f32.mrf.mxu1 }
 0x8cf   :  { %v8838_v45 = vpop.f32.mrf.mxu0 }
 0x8d0   :  { %v8872_v38 = vpop.f32.mrf.mxu1 }
 0x8d1   :  { %v8839_v37 = vpop.f32.mrf.mxu0 }
 0x8d2   :  { %v8873_v36 = vpop.f32.mrf.mxu1 }
 0x8d3   :  { %v8874_v7 = vadd.f32 %v8873_v36, %v8872_v38  ;;  %v8822_v36 = vadd.f32 %v8821_v13, %v8820_v62 }
 0x8d4   :  { %v8875_v12 = vpop.f32.mrf.mxu1 }
 0x8d5   :  { %v4971_v1 = vadd.f32 %v8874_v7, %v8810_v6  ;;  %v8841_v6 = vpop.f32.mrf.mxu0 }
 0x8d6   :  { %v8876_v49 = vpop.f32.mrf.mxu1 }
 0x8d7   :  { %v8877_v47 = vadd.f32 %v8876_v49, %v8875_v12  ;;  %v8825_v12 = vadd.f32 %v8824_v32, %v8823_v43 }
 0x8d8   :  { %v8878_v27 = vpop.f32.mrf.mxu1 }
 0x8d9   :  { %v4974_v58 = vadd.f32 %v8877_v47, %v8813_v33  ;;  %v8842_v47 = vpop.f32.mrf.mxu0 }
 0x8da   :  { %v8879_v2 = vpop.f32.mrf.mxu1 }
 0x8db   :  { %v5033_v30 = vpack.c.bf16 %v4974_v58, %v4971_v1  ;;  %v8880_v31 = vadd.f32 %v8879_v2, %v8878_v27  ;;  %v8828_v58 = vadd.f32 %v8827_v0, %v8826_v10  ;;  %v8831_v2 = vadd.f32 %v8830_v21, %v8829_v35 }
 0x8dc   :  { %v8881_v41 = vpop.f32.mrf.mxu1 }
 0x8dd   :  { %9270 = vmatprep.mubr.msk.bf16.mxu0 %vm1174_vm1, %v5033_v30  ;;  %v4979_v22 = vadd.f32 %v8880_v31, %v8816_v61  ;;  %v8844_v31 = vpop.f32.mrf.mxu0 }
 0x8de   :  { %v8882_v39 = vpop.f32.mrf.mxu1 }
 0x8df   :  { %v8883_v60 = vadd.f32 %v8882_v39, %v8881_v41  ;;  %v8845_v61 = vpop.f32.mrf.mxu0 }
 0x8e0   :  { %v8884_v26 = vpop.f32.mrf.mxu1 }
 0x8e1   :  { %v4982_v55 = vadd.f32 %v8883_v60, %v8819_v15 }
 0x8e2   :  { %v8885_v42 = vpop.f32.mrf.mxu1 }
 0x8e3   :  { %v5034_v34 = vpack.c.bf16 %v4982_v55, %v4979_v22  ;;  %v8886_v18 = vadd.f32 %v8885_v42, %v8884_v26  ;;  %v8834_v26 = vadd.f32 %v8833_v16, %v8832_v51  ;;  %v8837_v22 = vadd.f32 %v8836_v17, %v8835_v11 }
 0x8e4   :  { %v8887_v50 = vpop.f32.mrf.mxu1 }
 0x8e5   :  { %9271 = vmatmul.mubr.msk.bf16.vlgmr.msra.gmra.mxu0 %vm1174_vm1, %v5034_v34  ;;  %v4987_v8 = vadd.f32 %v8886_v18, %v8822_v36  ;;  %v8847_v34 = vpop.f32.mrf.mxu0 }
 0x8e6   :  { %v8888_v38 = vpop.f32.mrf.mxu1 }
 0x8e7   :  { %v8889_v7 = vadd.f32 %v8888_v38, %v8887_v50  ;;  %v8848_v18 = vpop.f32.mrf.mxu0 }
 0x8e8   :  { %v8890_v49 = vpop.f32.mrf.mxu1 }
 0x8e9   :  { %v4990_v19 = vadd.f32 %v8889_v7, %v8825_v12  ;;  %v8840_v12 = vadd.f32 %v8839_v37, %v8838_v45  ;;  %v8843_v7 = vadd.f32 %v8842_v47, %v8841_v6 }
 0x8ea   :  { %v8891_v44 = vpop.f32.mrf.mxu1 }
 0x8eb   :  { %v5035_v54 = vpack.c.bf16 %v4990_v19, %v4987_v8  ;;  %v8892_v27 = vadd.f32 %v8891_v44, %v8890_v49  ;;  %v8850_v19 = vpop.f32.mrf.mxu0 }
 0x8ec   :  { %v8893_v33 = vpop.f32.mrf.mxu1 }
 0x8ed   :  { %9274 = vmatprep.mubr.msk.bf16.mxu0 %vm1174_vm1, %v5035_v54  ;;  %v4995_v62 = vadd.f32 %v8892_v27, %v8828_v58  ;;  %v8851_v44 = vpop.f32.mrf.mxu0  ;;  %v8849_v58 = vadd.f32 %v8848_v18, %v8847_v34  ;;  %v12782_v34 = vld [vmem:[#allocation25_spill] sm:$0xff]  ;;  %v12785_v18 = vld [vmem:[#allocation31_spill] sm:$0xff] }
 0x8ee   :  { %v8894_v1 = vpop.f32.mrf.mxu1 }
 0x8ef   :  { %v8895_v30 = vadd.f32 %v8894_v1, %v8893_v33  ;;  %v8846_v1 = vadd.f32 %v8845_v61, %v8844_v31  ;;  %v10180_v61 = vld [vmem:[#allocation8] sm:$0xff]  }
 0x8f0   :  { %v8896_v41 = vpop.f32.mrf.mxu1  ;;  %9302 = vmatprep.mubr.bf16.mxu1 %v10180_v61 }
 0x8f1   :  { %v4998_v13 = vadd.f32 %v8895_v30, %v8831_v2  ;;  %v8853_v30 = vpop.f32.mrf.mxu0 }
 0x8f2   :  { %v8897_v43 = vpop.f32.mrf.mxu1 }
 0x8f3   :  { %v5036_v32 = vpack.c.bf16 %v4998_v13, %v4995_v62  ;;  %v8898_v15 = vadd.f32 %v8897_v43, %v8896_v41  ;;  %v8854_v62 = vpop.f32.mrf.mxu0 }
 0x8f4   :  { %v8899_v39 = vpop.f32.mrf.mxu1 }
 0x8f5   :  { %9275 = vmatmul.mubr.msk.bf16.gmra.mxu0 %vm1174_vm1, %v5036_v32  ;;  %v5003_v10 = vadd.f32 %v8898_v15, %v8834_v26  ;;  %v8855_v15 = vadd.f32 %v8854_v62, %v8853_v30 }
 0x8f6   :  { %v8900_v60 = vpop.f32.mrf.mxu1 }
 0x8f7   :  { %v8901_v55 = vadd.f32 %v8900_v60, %v8899_v39  ;;  %v8852_v39 = vadd.f32 %v8851_v44, %v8850_v19 }
 0x8f8   :  { %v8902_v42 = vpop.f32.mrf.mxu1 }
 0x8f9   :  { %v5006_v0 = vadd.f32 %v8901_v55, %v8837_v22  ;;  %v10181_v55 = vld [vmem:[#allocation8 + $0x10] sm:$0xff]  }
 0x8fa   :  { %v8903_v35 = vpop.f32.mrf.mxu1 }
 0x8fb   :  { %v5037_v21 = vpack.c.bf16 %v5006_v0, %v5003_v10  ;;  %v8904_v38 = vadd.f32 %v8903_v35, %v8902_v42  ;;  %v12781_v42 = vld [vmem:[#allocation32_spill] sm:$0xff]  ;;  %v12783_v0 = vld [vmem:[#allocation23_spill] sm:$0xff] }
 0x8fc   :  { %v8905_v50 = vpop.f32.mrf.mxu1  ;;  %v1365_v10 = vadd.f32 %v12782_v34, %v12781_v42 }
 0x8fd   :  { %9278 = vmatprep.mubr.msk.bf16.mxu0 %vm1174_vm1, %v5037_v21  ;;  %v5011_v51 = vadd.f32 %v8904_v38, %v8840_v12  ;;  %v12784_v21 = vld [vmem:[#allocation39_spill] sm:$0xff]  ;;  %v12786_v12 = vld [vmem:[#allocation37_spill] sm:$0xff] }
 0x8fe   :  { %v8906_v36 = vpop.f32.mrf.mxu1  ;;  %v1946_v35 = vadd.f32 %v12783_v0, %v1365_v10 }
 0x8ff   :  { %v8907_v49 = vadd.f32 %v8906_v36, %v8905_v50 }
 0x900   :  { %v8908_v8 = vpop.f32.mrf.mxu1  ;;  %v2483_v50 = vadd.f32 %v12784_v21, %v1946_v35 }
 0x901   :  { %v5014_v16 = vadd.f32 %v8907_v49, %v8843_v7 }
 0x902   :  { %v8909_v11 = vpop.f32.mrf.mxu1  ;;  %v3020_v38 = vadd.f32 %v12785_v18, %v2483_v50  ;;  %v12793_v18 = vld [vmem:[#allocation40_spill] sm:$0xff] }
 0x903   :  { %v5038_v17 = vpack.c.bf16 %v5014_v16, %v5011_v51  ;;  %v8910_v33 = vadd.f32 %v8909_v11, %v8908_v8  ;;  %v12398_v8 = vld [vmem:[#allocation7] ss:$0 sm:$0xff] }
 0x904   :  { %v8911_v54 = vpop.f32.mrf.mxu1  ;;  %v3557_v7 = vadd.f32 %v12786_v12, %v3020_v38  ;;  %v12795_v12 = vld [vmem:[#allocation29_spill] sm:$0xff] }
 0x905   :  { %9279 = vmatmul.mubr.msk.bf16.gmra.mxu0 %vm1174_vm1, %v5038_v17  ;;  %v5019_v45 = vadd.f32 %v8910_v33, %v8846_v1 }
 0x906   :  { %v8912_v27 = vpop.f32.mrf.mxu1  ;;  %v4094_v51 = vadd.f32 %v12237_v53, %v3557_v7 }
 0x907   :  { %v8913_v2 = vadd.f32 %v8912_v27, %v8911_v54 }
 0x908   :  { %v8914_v41 = vpop.f32.mrf.mxu1  ;;  %v4631_v17 = vadd.f32 %v12348_v59, %v4094_v51 }
 0x909   :  { %v5022_v37 = vadd.f32 %v8913_v2, %v8849_v58  ;;  %v12787_v58 = vld [vmem:[#allocation36_spill] sm:$0xff]  ;;  %v12788_v2 = vld [vmem:[#allocation26_spill] sm:$0xff] }
 0x90a   :  { %v8915_v6 = vpop.f32.mrf.mxu1  ;;  %v1381_v30 = vadd.f32 %v12788_v2, %v12787_v58 }
 0x90b   :  { %v5039_v47 = vpack.c.bf16 %v5022_v37, %v5019_v45  ;;  %v8916_v43 = vadd.f32 %v8915_v6, %v8914_v41  ;;  %v12789_v45 = vld [vmem:[#allocation24_spill] sm:$0xff] }
 0x90c   :  { %v8917_v13 = vpop.f32.mrf.mxu1  ;;  %v1950_v37 = vadd.f32 %v12789_v45, %v1381_v30 }
 0x90d   :  { %9282 = vmatprep.mubr.msk.bf16.mxu0 %vm1174_vm1, %v5039_v47  ;;  %v5027_v26 = vadd.f32 %v8916_v43, %v8852_v39  ;;  %v12791_v43 = vld [vmem:[#allocation33_spill] sm:$0xff] }
 0x90e   :  { %v8918_v32 = vpop.f32.mrf.mxu1 }
 0x90f   :  { %v8919_v60 = vadd.f32 %v8918_v32, %v8917_v13 }
 0x911   :  { %v5030_v22 = vadd.f32 %v8919_v60, %v8855_v15  ;;  %v12792_v15 = vld [vmem:[#allocation38_spill] sm:$0xff] }
 0x913   :  { %v5040_v31 = vpack.c.bf16 %v5030_v22, %v5027_v26 }
 0x915   :  { %9283 = vmatmul.mubr.msk.bf16.gmra.mxu0 %vm1174_vm1, %v5040_v31 }
 0x916   :  { %9322 = vmatprep.mubr.bf16.mxu0 %v10181_v55 }
 0x9a5   :  { %v9272_v36 = vpop.f32.mrf.mxu0 }
 0x9a6   :  { %v5169_v49 = vadd.f32 %v9272_v36, %v12340_v48 }
 0x9a7   :  { %v5104_v19 = vpop.f32.mrf.mxu0 }
 0x9a8   :  { %v5167_v16 = vadd.f32 %v5104_v19, %v12343_v57  ;;  %v5192_v44 = vadd.f32 %v12398_v8, %v5169_v49 }
 0x9a9   :  { %v9273_v11 = vpop.f32.mrf.mxu0 }
 0x9aa   :  { %v5170_v54 = vadd.f32 %v9273_v11, %v12346_v63  ;;  %v5190_v27 = vadd.f32 %v12398_v8, %v5167_v16  ;;  %v5208_v41 = vmax.f32 %v5192_v44, 0.0  ;;  %v12790_v63 = vld [vmem:[#allocation45_spill] sm:$0xff]  ;;  %v12797_v11 = vld [vmem:[#allocation34_spill] sm:$0xff] }
 0x9ab   :  { %v5107_v33 = vpop.f32.mrf.mxu0  ;;  %v2487_v62 = vadd.f32 %v12790_v63, %v1950_v37 }
 0x9ac   :  { %v5193_v1 = vadd.f32 %v12398_v8, %v5170_v54  ;;  %v5168_v48 = vadd.f32 %v5107_v33, %v4631_v17  ;;  %v5206_v59 = vmax.f32 %v5190_v27, 0.0  ;;  %v12798_v54 = vld [vmem:[#allocation41_spill] sm:$0xff] }
 0x9ad   :  { %v3024_v32 = vadd.f32 %v12791_v43, %v2487_v62  ;;  %v12801_v43 = vld [vmem:[#allocation30_spill] sm:$0xff] }
 0x9ae   :  { %v5209_v53 = vmax.f32 %v5193_v1, 0.0  ;;  %v5191_v57 = vadd.f32 %v12398_v8, %v5168_v48 }
 0x9af   :  { %v3561_v60 = vadd.f32 %v12792_v15, %v3024_v32 }
 0x9b0   :  { %v12411_v6 = vpack.c.bf16 %v5209_v53, %v5208_v41  ;;  %v5207_v47 = vmax.f32 %v5191_v57, 0.0 }
 0x9b1   :  { %v4098_v31 = vadd.f32 %v12256_v52, %v3561_v60 }
 0x9b2   :  { %v12414_v13 = vpack.c.bf16 %v5207_v47, %v5206_v59  ;;  %v12799_v47 = vld [vmem:[#allocation44_spill] sm:$0xff] }
 0x9b3   :  { %v4635_v42 = vadd.f32 %v12359_v23, %v4098_v31 }
 0x9b5   :  { %v9276_v39 = vpop.f32.mrf.mxu0 }
 0x9b6   :  { %v5173_v26 = vadd.f32 %v9276_v39, %v12351_v28  ;;  %v12794_v28 = vld [vmem:[#allocation27_spill] sm:$0xff] }
 0x9b7   :  { %v5120_v22 = vpop.f32.mrf.mxu0  ;;  %v1397_v38 = vadd.f32 %v12794_v28, %v12793_v18 }
 0x9b8   :  { %v5171_v61 = vadd.f32 %v5120_v22, %v12354_v46  ;;  %v5196_v34 = vadd.f32 %v12398_v8, %v5173_v26  ;;  %v12803_v22 = vld [vmem:[#allocation35_spill] sm:$0xff] }
 0x9b9   :  { %v9277_v55 = vpop.f32.mrf.mxu0  ;;  %v1954_v7 = vadd.f32 %v12795_v12, %v1397_v38 }
 0x9ba   :  { %v5174_v10 = vadd.f32 %v9277_v55, %v12357_v25  ;;  %v5194_v35 = vadd.f32 %v12398_v8, %v5171_v61  ;;  %v5212_v36 = vmax.f32 %v5196_v34, 0.0  ;;  %v12796_v25 = vld [vmem:[#allocation49_spill] sm:$0xff]  ;;  %v12804_v55 = vld [vmem:[#allocation42_spill] sm:$0xff] }
 0x9bb   :  { %v5123_v0 = vpop.f32.mrf.mxu0  ;;  %v2491_v51 = vadd.f32 %v12796_v25, %v1954_v7  ;;  %v10183_v25 = vld [vmem:[#allocation8 + $0x18] sm:$0xff]  }
 0x9bc   :  { %v5197_v21 = vadd.f32 %v12398_v8, %v5174_v10  ;;  %v5172_v50 = vadd.f32 %v5123_v0, %v4635_v42  ;;  %v5210_v23 = vmax.f32 %v5194_v35, 0.0 }
 0x9bd   :  { %v3028_v17 = vadd.f32 %v12797_v11, %v2491_v51  ;;  %v10185_v51 = vld [vmem:[#allocation10 + $0x70] sm:$0xff]  }
 0x9be   :  { %v5213_v52 = vmax.f32 %v5197_v21, 0.0  ;;  %v5195_v46 = vadd.f32 %v12398_v8, %v5172_v50  ;;  %v10193_v11 = vld [vmem:[#allocation10 + $0x30] sm:$0xff]  }
 0x9bf   :  { %v3565_v33 = vadd.f32 %v12798_v54, %v3028_v17  ;;  %v10186_v17 = vld [vmem:[#allocation10 + $0x68] sm:$0xff]   ;;  %v10187_v54 = vld [vmem:[#allocation10 + $0x60] sm:$0xff]  }
 0x9c0   :  { %v12430_v49 = vpack.c.bf16 %v5213_v52, %v5212_v36  ;;  %v5211_v19 = vmax.f32 %v5195_v46, 0.0 }
 0x9c1   :  { %v4102_v48 = vadd.f32 %v12275_v20, %v3565_v33  ;;  %v10195_v33 = vld [vmem:[#allocation10 + $0x20] sm:$0xff]  }
 0x9c2   :  { %v12433_v16 = vpack.c.bf16 %v5211_v19, %v5210_v23 }
 0x9c3   :  { %v4639_v30 = vadd.f32 %v12370_v56, %v4102_v48  ;;  %v10189_v48 = vld [vmem:[#allocation10 + $0x50] sm:$0xff]  }
 0x9c5   :  { %v9280_v44 = vpop.f32.mrf.mxu0 }
 0x9c6   :  { %v5177_v27 = vadd.f32 %v9280_v44, %v12362_v29  ;;  %v12800_v29 = vld [vmem:[#allocation28_spill] sm:$0xff]  ;;  %v10194_v44 = vld [vmem:[#allocation10 + $0x28] sm:$0xff]  }
 0x9c7   :  { %v5136_v1 = vpop.f32.mrf.mxu0  ;;  %v1413_v63 = vadd.f32 %v12800_v29, %v12799_v47 }
 0x9c8   :  { %v5175_v58 = vadd.f32 %v5136_v1, %v12365_v24  ;;  %v5200_v41 = vadd.f32 %v12398_v8, %v5177_v27  ;;  %v10188_v27 = vld [vmem:[#allocation10 + $0x58] sm:$0xff]  }
 0x9c9   :  { %v9281_v2 = vpop.f32.mrf.mxu0  ;;  %v1958_v32 = vadd.f32 %v12801_v43, %v1413_v63  ;;  %v10196_v1 = vld [vmem:[#allocation10 + $0x18] sm:$0xff]  }
 0x9ca   :  { %v5178_v53 = vadd.f32 %v9281_v2, %v12368_v4  ;;  %v5198_v45 = vadd.f32 %v12398_v8, %v5175_v58  ;;  %v5216_v62 = vmax.f32 %v5200_v41, 0.0  ;;  %v12802_v4 = vld [vmem:[#allocation53_spill] sm:$0xff]  ;;  %v10197_v58 = vld [vmem:[#allocation10 + $0x10] sm:$0xff]   ;;  %v10190_v2 = vld [vmem:[#allocation10 + $0x48] sm:$0xff]  }
 0x9cb   :  { %v5139_v57 = vpop.f32.mrf.mxu0  ;;  %v2495_v60 = vadd.f32 %v12802_v4, %v1958_v32  ;;  %v10198_v41 = vld [vmem:[#allocation10 + $0x8] sm:$0xff]   ;;  %v10200_v32 = vld [vmem:[#allocation8 + $0x20] sm:$0xff]   ;;  %v10202_v4 = vld [vmem:[#allocation8 + $0x30] sm:$0xff]  }
 0x9cc   :  { %v5201_v37 = vadd.f32 %v12398_v8, %v5178_v53  ;;  %v5176_v59 = vadd.f32 %v5139_v57, %v4639_v30  ;;  %v5214_v56 = vmax.f32 %v5198_v45, 0.0  ;;  %v10191_v30 = vld [vmem:[#allocation10 + $0x40] sm:$0xff]  }
 0x9cd   :  { %v3032_v31 = vadd.f32 %v12803_v22, %v2495_v60  ;;  %v10199_v53 = vld [vmem:[#allocation10] sm:$0xff]   ;;  %v10203_v60 = vld [vmem:[#allocation8 + $0x38] sm:$0xff]   ;;  %v10204_v22 = vld [vmem:[#allocation8 + $0x40] sm:$0xff]  }
 0x9ce   :  { %v5217_v20 = vmax.f32 %v5201_v37, 0.0  ;;  %v5199_v24 = vadd.f32 %v12398_v8, %v5176_v59 }
 0x9cf   :  { %v3569_v42 = vadd.f32 %v12804_v55, %v3032_v31  ;;  %v10212_v31 = vld [vmem:[#allocation10 + $0xb8] sm:$0xff]   ;;  %v10214_v55 = vld [vmem:[#allocation10 + $0xa8] sm:$0xff]  }
 0x9d0   :  { %v12449_v39 = vpack.c.bf16 %v5217_v20, %v5216_v62  ;;  %v5215_v15 = vmax.f32 %v5199_v24, 0.0 }
 0x9d1   :  { %v4106_v0 = vadd.f32 %v12288_v5, %v3569_v42  ;;  %v10215_v42 = vld [vmem:[#allocation10 + $0xa0] sm:$0xff]  }
 0x9d2   :  { %v12452_v26 = vpack.c.bf16 %v5215_v15, %v5214_v56  ;;  %v10201_v15 = vld [vmem:[#allocation8 + $0x28] sm:$0xff]  }
 0x9d3   :  { %v4643_v50 = vadd.f32 %v12381_v14, %v4106_v0  ;;  %v10192_v14 = vld [vmem:[#allocation10 + $0x38] sm:$0xff]   ;;  %v10217_v0 = vld [vmem:[#allocation10 + $0x90] sm:$0xff]  }
 0x9d5   :  { %v9284_v61 = vpop.f32.mrf.mxu0 }
 0x9d6   :  { %v5181_v34 = vadd.f32 %v9284_v61, %v12373_v9  ;;  %v10213_v61 = vld [vmem:[#allocation10 + $0xb0] sm:$0xff]  }
 0x9d7   :  { %v5152_v10 = vpop.f32.mrf.mxu0 }
 0x9d8   :  { %v5179_v35 = vadd.f32 %v5152_v10, %v12376_v3  ;;  %v5204_v18 = vadd.f32 %v12398_v8, %v5181_v34  ;;  %v10216_v34 = vld [vmem:[#allocation10 + $0x98] sm:$0xff]  }
 0x9d9   :  { %v9285_v21 = vpop.f32.mrf.mxu0  ;;  %v10205_v10 = vld [vmem:[#allocation8 + $0x48] sm:$0xff]  }
 0x9da   :  { %v5182_v28 = vadd.f32 %v9285_v21, %v12379_v40  ;;  %v5202_v36 = vadd.f32 %v12398_v8, %v5179_v35  ;;  %v5220_v12 = vmax.f32 %v5204_v18, 0.0  ;;  %v10184_v40 = vld [vmem:[#allocation10 + $0x78] sm:$0xff]   ;;  %v10206_v35 = vld [vmem:[#allocation8 + $0x50] sm:$0xff]   ;;  %v10220_v21 = vld [vmem:[#allocation10 + $0x88] sm:$0xff]  }
 0x9db   :  { %v5155_v38 = vpop.f32.mrf.mxu0  ;;  %v12554_v18 = vld [vmem:[#allocation10 + $0xf8] sm:$0xff]  }
 0x9dc   :  { %v5205_v52 = vadd.f32 %v12398_v8, %v5182_v28  ;;  %v5180_v46 = vadd.f32 %v5155_v38, %v4643_v50  ;;  %v5218_v5 = vmax.f32 %v5202_v36, 0.0  ;;  %v10221_v50 = vld [vmem:[#allocation10 + $0x80] sm:$0xff]   ;;  %v10207_v28 = vld [vmem:[#allocation8 + $0x58] sm:$0xff]   ;;  %v10208_v38 = vld [vmem:[#allocation8 + $0x60] sm:$0xff]  }
 0x9dd   :  { %v10209_v36 = vld [vmem:[#allocation8 + $0x68] sm:$0xff]  }
 0x9de   :  { %v5221_v9 = vmax.f32 %v5205_v52, 0.0  ;;  %v5203_v7 = vadd.f32 %v12398_v8, %v5180_v46  ;;  %v10182_v8 = vld [vmem:[#allocation8 + $0x8] sm:$0xff]   ;;  %v10210_v52 = vld [vmem:[#allocation8 + $0x70] sm:$0xff]   ;;  %v10211_v46 = vld [vmem:[#allocation8 + $0x78] sm:$0xff]  }
 0x9e0   :  { %v12465_v23 = vpack.c.bf16 %v5221_v9, %v5220_v12  ;;  %v5219_v3 = vmax.f32 %v5203_v7, 0.0  ;;  %v10218_v12 = vld [vmem:[#allocation8 + $0x80] sm:$0xff]  }
 0x9e2   :  { %v12467_v19 = vpack.c.bf16 %v5219_v3, %v5218_v5  ;;  %9286 = vmatprep.subr.bf16.mxu1 %v12465_v23  ;;  %9306 = vmatprep.subr.bf16.mxu0 %v12465_v23 }
 0x9e3   :  { %9287 = vmatpush3.bf16.msra.mxu1 %v12465_v23  ;;  %9307 = vmatpush3.bf16.msra.mxu0 %v12465_v23 }
 0x9e4   :  { %9288 = vmatprep.subr.bf16.mxu1 %v12467_v19  ;;  %9308 = vmatprep.subr.bf16.mxu0 %v12467_v19 }
 0x9e7   :  { %9289 = vmatpush3.bf16.msra.mxu1 %v12467_v19  ;;  %9309 = vmatpush3.bf16.msra.mxu0 %v12467_v19 }
 0x9e8   :  { %9290 = vmatprep.subr.bf16.mxu1 %v12449_v39  ;;  %9310 = vmatprep.subr.bf16.mxu0 %v12449_v39 }
 0x9eb   :  { %9291 = vmatpush3.bf16.msra.mxu1 %v12449_v39  ;;  %9311 = vmatpush3.bf16.msra.mxu0 %v12449_v39 }
 0x9ec   :  { %9292 = vmatprep.subr.bf16.mxu1 %v12452_v26  ;;  %9312 = vmatprep.subr.bf16.mxu0 %v12452_v26 }
 0x9ef   :  { %9293 = vmatpush3.bf16.msra.mxu1 %v12452_v26  ;;  %9313 = vmatpush3.bf16.msra.mxu0 %v12452_v26 }
 0x9f0   :  { %9294 = vmatprep.subr.bf16.mxu1 %v12430_v49  ;;  %9314 = vmatprep.subr.bf16.mxu0 %v12430_v49 }
 0x9f3   :  { %9295 = vmatpush3.bf16.msra.mxu1 %v12430_v49  ;;  %9315 = vmatpush3.bf16.msra.mxu0 %v12430_v49 }
 0x9f4   :  { %9296 = vmatprep.subr.bf16.mxu1 %v12433_v16  ;;  %9316 = vmatprep.subr.bf16.mxu0 %v12433_v16 }
 0x9f7   :  { %9297 = vmatpush3.bf16.msra.mxu1 %v12433_v16  ;;  %9317 = vmatpush3.bf16.msra.mxu0 %v12433_v16 }
 0x9f8   :  { %9298 = vmatprep.subr.bf16.mxu1 %v12411_v6  ;;  %9318 = vmatprep.subr.bf16.mxu0 %v12411_v6 }
 0x9fb   :  { %9299 = vmatpush3.bf16.msra.mxu1 %v12411_v6  ;;  %9319 = vmatpush3.bf16.msra.mxu0 %v12411_v6 }
 0x9fc   :  { %9300 = vmatprep.subr.bf16.mxu1 %v12414_v13  ;;  %9320 = vmatprep.subr.bf16.mxu0 %v12414_v13 }
 0x9ff   :  { %9301 = vmatpush3.bf16.msra.mxu1 %v12414_v13  ;;  %9321 = vmatpush3.bf16.msra.mxu0 %v12414_v13 }
 0xa00   :  { %9326 = vmatprep.subr.bf16.mxu1 %v10184_v40  ;;  %9346 = vmatprep.subr.bf16.mxu0 %v10192_v14 }
 0xa02   :  { %9303 = vmatmul.mubr.bf16.vlgmr.msra.gmra.mxu1 %v10182_v8  ;;  %9323 = vmatmul.mubr.bf16.vlgmr.msra.gmra.mxu0 %v10183_v25  ;;  %v10225_v8 = vld [vmem:[#allocation10 + $0xe0] sm:$0xff]   ;;  %v10227_v25 = vld [vmem:[#allocation10 + $0xd0] sm:$0xff]  }
 0xa03   :  { %9327 = vmatpush3.bf16.msra.mxu1 %v10184_v40  ;;  %9347 = vmatpush3.bf16.msra.mxu0 %v10192_v14  ;;  %v10223_v14 = vld [vmem:[#allocation10 + $0xf0] sm:$0xff]  }
 0xa04   :  { %9328 = vmatprep.subr.bf16.mxu1 %v10185_v51  ;;  %9348 = vmatprep.subr.bf16.mxu0 %v10193_v11 }
 0xa07   :  { %9329 = vmatpush3.bf16.msra.mxu1 %v10185_v51  ;;  %9349 = vmatpush3.bf16.msra.mxu0 %v10193_v11  ;;  %v10228_v51 = vld [vmem:[#allocation10 + $0xc8] sm:$0xff]  }
 0xa08   :  { %9330 = vmatprep.subr.bf16.mxu1 %v10186_v17  ;;  %9350 = vmatprep.subr.bf16.mxu0 %v10194_v44 }
 0xa0b   :  { %9331 = vmatpush3.bf16.msra.mxu1 %v10186_v17  ;;  %9351 = vmatpush3.bf16.msra.mxu0 %v10194_v44  ;;  %v10229_v17 = vld [vmem:[#allocation10 + $0xc0] sm:$0xff]  }
 0xa0c   :  { %9332 = vmatprep.subr.bf16.mxu1 %v10187_v54  ;;  %9352 = vmatprep.subr.bf16.mxu0 %v10195_v33 }
 0xa0f   :  { %9333 = vmatpush3.bf16.msra.mxu1 %v10187_v54  ;;  %9353 = vmatpush3.bf16.msra.mxu0 %v10195_v33  ;;  %v10230_v33 = vld [vmem:[#allocation10 + $0x138] sm:$0xff]  }
 0xa10   :  { %9334 = vmatprep.subr.bf16.mxu1 %v10188_v27  ;;  %9354 = vmatprep.subr.bf16.mxu0 %v10196_v1 }
 0xa13   :  { %9335 = vmatpush3.bf16.msra.mxu1 %v10188_v27  ;;  %9355 = vmatpush3.bf16.msra.mxu0 %v10196_v1 }
 0xa14   :  { %9336 = vmatprep.subr.bf16.mxu1 %v10189_v48  ;;  %9356 = vmatprep.subr.bf16.mxu0 %v10197_v58 }
 0xa17   :  { %9337 = vmatpush3.bf16.msra.mxu1 %v10189_v48  ;;  %9357 = vmatpush3.bf16.msra.mxu0 %v10197_v58  ;;  %v10231_v58 = vld [vmem:[#allocation10 + $0x130] sm:$0xff]  }
 0xa18   :  { %9338 = vmatprep.subr.bf16.mxu1 %v10190_v2  ;;  %9358 = vmatprep.subr.bf16.mxu0 %v10198_v41 }
 0xa1b   :  { %9339 = vmatpush3.bf16.msra.mxu1 %v10190_v2  ;;  %9359 = vmatpush3.bf16.msra.mxu0 %v10198_v41  ;;  %v10232_v2 = vld [vmem:[#allocation10 + $0x128] sm:$0xff]   ;;  %v10234_v41 = vld [vmem:[#allocation10 + $0x118] sm:$0xff]  }
 0xa1c   :  { %9340 = vmatprep.subr.bf16.mxu1 %v10191_v30  ;;  %9360 = vmatprep.subr.bf16.mxu0 %v10199_v53 }
 0xa1f   :  { %9341 = vmatpush3.bf16.msra.mxu1 %v10191_v30  ;;  %9361 = vmatpush3.bf16.msra.mxu0 %v10199_v53  ;;  %v10233_v30 = vld [vmem:[#allocation10 + $0x120] sm:$0xff]   ;;  %v10235_v53 = vld [vmem:[#allocation10 + $0x110] sm:$0xff]  }
 0xa20   :  { %9366 = vmatprep.subr.bf16.mxu1 %v12465_v23  ;;  %9386 = vmatprep.subr.bf16.mxu0 %v10212_v31 }
 0xac2   :  { %v9304_v57 = vpop.f32.mrf.mxu1  ;;  %v9324_v45 = vpop.f32.mrf.mxu0 }
 0xac4   :  { %v5280_v37 = vpop.f32.mrf.mxu1  ;;  %v5364_v59 = vpop.f32.mrf.mxu0 }
 0xac6   :  { %v9305_v47 = vpop.f32.mrf.mxu1  ;;  %v9325_v29 = vpop.f32.mrf.mxu0 }
 0xac7   :  { %v5296_v63 = vpack.c.bf16 %v9305_v47, %v9304_v57  ;;  %v5380_v56 = vpack.c.bf16 %v9325_v29, %v9324_v45  ;;  %v10236_v57 = vld [vmem:[#allocation10 + $0x108] sm:$0xff]   ;;  %v10238_v29 = vld [vmem:[#allocation10 + $0x178] sm:$0xff]  }
 0xac8   :  { %v5283_v62 = vpop.f32.mrf.mxu1  ;;  %v5367_v20 = vpop.f32.mrf.mxu0 }
 0xac9   :  { %v5295_v24 = vpack.c.bf16 %v5283_v62, %v5280_v37  ;;  %v5379_v43 = vpack.c.bf16 %v5367_v20, %v5364_v59  ;;  %v10237_v37 = vld [vmem:[#allocation10 + $0x100] sm:$0xff]  }
 0xacb   :  { %9342 = vmatprep.mubr.bf16.mxu1 %v5379_v43  ;;  %9362 = vmatprep.mubr.bf16.mxu0 %v5295_v24  ;;  %v10239_v24 = vld [vmem:[#allocation10 + $0x170] sm:$0xff]   ;;  %v10240_v43 = vld [vmem:[#allocation10 + $0x168] sm:$0xff]  }
 0xacc   :  { %9343 = vmatmul.mubr.bf16.vlgmr.msra.gmra.mxu1 %v5380_v56  ;;  %9363 = vmatmul.mubr.bf16.vlgmr.msra.gmra.mxu0 %v5296_v63  ;;  %v10242_v56 = vld [vmem:[#allocation10 + $0x158] sm:$0xff]  }
 0xacd   :  { %9367 = vmatpush3.bf16.msra.mxu1 %v12465_v23  ;;  %9382 = vmatprep.mubr.bf16.mxu1 %v10200_v32  ;;  %v10241_v32 = vld [vmem:[#allocation10 + $0x160] sm:$0xff]  }
 0xace   :  { %9368 = vmatprep.subr.bf16.mxu1 %v12467_v19  ;;  %9387 = vmatpush3.bf16.msra.mxu0 %v10212_v31 }
 0xacf   :  { %9388 = vmatprep.subr.bf16.mxu0 %v10213_v61 }
 0xad1   :  { %9369 = vmatpush3.bf16.msra.mxu1 %v12467_v19 }
 0xad2   :  { %9370 = vmatprep.subr.bf16.mxu1 %v12449_v39  ;;  %9389 = vmatpush3.bf16.msra.mxu0 %v10213_v61 }
 0xad3   :  { %9390 = vmatprep.subr.bf16.mxu0 %v10214_v55 }
 0xad5   :  { %9371 = vmatpush3.bf16.msra.mxu1 %v12449_v39 }
 0xad6   :  { %9372 = vmatprep.subr.bf16.mxu1 %v12452_v26  ;;  %9391 = vmatpush3.bf16.msra.mxu0 %v10214_v55  ;;  %v10246_v55 = vld [vmem:[#allocation10 + $0x1b8] sm:$0xff]  }
 0xad7   :  { %9392 = vmatprep.subr.bf16.mxu0 %v10215_v42 }
 0xad9   :  { %9373 = vmatpush3.bf16.msra.mxu1 %v12452_v26 }
 0xada   :  { %9374 = vmatprep.subr.bf16.mxu1 %v12430_v49  ;;  %9393 = vmatpush3.bf16.msra.mxu0 %v10215_v42 }
 0xadb   :  { %9394 = vmatprep.subr.bf16.mxu0 %v10216_v34 }
 0xadd   :  { %9375 = vmatpush3.bf16.msra.mxu1 %v12430_v49 }
 0xade   :  { %9376 = vmatprep.subr.bf16.mxu1 %v12433_v16  ;;  %9395 = vmatpush3.bf16.msra.mxu0 %v10216_v34 }
 0xadf   :  { %9396 = vmatprep.subr.bf16.mxu0 %v10217_v0 }
 0xae1   :  { %9377 = vmatpush3.bf16.msra.mxu1 %v12433_v16 }
 0xae2   :  { %9378 = vmatprep.subr.bf16.mxu1 %v12411_v6  ;;  %9397 = vmatpush3.bf16.msra.mxu0 %v10217_v0  ;;  %v10247_v0 = vld [vmem:[#allocation10 + $0x1b0] sm:$0xff]  }
 0xae3   :  { %9398 = vmatprep.subr.bf16.mxu0 %v10220_v21 }
 0xae5   :  { %9379 = vmatpush3.bf16.msra.mxu1 %v12411_v6 }
 0xae6   :  { %9380 = vmatprep.subr.bf16.mxu1 %v12414_v13  ;;  %9399 = vmatpush3.bf16.msra.mxu0 %v10220_v21  ;;  %v10249_v21 = vld [vmem:[#allocation10 + $0x1a0] sm:$0xff]  }
 0xae7   :  { %9400 = vmatprep.subr.bf16.mxu0 %v10221_v50 }
 0xae9   :  { %9381 = vmatpush3.bf16.msra.mxu1 %v12414_v13 }
 0xaea   :  { %9406 = vmatprep.subr.bf16.mxu1 %v12465_v23  ;;  %9401 = vmatpush3.bf16.msra.mxu0 %v10221_v50  ;;  %v10250_v50 = vld [vmem:[#allocation10 + $0x198] sm:$0xff]  }
 0xaeb   :  { %9426 = vmatprep.subr.bf16.mxu0 %v12554_v18 }
 0xaec   :  { %9383 = vmatmul.mubr.bf16.vlgmr.msra.gmra.mxu1 %v10201_v15  ;;  %v10243_v15 = vld [vmem:[#allocation10 + $0x150] sm:$0xff]  }
 0xaed   :  { %9407 = vmatpush3.bf16.msra.mxu1 %v12465_v23  ;;  %9422 = vmatprep.mubr.bf16.mxu1 %v10202_v4  ;;  %v10244_v4 = vld [vmem:[#allocation10 + $0x148] sm:$0xff]  }
 0xaee   :  { %9408 = vmatprep.subr.bf16.mxu1 %v12467_v19 }
 0xaf1   :  { %9409 = vmatpush3.bf16.msra.mxu1 %v12467_v19 }
 0xaf2   :  { %9410 = vmatprep.subr.bf16.mxu1 %v12449_v39 }
 0xaf5   :  { %9411 = vmatpush3.bf16.msra.mxu1 %v12449_v39 }
 0xaf6   :  { %9412 = vmatprep.subr.bf16.mxu1 %v12452_v26 }
 0xaf9   :  { %9413 = vmatpush3.bf16.msra.mxu1 %v12452_v26 }
 0xafa   :  { %9414 = vmatprep.subr.bf16.mxu1 %v12430_v49 }
 0xafd   :  { %9415 = vmatpush3.bf16.msra.mxu1 %v12430_v49 }
 0xafe   :  { %9416 = vmatprep.subr.bf16.mxu1 %v12433_v16 }
 0xb01   :  { %9417 = vmatpush3.bf16.msra.mxu1 %v12433_v16 }
 0xb02   :  { %9418 = vmatprep.subr.bf16.mxu1 %v12411_v6 }
 0xb05   :  { %9419 = vmatpush3.bf16.msra.mxu1 %v12411_v6 }
 0xb06   :  { %9420 = vmatprep.subr.bf16.mxu1 %v12414_v13 }
 0xb09   :  { %9421 = vmatpush3.bf16.msra.mxu1 %v12414_v13 }
 0xb0a   :  { %9446 = vmatprep.subr.bf16.mxu1 %v12465_v23 }
 0xb0c   :  { %9423 = vmatmul.mubr.bf16.vlgmr.msra.gmra.mxu1 %v10203_v60 }
 0xb0d   :  { %9447 = vmatpush3.bf16.msra.mxu1 %v12465_v23  ;;  %9462 = vmatprep.mubr.bf16.mxu1 %v10204_v22  ;;  %v10245_v22 = vld [vmem:[#allocation10 + $0x140] sm:$0xff]  }
 0xb0e   :  { %9448 = vmatprep.subr.bf16.mxu1 %v12467_v19 }
 0xb11   :  { %9449 = vmatpush3.bf16.msra.mxu1 %v12467_v19 }
 0xb12   :  { %9450 = vmatprep.subr.bf16.mxu1 %v12449_v39 }
 0xb15   :  { %9451 = vmatpush3.bf16.msra.mxu1 %v12449_v39 }
 0xb16   :  { %9452 = vmatprep.subr.bf16.mxu1 %v12452_v26 }
 0xb19   :  { %9453 = vmatpush3.bf16.msra.mxu1 %v12452_v26 }
 0xb1a   :  { %9454 = vmatprep.subr.bf16.mxu1 %v12430_v49 }
 0xb1d   :  { %9455 = vmatpush3.bf16.msra.mxu1 %v12430_v49 }
 0xb1e   :  { %9456 = vmatprep.subr.bf16.mxu1 %v12433_v16 }
 0xb21   :  { %9457 = vmatpush3.bf16.msra.mxu1 %v12433_v16 }
 0xb22   :  { %9458 = vmatprep.subr.bf16.mxu1 %v12411_v6 }
 0xb25   :  { %9459 = vmatpush3.bf16.msra.mxu1 %v12411_v6 }
 0xb26   :  { %9460 = vmatprep.subr.bf16.mxu1 %v12414_v13 }
 0xb29   :  { %9461 = vmatpush3.bf16.msra.mxu1 %v12414_v13 }
 0xb2a   :  { %9486 = vmatprep.subr.bf16.mxu1 %v12465_v23 }
 0xb2c   :  { %9463 = vmatmul.mubr.bf16.vlgmr.msra.gmra.mxu1 %v10205_v10 }
 0xb2d   :  { %9487 = vmatpush3.bf16.msra.mxu1 %v12465_v23  ;;  %9502 = vmatprep.mubr.bf16.mxu1 %v10206_v35  ;;  %v10248_v35 = vld [vmem:[#allocation10 + $0x1a8] sm:$0xff]  }
 0xb2e   :  { %9488 = vmatprep.subr.bf16.mxu1 %v12467_v19 }
 0xb31   :  { %9489 = vmatpush3.bf16.msra.mxu1 %v12467_v19 }
 0xb32   :  { %9490 = vmatprep.subr.bf16.mxu1 %v12449_v39 }
 0xb35   :  { %9491 = vmatpush3.bf16.msra.mxu1 %v12449_v39 }
 0xb36   :  { %9492 = vmatprep.subr.bf16.mxu1 %v12452_v26 }
 0xb39   :  { %9493 = vmatpush3.bf16.msra.mxu1 %v12452_v26 }
 0xb3a   :  { %9494 = vmatprep.subr.bf16.mxu1 %v12430_v49 }
 0xb3d   :  { %9495 = vmatpush3.bf16.msra.mxu1 %v12430_v49 }
 0xb3e   :  { %9496 = vmatprep.subr.bf16.mxu1 %v12433_v16 }
 0xb41   :  { %9497 = vmatpush3.bf16.msra.mxu1 %v12433_v16 }
 0xb42   :  { %9498 = vmatprep.subr.bf16.mxu1 %v12411_v6 }
 0xb45   :  { %9499 = vmatpush3.bf16.msra.mxu1 %v12411_v6 }
 0xb46   :  { %9500 = vmatprep.subr.bf16.mxu1 %v12414_v13 }
 0xb49   :  { %9501 = vmatpush3.bf16.msra.mxu1 %v12414_v13 }
 0xb4a   :  { %9526 = vmatprep.subr.bf16.mxu1 %v12465_v23 }
 0xb4c   :  { %9503 = vmatmul.mubr.bf16.vlgmr.msra.gmra.mxu1 %v10207_v28  ;;  %v10252_v28 = vld [vmem:[#allocation10 + $0x188] sm:$0xff]  }
 0xb4d   :  { %9527 = vmatpush3.bf16.msra.mxu1 %v12465_v23  ;;  %9542 = vmatprep.mubr.bf16.mxu1 %v10208_v38 }
 0xb4e   :  { %9528 = vmatprep.subr.bf16.mxu1 %v12467_v19 }
 0xb51   :  { %9529 = vmatpush3.bf16.msra.mxu1 %v12467_v19 }
 0xb52   :  { %9530 = vmatprep.subr.bf16.mxu1 %v12449_v39 }
 0xb55   :  { %9531 = vmatpush3.bf16.msra.mxu1 %v12449_v39 }
 0xb56   :  { %9532 = vmatprep.subr.bf16.mxu1 %v12452_v26 }
 0xb59   :  { %9533 = vmatpush3.bf16.msra.mxu1 %v12452_v26 }
 0xb5a   :  { %9534 = vmatprep.subr.bf16.mxu1 %v12430_v49 }
 0xb5d   :  { %9535 = vmatpush3.bf16.msra.mxu1 %v12430_v49 }
 0xb5e   :  { %9536 = vmatprep.subr.bf16.mxu1 %v12433_v16 }
 0xb61   :  { %9537 = vmatpush3.bf16.msra.mxu1 %v12433_v16 }
 0xb62   :  { %9538 = vmatprep.subr.bf16.mxu1 %v12411_v6 }
 0xb65   :  { %9539 = vmatpush3.bf16.msra.mxu1 %v12411_v6 }
 0xb66   :  { %9540 = vmatprep.subr.bf16.mxu1 %v12414_v13 }
 0xb69   :  { %9541 = vmatpush3.bf16.msra.mxu1 %v12414_v13 }
 0xb6a   :  { %9566 = vmatprep.subr.bf16.mxu1 %v12465_v23 }
 0xb6c   :  { %9543 = vmatmul.mubr.bf16.vlgmr.msra.gmra.mxu1 %v10209_v36  ;;  %v10253_v36 = vld [vmem:[#allocation10 + $0x180] sm:$0xff]  }
 0xb6d   :  { %9567 = vmatpush3.bf16.msra.mxu1 %v12465_v23  ;;  %9582 = vmatprep.mubr.bf16.mxu1 %v10210_v52 }
 0xb6e   :  { %9568 = vmatprep.subr.bf16.mxu1 %v12467_v19 }
 0xb71   :  { %9569 = vmatpush3.bf16.msra.mxu1 %v12467_v19 }
 0xb72   :  { %9570 = vmatprep.subr.bf16.mxu1 %v12449_v39 }
 0xb75   :  { %9571 = vmatpush3.bf16.msra.mxu1 %v12449_v39 }
 0xb76   :  { %9572 = vmatprep.subr.bf16.mxu1 %v12452_v26 }
 0xb79   :  { %9573 = vmatpush3.bf16.msra.mxu1 %v12452_v26 }
 0xb7a   :  { %9574 = vmatprep.subr.bf16.mxu1 %v12430_v49 }
 0xb7d   :  { %9575 = vmatpush3.bf16.msra.mxu1 %v12430_v49 }
 0xb7e   :  { %9576 = vmatprep.subr.bf16.mxu1 %v12433_v16 }
 0xb81   :  { %9577 = vmatpush3.bf16.msra.mxu1 %v12433_v16 }
 0xb82   :  { %9578 = vmatprep.subr.bf16.mxu1 %v12411_v6 }
 0xb85   :  { %9579 = vmatpush3.bf16.msra.mxu1 %v12411_v6 }
 0xb86   :  { %9580 = vmatprep.subr.bf16.mxu1 %v12414_v13 }
 0xb89   :  { %9581 = vmatpush3.bf16.msra.mxu1 %v12414_v13 }
 0xb8a   :  { %9606 = vmatprep.subr.bf16.mxu1 %v12465_v23 }
 0xb8c   :  { %9583 = vmatmul.mubr.bf16.vlgmr.msra.gmra.mxu1 %v10211_v46  ;;  %v12610_v9 = vpop.f32.mrf.mxu1 }
 0xb8d   :  { %9607 = vmatpush3.bf16.msra.mxu1 %v12465_v23  ;;  %9622 = vmatprep.mubr.bf16.mxu1 %v10218_v12  ;;  %v10254_v12 = vld [vmem:[#allocation10 + $0x1f8] sm:$0xff]  }
 0xb8e   :  { %9608 = vmatprep.subr.bf16.mxu1 %v12467_v19  ;;  %v12614_v7 = vpop.f32.mrf.mxu1 }
 0xb91   :  { %9609 = vmatpush3.bf16.msra.mxu1 %v12467_v19 }
 0xb92   :  { %9610 = vmatprep.subr.bf16.mxu1 %v12449_v39 }
 0xb95   :  { %9611 = vmatpush3.bf16.msra.mxu1 %v12449_v39  ;;  %v12618_v39 = vpop.f32.mrf.mxu1 }
 0xb96   :  { %9612 = vmatprep.subr.bf16.mxu1 %v12452_v26 }
 0xb99   :  { %9613 = vmatpush3.bf16.msra.mxu1 %v12452_v26  ;;  %v10219_v26 = vld [vmem:[#allocation8 + $0x88] sm:$0xff]  }
 0xb9a   :  { %9614 = vmatprep.subr.bf16.mxu1 %v12430_v49 }
 0xb9d   :  { %9615 = vmatpush3.bf16.msra.mxu1 %v12430_v49  ;;  %v12622_v49 = vpop.f32.mrf.mxu1 }
 0xb9e   :  { %9616 = vmatprep.subr.bf16.mxu1 %v12433_v16 }
 0xba1   :  { %9617 = vmatpush3.bf16.msra.mxu1 %v12433_v16 }
 0xba2   :  { %9618 = vmatprep.subr.bf16.mxu1 %v12411_v6 }
 0xba5   :  { %9619 = vmatpush3.bf16.msra.mxu1 %v12411_v6  ;;  %v10224_v6 = vld [vmem:[#allocation10 + $0xe8] sm:$0xff]  }
 0xba6   :  { %9620 = vmatprep.subr.bf16.mxu1 %v12414_v13 }
 0xba9   :  { %9621 = vmatpush3.bf16.msra.mxu1 %v12414_v13  ;;  %v10226_v13 = vld [vmem:[#allocation10 + $0xd8] sm:$0xff]  }
 0xbac   :  { %v9384_v5 = vpop.f32.mrf.mxu1  ;;  %9623 = vmatmul.mubr.bf16.vlgmr.msra.gmra.mxu1 %v10219_v26 }
 0xbae   :  { %v5643_v23 = vpop.f32.mrf.mxu1 }
 0xbb0   :  { %v9385_v3 = vpop.f32.mrf.mxu1 }
 0xbb1   :  { %v5659_v40 = vpack.c.bf16 %v9385_v3, %v9384_v5  ;;  %v10255_v3 = vld [vmem:[#allocation10 + $0x1f0] sm:$0xff]  }
 0xbb2   :  { %v5646_v16 = vpop.f32.mrf.mxu1 }
 0xbb3   :  { %v5658_v19 = vpack.c.bf16 %v5646_v16, %v5643_v23  ;;  %v10256_v16 = vld [vmem:[#allocation10 + $0x1e8] sm:$0xff]  }
 0xbb5   :  { %9402 = vmatprep.mubr.bf16.mxu0 %v5658_v19  ;;  %v10257_v19 = vld [vmem:[#allocation10 + $0x1e0] sm:$0xff]  }
 0xbb6   :  { %9403 = vmatmul.mubr.bf16.vlgmr.msra.gmra.mxu0 %v5659_v40  ;;  %v10258_v40 = vld [vmem:[#allocation10 + $0x1d8] sm:$0xff]  }
 0xbb7   :  { %9427 = vmatpush3.bf16.msra.mxu0 %v12554_v18  ;;  %v10251_v18 = vld [vmem:[#allocation10 + $0x190] sm:$0xff]  }
 0xbb8   :  { %9428 = vmatprep.subr.bf16.mxu0 %v10223_v14 }
 0xbbb   :  { %9429 = vmatpush3.bf16.msra.mxu0 %v10223_v14  ;;  %v10259_v14 = vld [vmem:[#allocation10 + $0x1d0] sm:$0xff]  }
 0xbbc   :  { %9430 = vmatprep.subr.bf16.mxu0 %v10224_v6 }
 0xbbf   :  { %9431 = vmatpush3.bf16.msra.mxu0 %v10224_v6  ;;  %v10260_v6 = vld [vmem:[#allocation10 + $0x1c8] sm:$0xff]  }
 0xbc0   :  { %9432 = vmatprep.subr.bf16.mxu0 %v10225_v8 }
 0xbc3   :  { %9433 = vmatpush3.bf16.msra.mxu0 %v10225_v8 }
 0xbc4   :  { %9434 = vmatprep.subr.bf16.mxu0 %v10226_v13 }
 0xbc7   :  { %9435 = vmatpush3.bf16.msra.mxu0 %v10226_v13  ;;  %v10261_v13 = vld [vmem:[#allocation10 + $0x1c0] sm:$0xff]  }
 0xbc8   :  { %9436 = vmatprep.subr.bf16.mxu0 %v10227_v25 }
 0xbcb   :  { %9437 = vmatpush3.bf16.msra.mxu0 %v10227_v25 }
 0xbcc   :  { %v9424_v11 = vpop.f32.mrf.mxu1  ;;  %9438 = vmatprep.subr.bf16.mxu0 %v10228_v51 }
 0xbce   :  { %v5829_v44 = vpop.f32.mrf.mxu1 }
 0xbcf   :  { %9439 = vmatpush3.bf16.msra.mxu0 %v10228_v51 }
 0xbd0   :  { %v9425_v54 = vpop.f32.mrf.mxu1  ;;  %9440 = vmatprep.subr.bf16.mxu0 %v10229_v17 }
 0xbd1   :  { %v5845_v48 = vpack.c.bf16 %v9425_v54, %v9424_v11  ;;  %v10262_v11 = vld [vmem:[#allocation10 + $0x238] sm:$0xff]  }
 0xbd2   :  { %v5832_v27 = vpop.f32.mrf.mxu1 }
 0xbd3   :  { %v5844_v1 = vpack.c.bf16 %v5832_v27, %v5829_v44  ;;  %9441 = vmatpush3.bf16.msra.mxu0 %v10229_v17  ;;  %v10264_v27 = vld [vmem:[#allocation10 + $0x228] sm:$0xff]  }
 0xbd4   :  { %9466 = vmatprep.subr.bf16.mxu0 %v10230_v33 }
 0xbd5   :  { %9442 = vmatprep.mubr.bf16.mxu0 %v5844_v1  ;;  %v10265_v1 = vld [vmem:[#allocation10 + $0x220] sm:$0xff]  }
 0xbd6   :  { %9443 = vmatmul.mubr.bf16.vlgmr.msra.gmra.mxu0 %v5845_v48  ;;  %v10266_v48 = vld [vmem:[#allocation10 + $0x218] sm:$0xff]  }
 0xbd7   :  { %9467 = vmatpush3.bf16.msra.mxu0 %v10230_v33  ;;  %v10263_v33 = vld [vmem:[#allocation10 + $0x230] sm:$0xff]  }
 0xbd8   :  { %9468 = vmatprep.subr.bf16.mxu0 %v10231_v58 }
 0xbdb   :  { %9469 = vmatpush3.bf16.msra.mxu0 %v10231_v58  ;;  %v10267_v58 = vld [vmem:[#allocation10 + $0x210] sm:$0xff]  }
 0xbdc   :  { %9470 = vmatprep.subr.bf16.mxu0 %v10232_v2 }
 0xbdf   :  { %9471 = vmatpush3.bf16.msra.mxu0 %v10232_v2  ;;  %v10268_v2 = vld [vmem:[#allocation10 + $0x208] sm:$0xff]  }
 0xbe0   :  { %9472 = vmatprep.subr.bf16.mxu0 %v10233_v30 }
 0xbe3   :  { %9473 = vmatpush3.bf16.msra.mxu0 %v10233_v30 }
 0xbe4   :  { %9474 = vmatprep.subr.bf16.mxu0 %v10234_v41 }
 0xbe7   :  { %9475 = vmatpush3.bf16.msra.mxu0 %v10234_v41  ;;  %v10269_v41 = vld [vmem:[#allocation10 + $0x200] sm:$0xff]  }
 0xbe8   :  { %9476 = vmatprep.subr.bf16.mxu0 %v10235_v53 }
 0xbeb   :  { %9477 = vmatpush3.bf16.msra.mxu0 %v10235_v53 }
 0xbec   :  { %v9464_v45 = vpop.f32.mrf.mxu1  ;;  %9478 = vmatprep.subr.bf16.mxu0 %v10236_v57 }
 0xbee   :  { %v6015_v59 = vpop.f32.mrf.mxu1 }
 0xbef   :  { %9479 = vmatpush3.bf16.msra.mxu0 %v10236_v57 }
 0xbf0   :  { %v9465_v47 = vpop.f32.mrf.mxu1  ;;  %9480 = vmatprep.subr.bf16.mxu0 %v10237_v37 }
 0xbf1   :  { %v6031_v20 = vpack.c.bf16 %v9465_v47, %v9464_v45  ;;  %v10571_v47 = vmov 0.0  }
 0xbf2   :  { %v6018_v63 = vpop.f32.mrf.mxu1  ;;  %9646 = vmatprep.subr.mxu1 %v10571_v47  ;;  %9654 = vmatprep.mubr.msk.f32.mxu1 %vm10572_vm2, %v10571_v47 }
 0xbf3   :  { %v6030_v62 = vpack.c.bf16 %v6018_v63, %v6015_v59  ;;  %9481 = vmatpush3.bf16.msra.mxu0 %v10237_v37 }
 0xbf4   :  { %9506 = vmatprep.subr.bf16.mxu0 %v10238_v29 }
 0xbf5   :  { %9482 = vmatprep.mubr.bf16.mxu0 %v6030_v62 }
 0xbf6   :  { %9483 = vmatmul.mubr.bf16.vlgmr.msra.gmra.mxu0 %v6031_v20 }
 0xbf7   :  { %9507 = vmatpush3.bf16.msra.mxu0 %v10238_v29  ;;  %v9364_v29 = vpop.f32.mrf.mxu0 }
 0xbf8   :  { %9508 = vmatprep.subr.bf16.mxu0 %v10239_v24 }
 0xbf9   :  { %v5577_v63 = vpop.f32.mrf.mxu0 }
 0xbfb   :  { %9509 = vmatpush3.bf16.msra.mxu0 %v10239_v24  ;;  %v9365_v62 = vpop.f32.mrf.mxu0 }
 0xbfc   :  { %9510 = vmatprep.subr.bf16.mxu0 %v10240_v43 }
 0xbfd   :  { %v5580_v20 = vpop.f32.mrf.mxu0 }
 0xbff   :  { %9511 = vmatpush3.bf16.msra.mxu0 %v10240_v43 }
 0xc00   :  { %9512 = vmatprep.subr.bf16.mxu0 %v10241_v32 }
 0xc03   :  { %9513 = vmatpush3.bf16.msra.mxu0 %v10241_v32 }
 0xc04   :  { %9514 = vmatprep.subr.bf16.mxu0 %v10242_v56 }
 0xc07   :  { %9515 = vmatpush3.bf16.msra.mxu0 %v10242_v56 }
 0xc08   :  { %9516 = vmatprep.subr.bf16.mxu0 %v10243_v15 }
 0xc0b   :  { %9517 = vmatpush3.bf16.msra.mxu0 %v10243_v15 }
 0xc0c   :  { %v9504_v60 = vpop.f32.mrf.mxu1  ;;  %9518 = vmatprep.subr.bf16.mxu0 %v10244_v4 }
 0xc0e   :  { %v6201_v31 = vpop.f32.mrf.mxu1 }
 0xc0f   :  { %9519 = vmatpush3.bf16.msra.mxu0 %v10244_v4 }
 0xc10   :  { %v9505_v61 = vpop.f32.mrf.mxu1  ;;  %9520 = vmatprep.subr.bf16.mxu0 %v10245_v22 }
 0xc11   :  { %v6217_v10 = vpack.c.bf16 %v9505_v61, %v9504_v60 }
 0xc12   :  { %v6204_v42 = vpop.f32.mrf.mxu1 }
 0xc13   :  { %v6216_v34 = vpack.c.bf16 %v6204_v42, %v6201_v31  ;;  %9521 = vmatpush3.bf16.msra.mxu0 %v10245_v22 }
 0xc14   :  { %9546 = vmatprep.subr.bf16.mxu0 %v10246_v55 }
 0xc15   :  { %9522 = vmatprep.mubr.bf16.mxu0 %v6216_v34 }
 0xc16   :  { %9523 = vmatmul.mubr.bf16.vlgmr.msra.gmra.mxu0 %v6217_v10 }
 0xc17   :  { %9547 = vmatpush3.bf16.msra.mxu0 %v10246_v55 }
 0xc18   :  { %9548 = vmatprep.subr.bf16.mxu0 %v10247_v0 }
 0xc1b   :  { %9549 = vmatpush3.bf16.msra.mxu0 %v10247_v0 }
 0xc1c   :  { %9550 = vmatprep.subr.bf16.mxu0 %v10248_v35 }
 0xc1f   :  { %9551 = vmatpush3.bf16.msra.mxu0 %v10248_v35 }
 0xc20   :  { %9552 = vmatprep.subr.bf16.mxu0 %v10249_v21 }
 0xc23   :  { %9553 = vmatpush3.bf16.msra.mxu0 %v10249_v21 }
 0xc24   :  { %9554 = vmatprep.subr.bf16.mxu0 %v10250_v50 }
 0xc27   :  { %9555 = vmatpush3.bf16.msra.mxu0 %v10250_v50 }
 0xc28   :  { %9556 = vmatprep.subr.bf16.mxu0 %v10251_v18 }
 0xc2b   :  { %9557 = vmatpush3.bf16.msra.mxu0 %v10251_v18 }
 0xc2c   :  { %v9544_v38 = vpop.f32.mrf.mxu1  ;;  %9558 = vmatprep.subr.bf16.mxu0 %v10252_v28 }
 0xc2e   :  { %v6387_v52 = vpop.f32.mrf.mxu1 }
 0xc2f   :  { %9559 = vmatpush3.bf16.msra.mxu0 %v10252_v28 }
 0xc30   :  { %v9545_v46 = vpop.f32.mrf.mxu1  ;;  %9560 = vmatprep.subr.bf16.mxu0 %v10253_v36 }
 0xc31   :  { %v6403_v23 = vpack.c.bf16 %v9545_v46, %v9544_v38  ;;  %v5589_v46 = vadd.f32 %v9365_v62, %v12618_v39 }
 0xc32   :  { %v6390_v26 = vpop.f32.mrf.mxu1 }
 0xc33   :  { %v6402_v5 = vpack.c.bf16 %v6390_v26, %v6387_v52  ;;  %9561 = vmatpush3.bf16.msra.mxu0 %v10253_v36  ;;  %v5586_v36 = vadd.f32 %v9364_v29, %v12610_v9  ;;  %v5578_v26 = vadd.f32 %v5577_v63, %v12614_v7 }
 0xc34   :  { %9586 = vmatprep.subr.bf16.mxu0 %v10254_v12 }
 0xc35   :  { %9562 = vmatprep.mubr.bf16.mxu0 %v6402_v5  ;;  %v5581_v5 = vadd.f32 %v5580_v20, %v12622_v49 }
 0xc36   :  { %9563 = vmatmul.mubr.bf16.vlgmr.msra.gmra.mxu0 %v6403_v23 }
 0xc37   :  { %9587 = vmatpush3.bf16.msra.mxu0 %v10254_v12 }
 0xc38   :  { %9588 = vmatprep.subr.bf16.mxu0 %v10255_v3 }
 0xc3b   :  { %9589 = vmatpush3.bf16.msra.mxu0 %v10255_v3 }
 0xc3c   :  { %9590 = vmatprep.subr.bf16.mxu0 %v10256_v16 }
 0xc3f   :  { %9591 = vmatpush3.bf16.msra.mxu0 %v10256_v16 }
 0xc40   :  { %9592 = vmatprep.subr.bf16.mxu0 %v10257_v19 }
 0xc43   :  { %9593 = vmatpush3.bf16.msra.mxu0 %v10257_v19 }
 0xc44   :  { %9594 = vmatprep.subr.bf16.mxu0 %v10258_v40 }
 0xc47   :  { %9595 = vmatpush3.bf16.msra.mxu0 %v10258_v40 }
 0xc48   :  { %9596 = vmatprep.subr.bf16.mxu0 %v10259_v14 }
 0xc4b   :  { %9597 = vmatpush3.bf16.msra.mxu0 %v10259_v14 }
 0xc4c   :  { %v9584_v8 = vpop.f32.mrf.mxu1  ;;  %9598 = vmatprep.subr.bf16.mxu0 %v10260_v6 }
 0xc4e   :  { %v6573_v25 = vpop.f32.mrf.mxu1 }
 0xc4f   :  { %9599 = vmatpush3.bf16.msra.mxu0 %v10260_v6 }
 0xc50   :  { %v9585_v51 = vpop.f32.mrf.mxu1  ;;  %9600 = vmatprep.subr.bf16.mxu0 %v10261_v13 }
 0xc51   :  { %v6589_v54 = vpack.c.bf16 %v9585_v51, %v9584_v8 }
 0xc52   :  { %v6576_v17 = vpop.f32.mrf.mxu1 }
 0xc53   :  { %v6588_v44 = vpack.c.bf16 %v6576_v17, %v6573_v25  ;;  %9601 = vmatpush3.bf16.msra.mxu0 %v10261_v13 }
 0xc54   :  { %9626 = vmatprep.subr.bf16.mxu0 %v10262_v11 }
 0xc55   :  { %9602 = vmatprep.mubr.bf16.mxu0 %v6588_v44 }
 0xc56   :  { %9603 = vmatmul.mubr.bf16.vlgmr.msra.gmra.mxu0 %v6589_v54 }
 0xc57   :  { %9627 = vmatpush3.bf16.msra.mxu0 %v10262_v11 }
 0xc58   :  { %9628 = vmatprep.subr.bf16.mxu0 %v10263_v33 }
 0xc5b   :  { %9629 = vmatpush3.bf16.msra.mxu0 %v10263_v33 }
 0xc5c   :  { %9630 = vmatprep.subr.bf16.mxu0 %v10264_v27 }
 0xc5f   :  { %9631 = vmatpush3.bf16.msra.mxu0 %v10264_v27 }
 0xc60   :  { %9632 = vmatprep.subr.bf16.mxu0 %v10265_v1 }
 0xc63   :  { %9633 = vmatpush3.bf16.msra.mxu0 %v10265_v1 }
 0xc64   :  { %9634 = vmatprep.subr.bf16.mxu0 %v10266_v48 }
 0xc67   :  { %9635 = vmatpush3.bf16.msra.mxu0 %v10266_v48 }
 0xc68   :  { %9636 = vmatprep.subr.bf16.mxu0 %v10267_v58 }
 0xc6b   :  { %9637 = vmatpush3.bf16.msra.mxu0 %v10267_v58 }
 0xc6c   :  { %v9624_v30 = vpop.f32.mrf.mxu1  ;;  %9638 = vmatprep.subr.bf16.mxu0 %v10268_v2 }
 0xc6e   :  { %v6759_v53 = vpop.f32.mrf.mxu1 }
 0xc6f   :  { %9639 = vmatpush3.bf16.msra.mxu0 %v10268_v2 }
 0xc70   :  { %v9625_v57 = vpop.f32.mrf.mxu1  ;;  %9640 = vmatprep.subr.bf16.mxu0 %v10269_v41 }
 0xc71   :  { %v6775_v59 = vpack.c.bf16 %v9625_v57, %v9624_v30 }
 0xc72   :  { %v6762_v45 = vpop.f32.mrf.mxu1 }
 0xc73   :  { %v6774_v37 = vpack.c.bf16 %v6762_v45, %v6759_v53  ;;  %9641 = vmatpush3.bf16.msra.mxu0 %v10269_v41  ;;  %v7689_v41 = vld [vmem:[#allocation11] ss:$0 sm:$0xff] }
 0xc75   :  { %9642 = vmatprep.mubr.bf16.mxu0 %v6774_v37 }
 0xc76   :  { %9643 = vmatmul.mubr.bf16.vlgmr.msra.gmra.mxu0 %v6775_v59  ;;  %v9404_v24 = vpop.f32.mrf.mxu0 }
 0xc77   :  { %v5776_v12 = vadd.f32 %v9404_v24, %v5586_v36 }
 0xc78   :  { %v5759_v43 = vpop.f32.mrf.mxu0 }
 0xc79   :  { %v5774_v19 = vadd.f32 %v5759_v43, %v5578_v26 }
 0xc7a   :  { %v9405_v32 = vpop.f32.mrf.mxu0 }
 0xc7b   :  { %v5777_v23 = vadd.f32 %v9405_v32, %v5589_v46 }
 0xc7c   :  { %v5762_v56 = vpop.f32.mrf.mxu0 }
 0xc7d   :  { %v5775_v40 = vadd.f32 %v5762_v56, %v5581_v5 }
 0xc96   :  { %v9444_v15 = vpop.f32.mrf.mxu0 }
 0xc97   :  { %v5962_v3 = vadd.f32 %v9444_v15, %v5776_v12 }
 0xc98   :  { %v5945_v4 = vpop.f32.mrf.mxu0 }
 0xc99   :  { %v5960_v8 = vadd.f32 %v5945_v4, %v5774_v19 }
 0xc9a   :  { %v9445_v60 = vpop.f32.mrf.mxu0 }
 0xc9b   :  { %v5963_v14 = vadd.f32 %v9445_v60, %v5777_v23  ;;  %v6909_v60 = vld [vmem:[#allocation13] sm:$0xff] }
 0xc9c   :  { %v5948_v22 = vpop.f32.mrf.mxu0 }
 0xc9d   :  { %v5961_v13 = vadd.f32 %v5948_v22, %v5775_v40  ;;  %v6985_v22 = vld [vmem:[%s12673_s8] sm:$0xff] }
 0xcb6   :  { %v9484_v31 = vpop.f32.mrf.mxu0 }
 0xcb7   :  { %v6148_v6 = vadd.f32 %v9484_v31, %v5962_v3 }
 0xcb8   :  { %v6131_v61 = vpop.f32.mrf.mxu0 }
 0xcb9   :  { %v6146_v11 = vadd.f32 %v6131_v61, %v5960_v8 }
 0xcba   :  { %v9485_v55 = vpop.f32.mrf.mxu0 }
 0xcbb   :  { %v6149_v25 = vadd.f32 %v9485_v55, %v5963_v14 }
 0xcbc   :  { %v6134_v42 = vpop.f32.mrf.mxu0 }
 0xcbd   :  { %v6147_v17 = vadd.f32 %v6134_v42, %v5961_v13  ;;  %v6986_v42 = vld [vmem:[%s12673_s8 + $0x8] sm:$0xff] }
 0xcd6   :  { %v9524_v34 = vpop.f32.mrf.mxu0 }
 0xcd7   :  { %v6334_v51 = vadd.f32 %v9524_v34, %v6148_v6  ;;  %v6987_v34 = vld [vmem:[%s12673_s8 + $0x10] sm:$0xff] }
 0xcd8   :  { %v6317_v10 = vpop.f32.mrf.mxu0 }
 0xcd9   :  { %v6332_v7 = vadd.f32 %v6317_v10, %v6146_v11  ;;  %v6988_v10 = vld [vmem:[%s12673_s8 + $0x18] sm:$0xff]  ;;  %s10573_s8 = smov [#allocation14]  }
 0xcda   :  { %v9525_v0 = vpop.f32.mrf.mxu0  ;;  %s7180_s1 = sshll.u32 %s10573_s8, 4  ;;  %s7181_s1 = int_to_ptr.vmem [resolvable:$true] %s7180_s1 }
 0xcdb   :  { %v6335_v39 = vadd.f32 %v9525_v0, %v6149_v25  ;;  %s10508_s26 = scalar_lea.vmem %s7181_s1, 32  ;;  %p10513_p8 = scmp.lt.s32.totalorder %s7181_s1, %s7181_s1 }
 0xcdc   :  { %v6320_v35 = vpop.f32.mrf.mxu0  ;;  %p10509_p7 = scmp.ne.s32.totalorder %s7181_s1, %s10508_s26  ;;  %p10514_p9 = scmp.lt.s32.totalorder %s10508_s26, %s10508_s26 }
 0xcdd   :  { %v6333_v33 = vadd.f32 %v6320_v35, %v6147_v17 }
 0xcde   :  { %p10515_p10 = por %p10514_p9, %p10513_p8 }
 0xce0   :  { %p10516_p11 = pnand %p10515_p10, %p10509_p7 }
 0xcf6   :  { %v9564_v21 = vpop.f32.mrf.mxu0 }
 0xcf7   :  { %v6520_v44 = vadd.f32 %v9564_v21, %v6334_v51 }
 0xcf8   :  { %v6503_v50 = vpop.f32.mrf.mxu0 }
 0xcf9   :  { %v6518_v48 = vadd.f32 %v6503_v50, %v6332_v7 }
 0xcfa   :  { %v9565_v18 = vpop.f32.mrf.mxu0 }
 0xcfb   :  { %v6521_v49 = vadd.f32 %v9565_v18, %v6335_v39 }
 0xcfc   :  { %v6506_v28 = vpop.f32.mrf.mxu0 }
 0xcfd   :  { %v6519_v58 = vadd.f32 %v6506_v28, %v6333_v33 }
 0xd16   :  { %v9604_v38 = vpop.f32.mrf.mxu0 }
 0xd17   :  { %v6706_v27 = vadd.f32 %v9604_v38, %v6520_v44 }
 0xd18   :  { %v6689_v52 = vpop.f32.mrf.mxu0 }
 0xd19   :  { %v6704_v57 = vadd.f32 %v6689_v52, %v6518_v48 }
 0xd1a   :  { %v9605_v16 = vpop.f32.mrf.mxu0 }
 0xd1b   :  { %v6707_v2 = vadd.f32 %v9605_v16, %v6521_v49 }
 0xd1c   :  { %v6692_v9 = vpop.f32.mrf.mxu0 }
 0xd1d   :  { %v6705_v45 = vadd.f32 %v6692_v9, %v6519_v58 }
 0xd36   :  { %v9644_v54 = vpop.f32.mrf.mxu0 }
 0xd37   :  { %v6892_v30 = vadd.f32 %v9644_v54, %v6706_v27 }
 0xd38   :  { %v6875_v1 = vpop.f32.mrf.mxu0 }
 0xd39   :  { %v6903_v29 = vadd.f32 %v7689_v41, %v6892_v30  ;;  %v6890_v63 = vadd.f32 %v6875_v1, %v6704_v57 }
 0xd3a   :  { %v9645_v53 = vpop.f32.mrf.mxu0 }
 0xd3b   :  { %v6893_v37 = vadd.f32 %v9645_v53, %v6707_v2  ;;  %v6907_v32 = vmax.f32 %v6903_v29, 0.0  ;;  %v6901_v56 = vadd.f32 %v7689_v41, %v6890_v63 }
 0xd3c   :  { %v6878_v59 = vpop.f32.mrf.mxu0 }
 0xd3d   :  { %v6904_v62 = vadd.f32 %v7689_v41, %v6893_v37  ;;  %v6891_v20 = vadd.f32 %v6878_v59, %v6705_v45  ;;  %v6905_v4 = vmax.f32 %v6901_v56, 0.0 }
 0xd3f   :  { %v6908_v24 = vmax.f32 %v6904_v62, 0.0  ;;  %v6902_v43 = vadd.f32 %v7689_v41, %v6891_v20 }
 0xd41   :  { %9647 = vmatpush3.msra.mxu1 %v6908_v24  ;;  %v6906_v15 = vmax.f32 %v6902_v43, 0.0 }
 0xd42   :  { %9648 = vmatprep.subr.mxu1 %v10571_v47 }
 0xd43   :  { %9649 = vmatpush3.msra.mxu1 %v6907_v32 }
 0xd44   :  { %9650 = vmatprep.subr.mxu1 %v10571_v47 }
 0xd45   :  { %9651 = vmatpush3.msra.mxu1 %v6906_v15 }
 0xd46   :  { %9652 = vmatprep.subr.mxu1 %v10571_v47 }
 0xd47   :  { %9653 = vmatpush3.msra.mxu1 %v6905_v4 }
 0xd48   :  { %9655 = vmatmul.mubr.msk.f32.vlgmr.msra.gmra.mxu1 %vm6910_vm3, %v6909_v60 }
 0xd49   :  { %9659 = vmatprep.mubr.msk.f32.mxu1 %vm1174_vm1, %v6985_v22 }
 0xe08   :  { %v6980_v31 = vpop.f32.mrf.mxu1 }
 0xe09   :  { %v6984_v61 = vmul.f32 0.0625, %v6980_v31 }
 0xe0a   :  { %v9656_v55 = vpop.f32.mrf.mxu1 }
 0xe0b   :  { %7172 = vst [vmem:[#allocation14] sm:$0x3] %v6984_v61  ;;  %9657 = vmatprep.subr.mxu1 %v6984_v61 }
 0xe0c   :  { %9658 = vmatpush3.msra.mxu1 %v6984_v61 }
 0xe0d   :  { %9660 = vmatmul.mubr.msk.f32.vlgmr.msra.gmra.mxu1 %vm1174_vm1, %v6986_v42  ;;  %9665 = vmatprep.subr.mxu1 %v10571_v47 }
 0xe0e   :  { %9662 = vmatprep.mubr.msk.f32.mxu1 %vm1174_vm1, %v6987_v34 }
 0xe11   :  { %9663 = vmatmul.mubr.msk.f32.gmra.mxu1 %vm1174_vm1, %v6988_v10 }
 0xe12   :  { %9673 = vmatprep.mubr.msk.f32.mxu1 %vm10572_vm2, %v10571_v47 }
 0xecd   :  { %v9661_v0 = vpop.f32.mrf.mxu1 }
 0xece   :  { %v7087_v28 = vsub.f32 %v6906_v15, %v9661_v0 }
 0xecf   :  { %v7067_v35 = vpop.f32.mrf.mxu1 }
 0xed0   :  { %v7086_v52 = vsub.f32 %v6905_v4, %v7067_v35  ;;  %v7091_v12 = vmul.f32 %v7087_v28, %v7087_v28 }
 0xed1   :  { %v9664_v21 = vpop.f32.mrf.mxu1 }
 0xed2   :  { %v7089_v50 = vsub.f32 %v6908_v24, %v9664_v21  ;;  %v7090_v26 = vmul.f32 %v7086_v52, %v7086_v52 }
 0xed3   :  { %v7077_v18 = vpop.f32.mrf.mxu1 }
 0xed4   :  { %v7093_v38 = vmul.f32 %v7089_v50, %v7089_v50  ;;  %v7088_v36 = vsub.f32 %v6907_v32, %v7077_v18 }
 0xed6   :  { %v7092_v46 = vmul.f32 %v7088_v36, %v7088_v36  ;;  %9666 = vmatpush3.msra.mxu1 %v7093_v38 }
 0xed7   :  { %9667 = vmatprep.subr.mxu1 %v10571_v47 }
 0xed8   :  { %9668 = vmatpush3.msra.mxu1 %v7092_v46 }
 0xed9   :  { %9669 = vmatprep.subr.mxu1 %v10571_v47 }
 0xeda   :  { %9670 = vmatpush3.msra.mxu1 %v7091_v12 }
 0xedb   :  { %9671 = vmatprep.subr.mxu1 %v10571_v47 }
 0xedc   :  { %9672 = vmatpush3.msra.mxu1 %v7090_v26 }
 0xedd   :  { %9674 = vmatmul.mubr.msk.f32.vlgmr.msra.gmra.mxu1 %vm6910_vm3, %v6909_v60 }
 0xede   :  { %10519 = shalt.err (!%p10516_p11)
}
 0xedf   :  { %7183 = dma.vmem_to_hbm [thread:$0]  %s7181_s1, 32, %s12674_s9, [#allocation4]  }
 0xee0   :  { %s10574_s28 = smov [#allocation15]  }
 0xee1   :  { %s7190_s3 = sshll.u32 %s10574_s28, 4  ;;  %s7191_s3 = int_to_ptr.vmem [resolvable:$true] %s7190_s3 }
 0xee2   :  { %s10528_s29 = scalar_lea.vmem %s7191_s3, 32  ;;  %p10533_p13 = scmp.lt.s32.totalorder %s7191_s3, %s7191_s3 }
 0xee3   :  { %p10529_p12 = scmp.ne.s32.totalorder %s7191_s3, %s10528_s29  ;;  %p10534_p0 = scmp.lt.s32.totalorder %s10528_s29, %s10528_s29 }
 0xee5   :  { %p10535_p1 = por %p10534_p0, %p10533_p13 }
 0xee7   :  { %p10536_p2 = pnand %p10535_p1, %p10529_p12 }
 0xf9d   :  { %v7160_v5 = vpop.f32.mrf.mxu1 }
 0xf9e   :  { %v7164_v23 = vmul.f32 0.06666667, %v7160_v5 }
 0xf9f   :  { %v9675_v47 = vpop.f32.mrf.mxu1 }
 0xfa0   :  { %10270 = vrsqrt.f32 %v7164_v23  ;;  %vm7167_vm4 = vcmp.eq.f32.partialorder %v7164_v23, inf  ;;  %v7170_v19 = vand.u32 2147483648, %v7164_v23  ;;  %vm7169_vm5 = vcmp.eq.f32.partialorder %v7164_v23, 0.0 }
 0xfad   :  { %v10271_v3 = vpop.eup %10270 }
 0xfae   :  { %v7166_v16 = vmul.f32 %v10271_v3, %v7164_v23 }
 0xfb0   :  { %v7168_v40 = vsel %vm7167_vm4, %v7164_v23, %v7166_v16 }
 0xfb1   :  { %v7171_v14 = vsel %vm7169_vm5, %v7170_v19, %v7168_v40 }
 0xfb2   :  { %7173 = vst [vmem:[#allocation15] sm:$0x3] %v7171_v14 }
 0xfb3   :  { %10539 = shalt.err (!%p10536_p2)
}
 0xfb4   :  { %7193 = dma.vmem_to_hbm [thread:$0]  %s7191_s3, 32, %s12675_s10, [#allocation16]  }
 0xfb5   :  { %10556 = dma.done.wait [#allocation4], 32  }
 0xfb6   :  { %10557 = vsyncadd [#allocation4], 4294967264 }
 0xfb7   :  { %10558 = dma.done.wait [#allocation16], 32  }
 0xfb8   :  { %10559 = vsyncadd [#allocation16], 4294967264 }
 0xfb9   :  { %7200 = vsyncpa [#allocation3], 1 }
 0xfba   :  { %7201 = vsyncpa [#allocation6], 1 }
 0xfbb   :  { %7202 = vsyncpa [#allocation9], 1 }
 0xfbc   :  { %7203 = vsyncpa [#allocation12], 1 }
 0xfbd   :  { %7204 = vsyncpa [#allocation4], 1 }
 0xfbe   :  { %7205 = vsyncpa [#allocation16], 1 }

</bundles_post_ra>
